<compile_context>
chip_gen: v7x
topology: tpu7x:2x2x1
jax: 0.10.0
libtpu: 0.0.40
codegen_flags: <defaults>
</compile_context>

<pallas_src>
import functools

import numpy as np
import jax
import jax.numpy as jnp
from jax.experimental import pallas as pl
from jax.experimental.pallas import tpu as pltpu

C_IN, C_MID, C_FEAT = 4, 8, 16
C_PAD = 8                                  # channel pad so sublane tiles are 8-aligned
LAMBDA_1, LAMBDA_2, LAMBDA_TV = 1.0, 1.0, 1e-3


# ----------------------------------------------------------------------------
# Host-side (trace-time) helpers: tap-validity masks and per-tap weight packing.
# ----------------------------------------------------------------------------
def _build_masks(N, H, W):
    """(9, 8, N*H*W) f32 masks: 1 where the shifted read stays inside its image.

    Pre-broadcast to 8 sublanes and tiled over the N lane-batched images so the
    kernel only loads them (no in-kernel broadcast_in_dim per tap).
    """
    HW = H * W
    h = np.arange(HW) // W
    w = np.arange(HW) % W
    m = np.zeros((9, HW), np.float32)
    for dy in (-1, 0, 1):
        for dx in (-1, 0, 1):
            t = (dy + 1) * 3 + (dx + 1)
            ok = (h + dy >= 0) & (h + dy < H) & (w + dx >= 0) & (w + dx < W)
            m[t] = ok.astype(np.float32)
    m = np.tile(m, (1, N))                                       # (9, N*HW)
    m = np.broadcast_to(m[:, None, :], (9, 8, N * HW)).copy()    # (9, 8, N*HW)
    return jnp.asarray(m)


def _pack_conv(w, b, cin_pad, cout_pad):
    """(3,3,Cin,Cout) HWIO weights -> (9, Cout_pad, Cin_pad) bf16 per-tap matrices."""
    kh, kw, cin, cout = w.shape
    wp = jnp.zeros((kh, kw, cin_pad, cout_pad), jnp.float32)
    wp = wp.at[:, :, :cin, :cout].set(w)
    # (ky, kx, i, o) -> (t = ky*3+kx, o, i)
    wt = jnp.transpose(wp.reshape(kh * kw, cin_pad, cout_pad), (0, 2, 1))
    bp = jnp.zeros((cout_pad, 1), jnp.float32).at[:cout, 0].set(b)
    return wt.astype(jnp.bfloat16), bp


def init_params(key):
    ks = jax.random.split(key, 8)

    def w(k, shape):
        return (0.1 * jax.random.normal(k, shape)).astype(jnp.float32)

    enc_w1, enc_b1 = w(ks[0], (3, 3, C_IN, C_MID)),   w(ks[1], (C_MID,))
    enc_w2, enc_b2 = w(ks[2], (3, 3, C_MID, C_FEAT)), w(ks[3], (C_FEAT,))
    dec_w1, dec_b1 = w(ks[4], (3, 3, C_FEAT, C_MID)), w(ks[5], (C_MID,))
    dec_w2, dec_b2 = w(ks[6], (3, 3, C_MID, C_IN)),   w(ks[7], (C_IN,))

    p = {}
    p['w1'], p['b1'] = _pack_conv(enc_w1, enc_b1, C_PAD,  C_MID)   # 4(->8) -> 8
    p['w2'], p['b2'] = _pack_conv(enc_w2, enc_b2, C_MID,  C_FEAT)  # 8      -> 16
    p['w3'], p['b3'] = _pack_conv(dec_w1, dec_b1, C_FEAT, C_MID)   # 16     -> 8
    p['w4'], p['b4'] = _pack_conv(dec_w2, dec_b2, C_MID,  C_PAD)   # 8      -> 4(->8, pad rows = 0)
    return p


# ----------------------------------------------------------------------------
# Fully fused forward kernel: one grid step for the whole (lane-batched) batch.
# ----------------------------------------------------------------------------
def _fwd_kernel(x_ref, m_ref, w1, b1, w2, b2, w3, b3, w4, b4,
                out2_ref, st_ref, *, img_w, lanes, c_real):
    x = x_ref[...]                         # (C_PAD, N*HW) f32; rows >= c_real are zero

    def conv3x3(h, wt_ref, b_ref, relu, mask_output=False):
        # 3x3 "same" conv via per-tap matmul accumulation (at most one tap live).
        # Zero-padding masks are applied on whichever side of the matmul is
        # 8-channels wide (mathematically identical since masks are 0/1 and
        # broadcast over the contraction dim).
        acc = None
        for dy in (-1, 0, 1):
            for dx in (-1, 0, 1):
                t = (dy + 1) * 3 + (dx + 1)
                off = dy * img_w + dx
                s = h if off == 0 else pltpu.roll(h, (-off) % lanes, axis=1)
                if t != 4 and not mask_output:
                    s = s * m_ref[t]                       # (Cin=8, L) mask
                part = jnp.dot(wt_ref[t], s.astype(jnp.bfloat16),
                               preferred_element_type=jnp.float32)
                if t != 4 and mask_output:
                    part = part * m_ref[t]                 # (Cout=8, L) mask
                acc = part if acc is None else acc + part
        out = acc + b_ref[...]
        return jnp.maximum(out, 0.0) if relu else out

    # encoder(input) -> r41
    feat_in = conv3x3(conv3x3(x, w1, b1, True), w2, b2, True)            # (C_FEAT, L)
    # decoder(r41) -> output2  (padded output channels are exactly zero)
    h_dec = conv3x3(feat_in, w3, b3, True, mask_output=True)             # (C_MID, L)
    out2 = conv3x3(h_dec, w4, b4, False)                                 # (C_PAD, L)
    out2_ref[...] = out2

    # output = input - output2 ; encoder(output) -> r41
    output = x - out2
    feat_out = conv3x3(conv3x3(output, w1, b1, True), w2, b2, True)

    dfe = feat_out - feat_in
    feat_ss = jnp.sum(dfe * dfe)            # Σ|enc(output)-enc(input)|²
    pix_ss = jnp.sum(out2 * out2)           # Σ|output-input|²  ( == Σ|output2|² )

    # TV regularizer, beta = 2.0 — literal PyTorch slicing on the NCHW tensor:
    # diffs along dim 1 (channels) and dim 2 (H).
    row = jax.lax.broadcasted_iota(jnp.int32, out2.shape, 0)
    ch_mask = ((row >= 1) & (row < c_real)).astype(jnp.float32)
    dyv = (output - pltpu.roll(output, 1, axis=0)) * ch_mask              # diff over C
    dxv = (output - pltpu.roll(output, img_w, axis=1)) * m_ref[1]         # diff over H (h>=1)
    tv = jnp.sum(dxv * dxv) + jnp.sum(dyv * dyv)

    lane = jax.lax.broadcasted_iota(jnp.int32, (8, 128), 1)
    st_ref[...] = (feat_ss * (lane == 0).astype(jnp.float32)
                   + pix_ss * (lane == 1).astype(jnp.float32)
                   + tv * (lane == 2).astype(jnp.float32))


# ----------------------------------------------------------------------------
# Wrapper: one pallas_call for the whole forward, tiny scalar finalize outside.
# ----------------------------------------------------------------------------
def autoencoder_forward(params, x_nchw):
    N, C, H, W = x_nchw.shape
    HW = H * W
    L = N * HW
    # NCHW -> (C_PAD, N*HW): images concatenated along the 128-lane axis,
    # channels (padded to 8) on sublanes.  All activations stay lane-dense.
    x_flat = jnp.pad(
        jnp.transpose(x_nchw.reshape(N, C, HW), (1, 0, 2)).reshape(C, L),
        ((0, C_PAD - C), (0, 0)))
    masks = _build_masks(N, H, W)

    kernel = functools.partial(_fwd_kernel, img_w=W, lanes=L, c_real=C)
    full2 = lambda i: (0, 0)
    full3 = lambda i: (0, 0, 0)

    out2_flat, stats = pl.pallas_call(
        kernel,
        out_shape=(jax.ShapeDtypeStruct((C_PAD, L), jnp.float32),
                   jax.ShapeDtypeStruct((8, 128), jnp.float32)),
        grid=(1,),
        in_specs=[
            pl.BlockSpec((C_PAD, L), full2),
            pl.BlockSpec(masks.shape, full3),
            pl.BlockSpec(params['w1'].shape, full3), pl.BlockSpec(params['b1'].shape, full2),
            pl.BlockSpec(params['w2'].shape, full3), pl.BlockSpec(params['b2'].shape, full2),
            pl.BlockSpec(params['w3'].shape, full3), pl.BlockSpec(params['b3'].shape, full2),
            pl.BlockSpec(params['w4'].shape, full3), pl.BlockSpec(params['b4'].shape, full2),
        ],
        out_specs=(pl.BlockSpec((C_PAD, L), full2),
                   pl.BlockSpec((8, 128), full2)),
        compiler_params=pltpu.CompilerParams(
            dimension_semantics=("arbitrary",)),
    )(x_flat, masks, params['w1'], params['b1'], params['w2'], params['b2'],
      params['w3'], params['b3'], params['w4'], params['b4'])

    # TODO(synk): fft_magnitude_phase + np.save of amplitude/phase are omitted
    # (helper undefined in the source; host-side file I/O has no Pallas
    # equivalent).

    output2 = jnp.transpose(out2_flat[:C].reshape(C, N, HW), (1, 0, 2)).reshape(N, C, H, W)

    feat_ss = stats[0, 0]
    pix_ss = stats[0, 1]
    tv = stats[0, 2]
    feature_loss = jnp.sqrt(feat_ss / (N * C_FEAT * HW))       # sqrt(mean(|.|^2))
    per_pixel_loss = jnp.sqrt(pix_ss / (N * C * HW))
    loss = LAMBDA_TV * tv + LAMBDA_1 * feature_loss + LAMBDA_2 * per_pixel_loss
    return output2, loss, feature_loss, per_pixel_loss


if __name__ == "__main__":
    key = jax.random.PRNGKey(0)
    kp, kx = jax.random.split(key)
    params = init_params(kp)
    x = jax.random.normal(kx, (2, C_IN, 16, 16), dtype=jnp.float32)   # NCHW

    fwd = jax.jit(autoencoder_forward)
    output2, loss, feature_loss, per_pixel_loss = fwd(params, x)
    jax.block_until_ready((output2, loss, feature_loss, per_pixel_loss))

    assert output2.shape == x.shape
    assert loss.shape == () and feature_loss.shape == () and per_pixel_loss.shape == ()
    print("KERNEL_OK")
</pallas_src>

<mosaic_0001>
module attributes {stable_mosaic.version = 11 : i64} {
  func.func @_fwd_kernel(%arg0: i32, %arg1: memref<8x512xf32, #tpu.memory_space<vmem>>, %arg2: memref<9x8x512xf32, #tpu.memory_space<vmem>>, %arg3: memref<9x8x8xbf16, #tpu.memory_space<vmem>>, %arg4: memref<8x1xf32, #tpu.memory_space<vmem>>, %arg5: memref<9x16x8xbf16, #tpu.memory_space<vmem>>, %arg6: memref<16x1xf32, #tpu.memory_space<vmem>>, %arg7: memref<9x8x16xbf16, #tpu.memory_space<vmem>>, %arg8: memref<8x1xf32, #tpu.memory_space<vmem>>, %arg9: memref<9x8x8xbf16, #tpu.memory_space<vmem>>, %arg10: memref<8x1xf32, #tpu.memory_space<vmem>>, %arg11: memref<8x512xf32, #tpu.memory_space<vmem>>, %arg12: memref<8x128xf32, #tpu.memory_space<vmem>>) attributes {dimension_semantics = [#tpu.dimension_semantics<arbitrary>], iteration_bounds = array<i64: 1>, scalar_prefetch = 0 : i64, scratch_operands = 0 : i64, tpu.core_type = #tpu.core_type<tc>, window_params = [{pipeline_mode = #tpu.pipeline_mode<synchronous>, transform_indices = @transform_0, window_bounds = array<i64: 8, 512>}, {pipeline_mode = #tpu.pipeline_mode<synchronous>, transform_indices = @transform_1, window_bounds = array<i64: 9, 8, 512>}, {pipeline_mode = #tpu.pipeline_mode<synchronous>, transform_indices = @transform_2, window_bounds = array<i64: 9, 8, 8>}, {pipeline_mode = #tpu.pipeline_mode<synchronous>, transform_indices = @transform_3, window_bounds = array<i64: 8, 1>}, {pipeline_mode = #tpu.pipeline_mode<synchronous>, transform_indices = @transform_4, window_bounds = array<i64: 9, 16, 8>}, {pipeline_mode = #tpu.pipeline_mode<synchronous>, transform_indices = @transform_5, window_bounds = array<i64: 16, 1>}, {pipeline_mode = #tpu.pipeline_mode<synchronous>, transform_indices = @transform_6, window_bounds = array<i64: 9, 8, 16>}, {pipeline_mode = #tpu.pipeline_mode<synchronous>, transform_indices = @transform_7, window_bounds = array<i64: 8, 1>}, {pipeline_mode = #tpu.pipeline_mode<synchronous>, transform_indices = @transform_8, window_bounds = array<i64: 9, 8, 8>}, {pipeline_mode = #tpu.pipeline_mode<synchronous>, transform_indices = @transform_9, window_bounds = array<i64: 8, 1>}, {pipeline_mode = #tpu.pipeline_mode<synchronous>, transform_indices = @transform_10, window_bounds = array<i64: 8, 512>}, {pipeline_mode = #tpu.pipeline_mode<synchronous>, transform_indices = @transform_11, window_bounds = array<i64: 8, 128>}]} {
    %c0 = arith.constant 0 : index
    %c0_0 = arith.constant 0 : index
    %0 = vector.load %arg1[%c0, %c0_0] : memref<8x512xf32, #tpu.memory_space<vmem>>, vector<8x512xf32>
    %c17_i32 = arith.constant 17 : i32
    %1 = tpu.dynamic_rotate %0 by %c17_i32 dim 1 : vector<8x512xf32>, i32 -> vector<8x512xf32>
    %c0_1 = arith.constant 0 : index
    %c0_2 = arith.constant 0 : index
    %c0_3 = arith.constant 0 : index
    %2 = vector.load %arg2[%c0_1, %c0_2, %c0_3] : memref<9x8x512xf32, #tpu.memory_space<vmem>>, vector<1x8x512xf32>
    %3 = vector.shape_cast %2 : vector<1x8x512xf32> to vector<8x512xf32>
    %4 = arith.mulf %1, %3 : vector<8x512xf32>
    %c0_4 = arith.constant 0 : index
    %c0_5 = arith.constant 0 : index
    %c0_6 = arith.constant 0 : index
    %5 = vector.load %arg3[%c0_4, %c0_5, %c0_6] : memref<9x8x8xbf16, #tpu.memory_space<vmem>>, vector<1x8x8xbf16>
    %6 = vector.shape_cast %5 : vector<1x8x8xbf16> to vector<8x8xbf16>
    %7 = arith.truncf %4 : vector<8x512xf32> to vector<8x512xbf16>
    %cst = arith.constant dense<0.000000e+00> : vector<8x512xf32>
    %8 = tpu.matmul %6, %7, %cst {dimension_numbers = #tpu.dot_dimension_numbers<[1], [0], [0], [1], [0, 0, 1, 1], [], []>} : vector<8x8xbf16>, vector<8x512xbf16>, vector<8x512xf32> -> vector<8x512xf32>
    %c16_i32 = arith.constant 16 : i32
    %9 = tpu.dynamic_rotate %0 by %c16_i32 dim 1 : vector<8x512xf32>, i32 -> vector<8x512xf32>
    %c1 = arith.constant 1 : index
    %c0_7 = arith.constant 0 : index
    %c0_8 = arith.constant 0 : index
    %10 = vector.load %arg2[%c1, %c0_7, %c0_8] : memref<9x8x512xf32, #tpu.memory_space<vmem>>, vector<1x8x512xf32>
    %11 = vector.shape_cast %10 : vector<1x8x512xf32> to vector<8x512xf32>
    %12 = arith.mulf %9, %11 : vector<8x512xf32>
    %c1_9 = arith.constant 1 : index
    %c0_10 = arith.constant 0 : index
    %c0_11 = arith.constant 0 : index
    %13 = vector.load %arg3[%c1_9, %c0_10, %c0_11] : memref<9x8x8xbf16, #tpu.memory_space<vmem>>, vector<1x8x8xbf16>
    %14 = vector.shape_cast %13 : vector<1x8x8xbf16> to vector<8x8xbf16>
    %15 = arith.truncf %12 : vector<8x512xf32> to vector<8x512xbf16>
    %cst_12 = arith.constant dense<0.000000e+00> : vector<8x512xf32>
    %16 = tpu.matmul %14, %15, %cst_12 {dimension_numbers = #tpu.dot_dimension_numbers<[1], [0], [0], [1], [0, 0, 1, 1], [], []>} : vector<8x8xbf16>, vector<8x512xbf16>, vector<8x512xf32> -> vector<8x512xf32>
    %17 = arith.addf %8, %16 : vector<8x512xf32>
    %c15_i32 = arith.constant 15 : i32
    %18 = tpu.dynamic_rotate %0 by %c15_i32 dim 1 : vector<8x512xf32>, i32 -> vector<8x512xf32>
    %c2 = arith.constant 2 : index
    %c0_13 = arith.constant 0 : index
    %c0_14 = arith.constant 0 : index
    %19 = vector.load %arg2[%c2, %c0_13, %c0_14] : memref<9x8x512xf32, #tpu.memory_space<vmem>>, vector<1x8x512xf32>
    %20 = vector.shape_cast %19 : vector<1x8x512xf32> to vector<8x512xf32>
    %21 = arith.mulf %18, %20 : vector<8x512xf32>
    %c2_15 = arith.constant 2 : index
    %c0_16 = arith.constant 0 : index
    %c0_17 = arith.constant 0 : index
    %22 = vector.load %arg3[%c2_15, %c0_16, %c0_17] : memref<9x8x8xbf16, #tpu.memory_space<vmem>>, vector<1x8x8xbf16>
    %23 = vector.shape_cast %22 : vector<1x8x8xbf16> to vector<8x8xbf16>
    %24 = arith.truncf %21 : vector<8x512xf32> to vector<8x512xbf16>
    %cst_18 = arith.constant dense<0.000000e+00> : vector<8x512xf32>
    %25 = tpu.matmul %23, %24, %cst_18 {dimension_numbers = #tpu.dot_dimension_numbers<[1], [0], [0], [1], [0, 0, 1, 1], [], []>} : vector<8x8xbf16>, vector<8x512xbf16>, vector<8x512xf32> -> vector<8x512xf32>
    %26 = arith.addf %17, %25 : vector<8x512xf32>
    %c1_i32 = arith.constant 1 : i32
    %27 = tpu.dynamic_rotate %0 by %c1_i32 dim 1 : vector<8x512xf32>, i32 -> vector<8x512xf32>
    %c3 = arith.constant 3 : index
    %c0_19 = arith.constant 0 : index
    %c0_20 = arith.constant 0 : index
    %28 = vector.load %arg2[%c3, %c0_19, %c0_20] : memref<9x8x512xf32, #tpu.memory_space<vmem>>, vector<1x8x512xf32>
    %29 = vector.shape_cast %28 : vector<1x8x512xf32> to vector<8x512xf32>
    %30 = arith.mulf %27, %29 : vector<8x512xf32>
    %c3_21 = arith.constant 3 : index
    %c0_22 = arith.constant 0 : index
    %c0_23 = arith.constant 0 : index
    %31 = vector.load %arg3[%c3_21, %c0_22, %c0_23] : memref<9x8x8xbf16, #tpu.memory_space<vmem>>, vector<1x8x8xbf16>
    %32 = vector.shape_cast %31 : vector<1x8x8xbf16> to vector<8x8xbf16>
    %33 = arith.truncf %30 : vector<8x512xf32> to vector<8x512xbf16>
    %cst_24 = arith.constant dense<0.000000e+00> : vector<8x512xf32>
    %34 = tpu.matmul %32, %33, %cst_24 {dimension_numbers = #tpu.dot_dimension_numbers<[1], [0], [0], [1], [0, 0, 1, 1], [], []>} : vector<8x8xbf16>, vector<8x512xbf16>, vector<8x512xf32> -> vector<8x512xf32>
    %35 = arith.addf %26, %34 : vector<8x512xf32>
    %c4 = arith.constant 4 : index
    %c0_25 = arith.constant 0 : index
    %c0_26 = arith.constant 0 : index
    %36 = vector.load %arg3[%c4, %c0_25, %c0_26] : memref<9x8x8xbf16, #tpu.memory_space<vmem>>, vector<1x8x8xbf16>
    %37 = vector.shape_cast %36 : vector<1x8x8xbf16> to vector<8x8xbf16>
    %38 = arith.truncf %0 : vector<8x512xf32> to vector<8x512xbf16>
    %cst_27 = arith.constant dense<0.000000e+00> : vector<8x512xf32>
    %39 = tpu.matmul %37, %38, %cst_27 {dimension_numbers = #tpu.dot_dimension_numbers<[1], [0], [0], [1], [0, 0, 1, 1], [], []>} : vector<8x8xbf16>, vector<8x512xbf16>, vector<8x512xf32> -> vector<8x512xf32>
    %40 = arith.addf %35, %39 : vector<8x512xf32>
    %c511_i32 = arith.constant 511 : i32
    %41 = tpu.dynamic_rotate %0 by %c511_i32 dim 1 : vector<8x512xf32>, i32 -> vector<8x512xf32>
    %c5 = arith.constant 5 : index
    %c0_28 = arith.constant 0 : index
    %c0_29 = arith.constant 0 : index
    %42 = vector.load %arg2[%c5, %c0_28, %c0_29] : memref<9x8x512xf32, #tpu.memory_space<vmem>>, vector<1x8x512xf32>
    %43 = vector.shape_cast %42 : vector<1x8x512xf32> to vector<8x512xf32>
    %44 = arith.mulf %41, %43 : vector<8x512xf32>
    %c5_30 = arith.constant 5 : index
    %c0_31 = arith.constant 0 : index
    %c0_32 = arith.constant 0 : index
    %45 = vector.load %arg3[%c5_30, %c0_31, %c0_32] : memref<9x8x8xbf16, #tpu.memory_space<vmem>>, vector<1x8x8xbf16>
    %46 = vector.shape_cast %45 : vector<1x8x8xbf16> to vector<8x8xbf16>
    %47 = arith.truncf %44 : vector<8x512xf32> to vector<8x512xbf16>
    %cst_33 = arith.constant dense<0.000000e+00> : vector<8x512xf32>
    %48 = tpu.matmul %46, %47, %cst_33 {dimension_numbers = #tpu.dot_dimension_numbers<[1], [0], [0], [1], [0, 0, 1, 1], [], []>} : vector<8x8xbf16>, vector<8x512xbf16>, vector<8x512xf32> -> vector<8x512xf32>
    %49 = arith.addf %40, %48 : vector<8x512xf32>
    %c497_i32 = arith.constant 497 : i32
    %50 = tpu.dynamic_rotate %0 by %c497_i32 dim 1 : vector<8x512xf32>, i32 -> vector<8x512xf32>
    %c6 = arith.constant 6 : index
    %c0_34 = arith.constant 0 : index
    %c0_35 = arith.constant 0 : index
    %51 = vector.load %arg2[%c6, %c0_34, %c0_35] : memref<9x8x512xf32, #tpu.memory_space<vmem>>, vector<1x8x512xf32>
    %52 = vector.shape_cast %51 : vector<1x8x512xf32> to vector<8x512xf32>
    %53 = arith.mulf %50, %52 : vector<8x512xf32>
    %c6_36 = arith.constant 6 : index
    %c0_37 = arith.constant 0 : index
    %c0_38 = arith.constant 0 : index
    %54 = vector.load %arg3[%c6_36, %c0_37, %c0_38] : memref<9x8x8xbf16, #tpu.memory_space<vmem>>, vector<1x8x8xbf16>
    %55 = vector.shape_cast %54 : vector<1x8x8xbf16> to vector<8x8xbf16>
    %56 = arith.truncf %53 : vector<8x512xf32> to vector<8x512xbf16>
    %cst_39 = arith.constant dense<0.000000e+00> : vector<8x512xf32>
    %57 = tpu.matmul %55, %56, %cst_39 {dimension_numbers = #tpu.dot_dimension_numbers<[1], [0], [0], [1], [0, 0, 1, 1], [], []>} : vector<8x8xbf16>, vector<8x512xbf16>, vector<8x512xf32> -> vector<8x512xf32>
    %58 = arith.addf %49, %57 : vector<8x512xf32>
    %c496_i32 = arith.constant 496 : i32
    %59 = tpu.dynamic_rotate %0 by %c496_i32 dim 1 : vector<8x512xf32>, i32 -> vector<8x512xf32>
    %c7 = arith.constant 7 : index
    %c0_40 = arith.constant 0 : index
    %c0_41 = arith.constant 0 : index
    %60 = vector.load %arg2[%c7, %c0_40, %c0_41] : memref<9x8x512xf32, #tpu.memory_space<vmem>>, vector<1x8x512xf32>
    %61 = vector.shape_cast %60 : vector<1x8x512xf32> to vector<8x512xf32>
    %62 = arith.mulf %59, %61 : vector<8x512xf32>
    %c7_42 = arith.constant 7 : index
    %c0_43 = arith.constant 0 : index
    %c0_44 = arith.constant 0 : index
    %63 = vector.load %arg3[%c7_42, %c0_43, %c0_44] : memref<9x8x8xbf16, #tpu.memory_space<vmem>>, vector<1x8x8xbf16>
    %64 = vector.shape_cast %63 : vector<1x8x8xbf16> to vector<8x8xbf16>
    %65 = arith.truncf %62 : vector<8x512xf32> to vector<8x512xbf16>
    %cst_45 = arith.constant dense<0.000000e+00> : vector<8x512xf32>
    %66 = tpu.matmul %64, %65, %cst_45 {dimension_numbers = #tpu.dot_dimension_numbers<[1], [0], [0], [1], [0, 0, 1, 1], [], []>} : vector<8x8xbf16>, vector<8x512xbf16>, vector<8x512xf32> -> vector<8x512xf32>
    %67 = arith.addf %58, %66 : vector<8x512xf32>
    %c495_i32 = arith.constant 495 : i32
    %68 = tpu.dynamic_rotate %0 by %c495_i32 dim 1 : vector<8x512xf32>, i32 -> vector<8x512xf32>
    %c8 = arith.constant 8 : index
    %c0_46 = arith.constant 0 : index
    %c0_47 = arith.constant 0 : index
    %69 = vector.load %arg2[%c8, %c0_46, %c0_47] : memref<9x8x512xf32, #tpu.memory_space<vmem>>, vector<1x8x512xf32>
    %70 = vector.shape_cast %69 : vector<1x8x512xf32> to vector<8x512xf32>
    %71 = arith.mulf %68, %70 : vector<8x512xf32>
    %c8_48 = arith.constant 8 : index
    %c0_49 = arith.constant 0 : index
    %c0_50 = arith.constant 0 : index
    %72 = vector.load %arg3[%c8_48, %c0_49, %c0_50] : memref<9x8x8xbf16, #tpu.memory_space<vmem>>, vector<1x8x8xbf16>
    %73 = vector.shape_cast %72 : vector<1x8x8xbf16> to vector<8x8xbf16>
    %74 = arith.truncf %71 : vector<8x512xf32> to vector<8x512xbf16>
    %cst_51 = arith.constant dense<0.000000e+00> : vector<8x512xf32>
    %75 = tpu.matmul %73, %74, %cst_51 {dimension_numbers = #tpu.dot_dimension_numbers<[1], [0], [0], [1], [0, 0, 1, 1], [], []>} : vector<8x8xbf16>, vector<8x512xbf16>, vector<8x512xf32> -> vector<8x512xf32>
    %76 = arith.addf %67, %75 : vector<8x512xf32>
    %c0_52 = arith.constant 0 : index
    %c0_53 = arith.constant 0 : index
    %77 = vector.load %arg4[%c0_52, %c0_53] : memref<8x1xf32, #tpu.memory_space<vmem>>, vector<8x1xf32>
    %78 = vector.broadcast %77 : vector<8x1xf32> to vector<8x512xf32>
    %79 = arith.addf %76, %78 : vector<8x512xf32>
    %cst_54 = arith.constant 0.000000e+00 : f32
    %80 = vector.broadcast %cst_54 : f32 to vector<8x512xf32>
    %81 = arith.maximumf %79, %80 : vector<8x512xf32>
    %c17_i32_55 = arith.constant 17 : i32
    %82 = tpu.dynamic_rotate %81 by %c17_i32_55 dim 1 : vector<8x512xf32>, i32 -> vector<8x512xf32>
    %c0_56 = arith.constant 0 : index
    %c0_57 = arith.constant 0 : index
    %c0_58 = arith.constant 0 : index
    %83 = vector.load %arg2[%c0_56, %c0_57, %c0_58] : memref<9x8x512xf32, #tpu.memory_space<vmem>>, vector<1x8x512xf32>
    %84 = vector.shape_cast %83 : vector<1x8x512xf32> to vector<8x512xf32>
    %85 = arith.mulf %82, %84 : vector<8x512xf32>
    %c0_59 = arith.constant 0 : index
    %c0_60 = arith.constant 0 : index
    %c0_61 = arith.constant 0 : index
    %86 = vector.load %arg5[%c0_59, %c0_60, %c0_61] : memref<9x16x8xbf16, #tpu.memory_space<vmem>>, vector<1x16x8xbf16>
    %87 = vector.shape_cast %86 : vector<1x16x8xbf16> to vector<16x8xbf16>
    %88 = arith.truncf %85 : vector<8x512xf32> to vector<8x512xbf16>
    %cst_62 = arith.constant dense<0.000000e+00> : vector<16x512xf32>
    %89 = tpu.matmul %87, %88, %cst_62 {dimension_numbers = #tpu.dot_dimension_numbers<[1], [0], [0], [1], [0, 0, 1, 1], [], []>} : vector<16x8xbf16>, vector<8x512xbf16>, vector<16x512xf32> -> vector<16x512xf32>
    %c16_i32_63 = arith.constant 16 : i32
    %90 = tpu.dynamic_rotate %81 by %c16_i32_63 dim 1 : vector<8x512xf32>, i32 -> vector<8x512xf32>
    %c1_64 = arith.constant 1 : index
    %c0_65 = arith.constant 0 : index
    %c0_66 = arith.constant 0 : index
    %91 = vector.load %arg2[%c1_64, %c0_65, %c0_66] : memref<9x8x512xf32, #tpu.memory_space<vmem>>, vector<1x8x512xf32>
    %92 = vector.shape_cast %91 : vector<1x8x512xf32> to vector<8x512xf32>
    %93 = arith.mulf %90, %92 : vector<8x512xf32>
    %c1_67 = arith.constant 1 : index
    %c0_68 = arith.constant 0 : index
    %c0_69 = arith.constant 0 : index
    %94 = vector.load %arg5[%c1_67, %c0_68, %c0_69] : memref<9x16x8xbf16, #tpu.memory_space<vmem>>, vector<1x16x8xbf16>
    %95 = vector.shape_cast %94 : vector<1x16x8xbf16> to vector<16x8xbf16>
    %96 = arith.truncf %93 : vector<8x512xf32> to vector<8x512xbf16>
    %cst_70 = arith.constant dense<0.000000e+00> : vector<16x512xf32>
    %97 = tpu.matmul %95, %96, %cst_70 {dimension_numbers = #tpu.dot_dimension_numbers<[1], [0], [0], [1], [0, 0, 1, 1], [], []>} : vector<16x8xbf16>, vector<8x512xbf16>, vector<16x512xf32> -> vector<16x512xf32>
    %98 = arith.addf %89, %97 : vector<16x512xf32>
    %c15_i32_71 = arith.constant 15 : i32
    %99 = tpu.dynamic_rotate %81 by %c15_i32_71 dim 1 : vector<8x512xf32>, i32 -> vector<8x512xf32>
    %c2_72 = arith.constant 2 : index
    %c0_73 = arith.constant 0 : index
    %c0_74 = arith.constant 0 : index
    %100 = vector.load %arg2[%c2_72, %c0_73, %c0_74] : memref<9x8x512xf32, #tpu.memory_space<vmem>>, vector<1x8x512xf32>
    %101 = vector.shape_cast %100 : vector<1x8x512xf32> to vector<8x512xf32>
    %102 = arith.mulf %99, %101 : vector<8x512xf32>
    %c2_75 = arith.constant 2 : index
    %c0_76 = arith.constant 0 : index
    %c0_77 = arith.constant 0 : index
    %103 = vector.load %arg5[%c2_75, %c0_76, %c0_77] : memref<9x16x8xbf16, #tpu.memory_space<vmem>>, vector<1x16x8xbf16>
    %104 = vector.shape_cast %103 : vector<1x16x8xbf16> to vector<16x8xbf16>
    %105 = arith.truncf %102 : vector<8x512xf32> to vector<8x512xbf16>
    %cst_78 = arith.constant dense<0.000000e+00> : vector<16x512xf32>
    %106 = tpu.matmul %104, %105, %cst_78 {dimension_numbers = #tpu.dot_dimension_numbers<[1], [0], [0], [1], [0, 0, 1, 1], [], []>} : vector<16x8xbf16>, vector<8x512xbf16>, vector<16x512xf32> -> vector<16x512xf32>
    %107 = arith.addf %98, %106 : vector<16x512xf32>
    %c1_i32_79 = arith.constant 1 : i32
    %108 = tpu.dynamic_rotate %81 by %c1_i32_79 dim 1 : vector<8x512xf32>, i32 -> vector<8x512xf32>
    %c3_80 = arith.constant 3 : index
    %c0_81 = arith.constant 0 : index
    %c0_82 = arith.constant 0 : index
    %109 = vector.load %arg2[%c3_80, %c0_81, %c0_82] : memref<9x8x512xf32, #tpu.memory_space<vmem>>, vector<1x8x512xf32>
    %110 = vector.shape_cast %109 : vector<1x8x512xf32> to vector<8x512xf32>
    %111 = arith.mulf %108, %110 : vector<8x512xf32>
    %c3_83 = arith.constant 3 : index
    %c0_84 = arith.constant 0 : index
    %c0_85 = arith.constant 0 : index
    %112 = vector.load %arg5[%c3_83, %c0_84, %c0_85] : memref<9x16x8xbf16, #tpu.memory_space<vmem>>, vector<1x16x8xbf16>
    %113 = vector.shape_cast %112 : vector<1x16x8xbf16> to vector<16x8xbf16>
    %114 = arith.truncf %111 : vector<8x512xf32> to vector<8x512xbf16>
    %cst_86 = arith.constant dense<0.000000e+00> : vector<16x512xf32>
    %115 = tpu.matmul %113, %114, %cst_86 {dimension_numbers = #tpu.dot_dimension_numbers<[1], [0], [0], [1], [0, 0, 1, 1], [], []>} : vector<16x8xbf16>, vector<8x512xbf16>, vector<16x512xf32> -> vector<16x512xf32>
    %116 = arith.addf %107, %115 : vector<16x512xf32>
    %c4_87 = arith.constant 4 : index
    %c0_88 = arith.constant 0 : index
    %c0_89 = arith.constant 0 : index
    %117 = vector.load %arg5[%c4_87, %c0_88, %c0_89] : memref<9x16x8xbf16, #tpu.memory_space<vmem>>, vector<1x16x8xbf16>
    %118 = vector.shape_cast %117 : vector<1x16x8xbf16> to vector<16x8xbf16>
    %119 = arith.truncf %81 : vector<8x512xf32> to vector<8x512xbf16>
    %cst_90 = arith.constant dense<0.000000e+00> : vector<16x512xf32>
    %120 = tpu.matmul %118, %119, %cst_90 {dimension_numbers = #tpu.dot_dimension_numbers<[1], [0], [0], [1], [0, 0, 1, 1], [], []>} : vector<16x8xbf16>, vector<8x512xbf16>, vector<16x512xf32> -> vector<16x512xf32>
    %121 = arith.addf %116, %120 : vector<16x512xf32>
    %c511_i32_91 = arith.constant 511 : i32
    %122 = tpu.dynamic_rotate %81 by %c511_i32_91 dim 1 : vector<8x512xf32>, i32 -> vector<8x512xf32>
    %c5_92 = arith.constant 5 : index
    %c0_93 = arith.constant 0 : index
    %c0_94 = arith.constant 0 : index
    %123 = vector.load %arg2[%c5_92, %c0_93, %c0_94] : memref<9x8x512xf32, #tpu.memory_space<vmem>>, vector<1x8x512xf32>
    %124 = vector.shape_cast %123 : vector<1x8x512xf32> to vector<8x512xf32>
    %125 = arith.mulf %122, %124 : vector<8x512xf32>
    %c5_95 = arith.constant 5 : index
    %c0_96 = arith.constant 0 : index
    %c0_97 = arith.constant 0 : index
    %126 = vector.load %arg5[%c5_95, %c0_96, %c0_97] : memref<9x16x8xbf16, #tpu.memory_space<vmem>>, vector<1x16x8xbf16>
    %127 = vector.shape_cast %126 : vector<1x16x8xbf16> to vector<16x8xbf16>
    %128 = arith.truncf %125 : vector<8x512xf32> to vector<8x512xbf16>
    %cst_98 = arith.constant dense<0.000000e+00> : vector<16x512xf32>
    %129 = tpu.matmul %127, %128, %cst_98 {dimension_numbers = #tpu.dot_dimension_numbers<[1], [0], [0], [1], [0, 0, 1, 1], [], []>} : vector<16x8xbf16>, vector<8x512xbf16>, vector<16x512xf32> -> vector<16x512xf32>
    %130 = arith.addf %121, %129 : vector<16x512xf32>
    %c497_i32_99 = arith.constant 497 : i32
    %131 = tpu.dynamic_rotate %81 by %c497_i32_99 dim 1 : vector<8x512xf32>, i32 -> vector<8x512xf32>
    %c6_100 = arith.constant 6 : index
    %c0_101 = arith.constant 0 : index
    %c0_102 = arith.constant 0 : index
    %132 = vector.load %arg2[%c6_100, %c0_101, %c0_102] : memref<9x8x512xf32, #tpu.memory_space<vmem>>, vector<1x8x512xf32>
    %133 = vector.shape_cast %132 : vector<1x8x512xf32> to vector<8x512xf32>
    %134 = arith.mulf %131, %133 : vector<8x512xf32>
    %c6_103 = arith.constant 6 : index
    %c0_104 = arith.constant 0 : index
    %c0_105 = arith.constant 0 : index
    %135 = vector.load %arg5[%c6_103, %c0_104, %c0_105] : memref<9x16x8xbf16, #tpu.memory_space<vmem>>, vector<1x16x8xbf16>
    %136 = vector.shape_cast %135 : vector<1x16x8xbf16> to vector<16x8xbf16>
    %137 = arith.truncf %134 : vector<8x512xf32> to vector<8x512xbf16>
    %cst_106 = arith.constant dense<0.000000e+00> : vector<16x512xf32>
    %138 = tpu.matmul %136, %137, %cst_106 {dimension_numbers = #tpu.dot_dimension_numbers<[1], [0], [0], [1], [0, 0, 1, 1], [], []>} : vector<16x8xbf16>, vector<8x512xbf16>, vector<16x512xf32> -> vector<16x512xf32>
    %139 = arith.addf %130, %138 : vector<16x512xf32>
    %c496_i32_107 = arith.constant 496 : i32
    %140 = tpu.dynamic_rotate %81 by %c496_i32_107 dim 1 : vector<8x512xf32>, i32 -> vector<8x512xf32>
    %c7_108 = arith.constant 7 : index
    %c0_109 = arith.constant 0 : index
    %c0_110 = arith.constant 0 : index
    %141 = vector.load %arg2[%c7_108, %c0_109, %c0_110] : memref<9x8x512xf32, #tpu.memory_space<vmem>>, vector<1x8x512xf32>
    %142 = vector.shape_cast %141 : vector<1x8x512xf32> to vector<8x512xf32>
    %143 = arith.mulf %140, %142 : vector<8x512xf32>
    %c7_111 = arith.constant 7 : index
    %c0_112 = arith.constant 0 : index
    %c0_113 = arith.constant 0 : index
    %144 = vector.load %arg5[%c7_111, %c0_112, %c0_113] : memref<9x16x8xbf16, #tpu.memory_space<vmem>>, vector<1x16x8xbf16>
    %145 = vector.shape_cast %144 : vector<1x16x8xbf16> to vector<16x8xbf16>
    %146 = arith.truncf %143 : vector<8x512xf32> to vector<8x512xbf16>
    %cst_114 = arith.constant dense<0.000000e+00> : vector<16x512xf32>
    %147 = tpu.matmul %145, %146, %cst_114 {dimension_numbers = #tpu.dot_dimension_numbers<[1], [0], [0], [1], [0, 0, 1, 1], [], []>} : vector<16x8xbf16>, vector<8x512xbf16>, vector<16x512xf32> -> vector<16x512xf32>
    %148 = arith.addf %139, %147 : vector<16x512xf32>
    %c495_i32_115 = arith.constant 495 : i32
    %149 = tpu.dynamic_rotate %81 by %c495_i32_115 dim 1 : vector<8x512xf32>, i32 -> vector<8x512xf32>
    %c8_116 = arith.constant 8 : index
    %c0_117 = arith.constant 0 : index
    %c0_118 = arith.constant 0 : index
    %150 = vector.load %arg2[%c8_116, %c0_117, %c0_118] : memref<9x8x512xf32, #tpu.memory_space<vmem>>, vector<1x8x512xf32>
    %151 = vector.shape_cast %150 : vector<1x8x512xf32> to vector<8x512xf32>
    %152 = arith.mulf %149, %151 : vector<8x512xf32>
    %c8_119 = arith.constant 8 : index
    %c0_120 = arith.constant 0 : index
    %c0_121 = arith.constant 0 : index
    %153 = vector.load %arg5[%c8_119, %c0_120, %c0_121] : memref<9x16x8xbf16, #tpu.memory_space<vmem>>, vector<1x16x8xbf16>
    %154 = vector.shape_cast %153 : vector<1x16x8xbf16> to vector<16x8xbf16>
    %155 = arith.truncf %152 : vector<8x512xf32> to vector<8x512xbf16>
    %cst_122 = arith.constant dense<0.000000e+00> : vector<16x512xf32>
    %156 = tpu.matmul %154, %155, %cst_122 {dimension_numbers = #tpu.dot_dimension_numbers<[1], [0], [0], [1], [0, 0, 1, 1], [], []>} : vector<16x8xbf16>, vector<8x512xbf16>, vector<16x512xf32> -> vector<16x512xf32>
    %157 = arith.addf %148, %156 : vector<16x512xf32>
    %c0_123 = arith.constant 0 : index
    %c0_124 = arith.constant 0 : index
    %158 = vector.load %arg6[%c0_123, %c0_124] : memref<16x1xf32, #tpu.memory_space<vmem>>, vector<16x1xf32>
    %159 = vector.broadcast %158 : vector<16x1xf32> to vector<16x512xf32>
    %160 = arith.addf %157, %159 : vector<16x512xf32>
    %cst_125 = arith.constant 0.000000e+00 : f32
    %161 = vector.broadcast %cst_125 : f32 to vector<16x512xf32>
    %162 = arith.maximumf %160, %161 : vector<16x512xf32>
    %c17_i32_126 = arith.constant 17 : i32
    %163 = tpu.dynamic_rotate %162 by %c17_i32_126 dim 1 : vector<16x512xf32>, i32 -> vector<16x512xf32>
    %c0_127 = arith.constant 0 : index
    %c0_128 = arith.constant 0 : index
    %c0_129 = arith.constant 0 : index
    %164 = vector.load %arg7[%c0_127, %c0_128, %c0_129] : memref<9x8x16xbf16, #tpu.memory_space<vmem>>, vector<1x8x16xbf16>
    %165 = vector.shape_cast %164 : vector<1x8x16xbf16> to vector<8x16xbf16>
    %166 = arith.truncf %163 : vector<16x512xf32> to vector<16x512xbf16>
    %cst_130 = arith.constant dense<0.000000e+00> : vector<8x512xf32>
    %167 = tpu.matmul %165, %166, %cst_130 {dimension_numbers = #tpu.dot_dimension_numbers<[1], [0], [0], [1], [0, 0, 1, 1], [], []>} : vector<8x16xbf16>, vector<16x512xbf16>, vector<8x512xf32> -> vector<8x512xf32>
    %c0_131 = arith.constant 0 : index
    %c0_132 = arith.constant 0 : index
    %c0_133 = arith.constant 0 : index
    %168 = vector.load %arg2[%c0_131, %c0_132, %c0_133] : memref<9x8x512xf32, #tpu.memory_space<vmem>>, vector<1x8x512xf32>
    %169 = vector.shape_cast %168 : vector<1x8x512xf32> to vector<8x512xf32>
    %170 = arith.mulf %167, %169 : vector<8x512xf32>
    %c16_i32_134 = arith.constant 16 : i32
    %171 = tpu.dynamic_rotate %162 by %c16_i32_134 dim 1 : vector<16x512xf32>, i32 -> vector<16x512xf32>
    %c1_135 = arith.constant 1 : index
    %c0_136 = arith.constant 0 : index
    %c0_137 = arith.constant 0 : index
    %172 = vector.load %arg7[%c1_135, %c0_136, %c0_137] : memref<9x8x16xbf16, #tpu.memory_space<vmem>>, vector<1x8x16xbf16>
    %173 = vector.shape_cast %172 : vector<1x8x16xbf16> to vector<8x16xbf16>
    %174 = arith.truncf %171 : vector<16x512xf32> to vector<16x512xbf16>
    %cst_138 = arith.constant dense<0.000000e+00> : vector<8x512xf32>
    %175 = tpu.matmul %173, %174, %cst_138 {dimension_numbers = #tpu.dot_dimension_numbers<[1], [0], [0], [1], [0, 0, 1, 1], [], []>} : vector<8x16xbf16>, vector<16x512xbf16>, vector<8x512xf32> -> vector<8x512xf32>
    %c1_139 = arith.constant 1 : index
    %c0_140 = arith.constant 0 : index
    %c0_141 = arith.constant 0 : index
    %176 = vector.load %arg2[%c1_139, %c0_140, %c0_141] : memref<9x8x512xf32, #tpu.memory_space<vmem>>, vector<1x8x512xf32>
    %177 = vector.shape_cast %176 : vector<1x8x512xf32> to vector<8x512xf32>
    %178 = arith.mulf %175, %177 : vector<8x512xf32>
    %179 = arith.addf %170, %178 : vector<8x512xf32>
    %c15_i32_142 = arith.constant 15 : i32
    %180 = tpu.dynamic_rotate %162 by %c15_i32_142 dim 1 : vector<16x512xf32>, i32 -> vector<16x512xf32>
    %c2_143 = arith.constant 2 : index
    %c0_144 = arith.constant 0 : index
    %c0_145 = arith.constant 0 : index
    %181 = vector.load %arg7[%c2_143, %c0_144, %c0_145] : memref<9x8x16xbf16, #tpu.memory_space<vmem>>, vector<1x8x16xbf16>
    %182 = vector.shape_cast %181 : vector<1x8x16xbf16> to vector<8x16xbf16>
    %183 = arith.truncf %180 : vector<16x512xf32> to vector<16x512xbf16>
    %cst_146 = arith.constant dense<0.000000e+00> : vector<8x512xf32>
    %184 = tpu.matmul %182, %183, %cst_146 {dimension_numbers = #tpu.dot_dimension_numbers<[1], [0], [0], [1], [0, 0, 1, 1], [], []>} : vector<8x16xbf16>, vector<16x512xbf16>, vector<8x512xf32> -> vector<8x512xf32>
    %c2_147 = arith.constant 2 : index
    %c0_148 = arith.constant 0 : index
    %c0_149 = arith.constant 0 : index
    %185 = vector.load %arg2[%c2_147, %c0_148, %c0_149] : memref<9x8x512xf32, #tpu.memory_space<vmem>>, vector<1x8x512xf32>
    %186 = vector.shape_cast %185 : vector<1x8x512xf32> to vector<8x512xf32>
    %187 = arith.mulf %184, %186 : vector<8x512xf32>
    %188 = arith.addf %179, %187 : vector<8x512xf32>
    %c1_i32_150 = arith.constant 1 : i32
    %189 = tpu.dynamic_rotate %162 by %c1_i32_150 dim 1 : vector<16x512xf32>, i32 -> vector<16x512xf32>
    %c3_151 = arith.constant 3 : index
    %c0_152 = arith.constant 0 : index
    %c0_153 = arith.constant 0 : index
    %190 = vector.load %arg7[%c3_151, %c0_152, %c0_153] : memref<9x8x16xbf16, #tpu.memory_space<vmem>>, vector<1x8x16xbf16>
    %191 = vector.shape_cast %190 : vector<1x8x16xbf16> to vector<8x16xbf16>
    %192 = arith.truncf %189 : vector<16x512xf32> to vector<16x512xbf16>
    %cst_154 = arith.constant dense<0.000000e+00> : vector<8x512xf32>
    %193 = tpu.matmul %191, %192, %cst_154 {dimension_numbers = #tpu.dot_dimension_numbers<[1], [0], [0], [1], [0, 0, 1, 1], [], []>} : vector<8x16xbf16>, vector<16x512xbf16>, vector<8x512xf32> -> vector<8x512xf32>
    %c3_155 = arith.constant 3 : index
    %c0_156 = arith.constant 0 : index
    %c0_157 = arith.constant 0 : index
    %194 = vector.load %arg2[%c3_155, %c0_156, %c0_157] : memref<9x8x512xf32, #tpu.memory_space<vmem>>, vector<1x8x512xf32>
    %195 = vector.shape_cast %194 : vector<1x8x512xf32> to vector<8x512xf32>
    %196 = arith.mulf %193, %195 : vector<8x512xf32>
    %197 = arith.addf %188, %196 : vector<8x512xf32>
    %c4_158 = arith.constant 4 : index
    %c0_159 = arith.constant 0 : index
    %c0_160 = arith.constant 0 : index
    %198 = vector.load %arg7[%c4_158, %c0_159, %c0_160] : memref<9x8x16xbf16, #tpu.memory_space<vmem>>, vector<1x8x16xbf16>
    %199 = vector.shape_cast %198 : vector<1x8x16xbf16> to vector<8x16xbf16>
    %200 = arith.truncf %162 : vector<16x512xf32> to vector<16x512xbf16>
    %cst_161 = arith.constant dense<0.000000e+00> : vector<8x512xf32>
    %201 = tpu.matmul %199, %200, %cst_161 {dimension_numbers = #tpu.dot_dimension_numbers<[1], [0], [0], [1], [0, 0, 1, 1], [], []>} : vector<8x16xbf16>, vector<16x512xbf16>, vector<8x512xf32> -> vector<8x512xf32>
    %202 = arith.addf %197, %201 : vector<8x512xf32>
    %c511_i32_162 = arith.constant 511 : i32
    %203 = tpu.dynamic_rotate %162 by %c511_i32_162 dim 1 : vector<16x512xf32>, i32 -> vector<16x512xf32>
    %c5_163 = arith.constant 5 : index
    %c0_164 = arith.constant 0 : index
    %c0_165 = arith.constant 0 : index
    %204 = vector.load %arg7[%c5_163, %c0_164, %c0_165] : memref<9x8x16xbf16, #tpu.memory_space<vmem>>, vector<1x8x16xbf16>
    %205 = vector.shape_cast %204 : vector<1x8x16xbf16> to vector<8x16xbf16>
    %206 = arith.truncf %203 : vector<16x512xf32> to vector<16x512xbf16>
    %cst_166 = arith.constant dense<0.000000e+00> : vector<8x512xf32>
    %207 = tpu.matmul %205, %206, %cst_166 {dimension_numbers = #tpu.dot_dimension_numbers<[1], [0], [0], [1], [0, 0, 1, 1], [], []>} : vector<8x16xbf16>, vector<16x512xbf16>, vector<8x512xf32> -> vector<8x512xf32>
    %c5_167 = arith.constant 5 : index
    %c0_168 = arith.constant 0 : index
    %c0_169 = arith.constant 0 : index
    %208 = vector.load %arg2[%c5_167, %c0_168, %c0_169] : memref<9x8x512xf32, #tpu.memory_space<vmem>>, vector<1x8x512xf32>
    %209 = vector.shape_cast %208 : vector<1x8x512xf32> to vector<8x512xf32>
    %210 = arith.mulf %207, %209 : vector<8x512xf32>
    %211 = arith.addf %202, %210 : vector<8x512xf32>
    %c497_i32_170 = arith.constant 497 : i32
    %212 = tpu.dynamic_rotate %162 by %c497_i32_170 dim 1 : vector<16x512xf32>, i32 -> vector<16x512xf32>
    %c6_171 = arith.constant 6 : index
    %c0_172 = arith.constant 0 : index
    %c0_173 = arith.constant 0 : index
    %213 = vector.load %arg7[%c6_171, %c0_172, %c0_173] : memref<9x8x16xbf16, #tpu.memory_space<vmem>>, vector<1x8x16xbf16>
    %214 = vector.shape_cast %213 : vector<1x8x16xbf16> to vector<8x16xbf16>
    %215 = arith.truncf %212 : vector<16x512xf32> to vector<16x512xbf16>
    %cst_174 = arith.constant dense<0.000000e+00> : vector<8x512xf32>
    %216 = tpu.matmul %214, %215, %cst_174 {dimension_numbers = #tpu.dot_dimension_numbers<[1], [0], [0], [1], [0, 0, 1, 1], [], []>} : vector<8x16xbf16>, vector<16x512xbf16>, vector<8x512xf32> -> vector<8x512xf32>
    %c6_175 = arith.constant 6 : index
    %c0_176 = arith.constant 0 : index
    %c0_177 = arith.constant 0 : index
    %217 = vector.load %arg2[%c6_175, %c0_176, %c0_177] : memref<9x8x512xf32, #tpu.memory_space<vmem>>, vector<1x8x512xf32>
    %218 = vector.shape_cast %217 : vector<1x8x512xf32> to vector<8x512xf32>
    %219 = arith.mulf %216, %218 : vector<8x512xf32>
    %220 = arith.addf %211, %219 : vector<8x512xf32>
    %c496_i32_178 = arith.constant 496 : i32
    %221 = tpu.dynamic_rotate %162 by %c496_i32_178 dim 1 : vector<16x512xf32>, i32 -> vector<16x512xf32>
    %c7_179 = arith.constant 7 : index
    %c0_180 = arith.constant 0 : index
    %c0_181 = arith.constant 0 : index
    %222 = vector.load %arg7[%c7_179, %c0_180, %c0_181] : memref<9x8x16xbf16, #tpu.memory_space<vmem>>, vector<1x8x16xbf16>
    %223 = vector.shape_cast %222 : vector<1x8x16xbf16> to vector<8x16xbf16>
    %224 = arith.truncf %221 : vector<16x512xf32> to vector<16x512xbf16>
    %cst_182 = arith.constant dense<0.000000e+00> : vector<8x512xf32>
    %225 = tpu.matmul %223, %224, %cst_182 {dimension_numbers = #tpu.dot_dimension_numbers<[1], [0], [0], [1], [0, 0, 1, 1], [], []>} : vector<8x16xbf16>, vector<16x512xbf16>, vector<8x512xf32> -> vector<8x512xf32>
    %c7_183 = arith.constant 7 : index
    %c0_184 = arith.constant 0 : index
    %c0_185 = arith.constant 0 : index
    %226 = vector.load %arg2[%c7_183, %c0_184, %c0_185] : memref<9x8x512xf32, #tpu.memory_space<vmem>>, vector<1x8x512xf32>
    %227 = vector.shape_cast %226 : vector<1x8x512xf32> to vector<8x512xf32>
    %228 = arith.mulf %225, %227 : vector<8x512xf32>
    %229 = arith.addf %220, %228 : vector<8x512xf32>
    %c495_i32_186 = arith.constant 495 : i32
    %230 = tpu.dynamic_rotate %162 by %c495_i32_186 dim 1 : vector<16x512xf32>, i32 -> vector<16x512xf32>
    %c8_187 = arith.constant 8 : index
    %c0_188 = arith.constant 0 : index
    %c0_189 = arith.constant 0 : index
    %231 = vector.load %arg7[%c8_187, %c0_188, %c0_189] : memref<9x8x16xbf16, #tpu.memory_space<vmem>>, vector<1x8x16xbf16>
    %232 = vector.shape_cast %231 : vector<1x8x16xbf16> to vector<8x16xbf16>
    %233 = arith.truncf %230 : vector<16x512xf32> to vector<16x512xbf16>
    %cst_190 = arith.constant dense<0.000000e+00> : vector<8x512xf32>
    %234 = tpu.matmul %232, %233, %cst_190 {dimension_numbers = #tpu.dot_dimension_numbers<[1], [0], [0], [1], [0, 0, 1, 1], [], []>} : vector<8x16xbf16>, vector<16x512xbf16>, vector<8x512xf32> -> vector<8x512xf32>
    %c8_191 = arith.constant 8 : index
    %c0_192 = arith.constant 0 : index
    %c0_193 = arith.constant 0 : index
    %235 = vector.load %arg2[%c8_191, %c0_192, %c0_193] : memref<9x8x512xf32, #tpu.memory_space<vmem>>, vector<1x8x512xf32>
    %236 = vector.shape_cast %235 : vector<1x8x512xf32> to vector<8x512xf32>
    %237 = arith.mulf %234, %236 : vector<8x512xf32>
    %238 = arith.addf %229, %237 : vector<8x512xf32>
    %c0_194 = arith.constant 0 : index
    %c0_195 = arith.constant 0 : index
    %239 = vector.load %arg8[%c0_194, %c0_195] : memref<8x1xf32, #tpu.memory_space<vmem>>, vector<8x1xf32>
    %240 = vector.broadcast %239 : vector<8x1xf32> to vector<8x512xf32>
    %241 = arith.addf %238, %240 : vector<8x512xf32>
    %cst_196 = arith.constant 0.000000e+00 : f32
    %242 = vector.broadcast %cst_196 : f32 to vector<8x512xf32>
    %243 = arith.maximumf %241, %242 : vector<8x512xf32>
    %c17_i32_197 = arith.constant 17 : i32
    %244 = tpu.dynamic_rotate %243 by %c17_i32_197 dim 1 : vector<8x512xf32>, i32 -> vector<8x512xf32>
    %c0_198 = arith.constant 0 : index
    %c0_199 = arith.constant 0 : index
    %c0_200 = arith.constant 0 : index
    %245 = vector.load %arg2[%c0_198, %c0_199, %c0_200] : memref<9x8x512xf32, #tpu.memory_space<vmem>>, vector<1x8x512xf32>
    %246 = vector.shape_cast %245 : vector<1x8x512xf32> to vector<8x512xf32>
    %247 = arith.mulf %244, %246 : vector<8x512xf32>
    %c0_201 = arith.constant 0 : index
    %c0_202 = arith.constant 0 : index
    %c0_203 = arith.constant 0 : index
    %248 = vector.load %arg9[%c0_201, %c0_202, %c0_203] : memref<9x8x8xbf16, #tpu.memory_space<vmem>>, vector<1x8x8xbf16>
    %249 = vector.shape_cast %248 : vector<1x8x8xbf16> to vector<8x8xbf16>
    %250 = arith.truncf %247 : vector<8x512xf32> to vector<8x512xbf16>
    %cst_204 = arith.constant dense<0.000000e+00> : vector<8x512xf32>
    %251 = tpu.matmul %249, %250, %cst_204 {dimension_numbers = #tpu.dot_dimension_numbers<[1], [0], [0], [1], [0, 0, 1, 1], [], []>} : vector<8x8xbf16>, vector<8x512xbf16>, vector<8x512xf32> -> vector<8x512xf32>
    %c16_i32_205 = arith.constant 16 : i32
    %252 = tpu.dynamic_rotate %243 by %c16_i32_205 dim 1 : vector<8x512xf32>, i32 -> vector<8x512xf32>
    %c1_206 = arith.constant 1 : index
    %c0_207 = arith.constant 0 : index
    %c0_208 = arith.constant 0 : index
    %253 = vector.load %arg2[%c1_206, %c0_207, %c0_208] : memref<9x8x512xf32, #tpu.memory_space<vmem>>, vector<1x8x512xf32>
    %254 = vector.shape_cast %253 : vector<1x8x512xf32> to vector<8x512xf32>
    %255 = arith.mulf %252, %254 : vector<8x512xf32>
    %c1_209 = arith.constant 1 : index
    %c0_210 = arith.constant 0 : index
    %c0_211 = arith.constant 0 : index
    %256 = vector.load %arg9[%c1_209, %c0_210, %c0_211] : memref<9x8x8xbf16, #tpu.memory_space<vmem>>, vector<1x8x8xbf16>
    %257 = vector.shape_cast %256 : vector<1x8x8xbf16> to vector<8x8xbf16>
    %258 = arith.truncf %255 : vector<8x512xf32> to vector<8x512xbf16>
    %cst_212 = arith.constant dense<0.000000e+00> : vector<8x512xf32>
    %259 = tpu.matmul %257, %258, %cst_212 {dimension_numbers = #tpu.dot_dimension_numbers<[1], [0], [0], [1], [0, 0, 1, 1], [], []>} : vector<8x8xbf16>, vector<8x512xbf16>, vector<8x512xf32> -> vector<8x512xf32>
    %260 = arith.addf %251, %259 : vector<8x512xf32>
    %c15_i32_213 = arith.constant 15 : i32
    %261 = tpu.dynamic_rotate %243 by %c15_i32_213 dim 1 : vector<8x512xf32>, i32 -> vector<8x512xf32>
    %c2_214 = arith.constant 2 : index
    %c0_215 = arith.constant 0 : index
    %c0_216 = arith.constant 0 : index
    %262 = vector.load %arg2[%c2_214, %c0_215, %c0_216] : memref<9x8x512xf32, #tpu.memory_space<vmem>>, vector<1x8x512xf32>
    %263 = vector.shape_cast %262 : vector<1x8x512xf32> to vector<8x512xf32>
    %264 = arith.mulf %261, %263 : vector<8x512xf32>
    %c2_217 = arith.constant 2 : index
    %c0_218 = arith.constant 0 : index
    %c0_219 = arith.constant 0 : index
    %265 = vector.load %arg9[%c2_217, %c0_218, %c0_219] : memref<9x8x8xbf16, #tpu.memory_space<vmem>>, vector<1x8x8xbf16>
    %266 = vector.shape_cast %265 : vector<1x8x8xbf16> to vector<8x8xbf16>
    %267 = arith.truncf %264 : vector<8x512xf32> to vector<8x512xbf16>
    %cst_220 = arith.constant dense<0.000000e+00> : vector<8x512xf32>
    %268 = tpu.matmul %266, %267, %cst_220 {dimension_numbers = #tpu.dot_dimension_numbers<[1], [0], [0], [1], [0, 0, 1, 1], [], []>} : vector<8x8xbf16>, vector<8x512xbf16>, vector<8x512xf32> -> vector<8x512xf32>
    %269 = arith.addf %260, %268 : vector<8x512xf32>
    %c1_i32_221 = arith.constant 1 : i32
    %270 = tpu.dynamic_rotate %243 by %c1_i32_221 dim 1 : vector<8x512xf32>, i32 -> vector<8x512xf32>
    %c3_222 = arith.constant 3 : index
    %c0_223 = arith.constant 0 : index
    %c0_224 = arith.constant 0 : index
    %271 = vector.load %arg2[%c3_222, %c0_223, %c0_224] : memref<9x8x512xf32, #tpu.memory_space<vmem>>, vector<1x8x512xf32>
    %272 = vector.shape_cast %271 : vector<1x8x512xf32> to vector<8x512xf32>
    %273 = arith.mulf %270, %272 : vector<8x512xf32>
    %c3_225 = arith.constant 3 : index
    %c0_226 = arith.constant 0 : index
    %c0_227 = arith.constant 0 : index
    %274 = vector.load %arg9[%c3_225, %c0_226, %c0_227] : memref<9x8x8xbf16, #tpu.memory_space<vmem>>, vector<1x8x8xbf16>
    %275 = vector.shape_cast %274 : vector<1x8x8xbf16> to vector<8x8xbf16>
    %276 = arith.truncf %273 : vector<8x512xf32> to vector<8x512xbf16>
    %cst_228 = arith.constant dense<0.000000e+00> : vector<8x512xf32>
    %277 = tpu.matmul %275, %276, %cst_228 {dimension_numbers = #tpu.dot_dimension_numbers<[1], [0], [0], [1], [0, 0, 1, 1], [], []>} : vector<8x8xbf16>, vector<8x512xbf16>, vector<8x512xf32> -> vector<8x512xf32>
    %278 = arith.addf %269, %277 : vector<8x512xf32>
    %c4_229 = arith.constant 4 : index
    %c0_230 = arith.constant 0 : index
    %c0_231 = arith.constant 0 : index
    %279 = vector.load %arg9[%c4_229, %c0_230, %c0_231] : memref<9x8x8xbf16, #tpu.memory_space<vmem>>, vector<1x8x8xbf16>
    %280 = vector.shape_cast %279 : vector<1x8x8xbf16> to vector<8x8xbf16>
    %281 = arith.truncf %243 : vector<8x512xf32> to vector<8x512xbf16>
    %cst_232 = arith.constant dense<0.000000e+00> : vector<8x512xf32>
    %282 = tpu.matmul %280, %281, %cst_232 {dimension_numbers = #tpu.dot_dimension_numbers<[1], [0], [0], [1], [0, 0, 1, 1], [], []>} : vector<8x8xbf16>, vector<8x512xbf16>, vector<8x512xf32> -> vector<8x512xf32>
    %283 = arith.addf %278, %282 : vector<8x512xf32>
    %c511_i32_233 = arith.constant 511 : i32
    %284 = tpu.dynamic_rotate %243 by %c511_i32_233 dim 1 : vector<8x512xf32>, i32 -> vector<8x512xf32>
    %c5_234 = arith.constant 5 : index
    %c0_235 = arith.constant 0 : index
    %c0_236 = arith.constant 0 : index
    %285 = vector.load %arg2[%c5_234, %c0_235, %c0_236] : memref<9x8x512xf32, #tpu.memory_space<vmem>>, vector<1x8x512xf32>
    %286 = vector.shape_cast %285 : vector<1x8x512xf32> to vector<8x512xf32>
    %287 = arith.mulf %284, %286 : vector<8x512xf32>
    %c5_237 = arith.constant 5 : index
    %c0_238 = arith.constant 0 : index
    %c0_239 = arith.constant 0 : index
    %288 = vector.load %arg9[%c5_237, %c0_238, %c0_239] : memref<9x8x8xbf16, #tpu.memory_space<vmem>>, vector<1x8x8xbf16>
    %289 = vector.shape_cast %288 : vector<1x8x8xbf16> to vector<8x8xbf16>
    %290 = arith.truncf %287 : vector<8x512xf32> to vector<8x512xbf16>
    %cst_240 = arith.constant dense<0.000000e+00> : vector<8x512xf32>
    %291 = tpu.matmul %289, %290, %cst_240 {dimension_numbers = #tpu.dot_dimension_numbers<[1], [0], [0], [1], [0, 0, 1, 1], [], []>} : vector<8x8xbf16>, vector<8x512xbf16>, vector<8x512xf32> -> vector<8x512xf32>
    %292 = arith.addf %283, %291 : vector<8x512xf32>
    %c497_i32_241 = arith.constant 497 : i32
    %293 = tpu.dynamic_rotate %243 by %c497_i32_241 dim 1 : vector<8x512xf32>, i32 -> vector<8x512xf32>
    %c6_242 = arith.constant 6 : index
    %c0_243 = arith.constant 0 : index
    %c0_244 = arith.constant 0 : index
    %294 = vector.load %arg2[%c6_242, %c0_243, %c0_244] : memref<9x8x512xf32, #tpu.memory_space<vmem>>, vector<1x8x512xf32>
    %295 = vector.shape_cast %294 : vector<1x8x512xf32> to vector<8x512xf32>
    %296 = arith.mulf %293, %295 : vector<8x512xf32>
    %c6_245 = arith.constant 6 : index
    %c0_246 = arith.constant 0 : index
    %c0_247 = arith.constant 0 : index
    %297 = vector.load %arg9[%c6_245, %c0_246, %c0_247] : memref<9x8x8xbf16, #tpu.memory_space<vmem>>, vector<1x8x8xbf16>
    %298 = vector.shape_cast %297 : vector<1x8x8xbf16> to vector<8x8xbf16>
    %299 = arith.truncf %296 : vector<8x512xf32> to vector<8x512xbf16>
    %cst_248 = arith.constant dense<0.000000e+00> : vector<8x512xf32>
    %300 = tpu.matmul %298, %299, %cst_248 {dimension_numbers = #tpu.dot_dimension_numbers<[1], [0], [0], [1], [0, 0, 1, 1], [], []>} : vector<8x8xbf16>, vector<8x512xbf16>, vector<8x512xf32> -> vector<8x512xf32>
    %301 = arith.addf %292, %300 : vector<8x512xf32>
    %c496_i32_249 = arith.constant 496 : i32
    %302 = tpu.dynamic_rotate %243 by %c496_i32_249 dim 1 : vector<8x512xf32>, i32 -> vector<8x512xf32>
    %c7_250 = arith.constant 7 : index
    %c0_251 = arith.constant 0 : index
    %c0_252 = arith.constant 0 : index
    %303 = vector.load %arg2[%c7_250, %c0_251, %c0_252] : memref<9x8x512xf32, #tpu.memory_space<vmem>>, vector<1x8x512xf32>
    %304 = vector.shape_cast %303 : vector<1x8x512xf32> to vector<8x512xf32>
    %305 = arith.mulf %302, %304 : vector<8x512xf32>
    %c7_253 = arith.constant 7 : index
    %c0_254 = arith.constant 0 : index
    %c0_255 = arith.constant 0 : index
    %306 = vector.load %arg9[%c7_253, %c0_254, %c0_255] : memref<9x8x8xbf16, #tpu.memory_space<vmem>>, vector<1x8x8xbf16>
    %307 = vector.shape_cast %306 : vector<1x8x8xbf16> to vector<8x8xbf16>
    %308 = arith.truncf %305 : vector<8x512xf32> to vector<8x512xbf16>
    %cst_256 = arith.constant dense<0.000000e+00> : vector<8x512xf32>
    %309 = tpu.matmul %307, %308, %cst_256 {dimension_numbers = #tpu.dot_dimension_numbers<[1], [0], [0], [1], [0, 0, 1, 1], [], []>} : vector<8x8xbf16>, vector<8x512xbf16>, vector<8x512xf32> -> vector<8x512xf32>
    %310 = arith.addf %301, %309 : vector<8x512xf32>
    %c495_i32_257 = arith.constant 495 : i32
    %311 = tpu.dynamic_rotate %243 by %c495_i32_257 dim 1 : vector<8x512xf32>, i32 -> vector<8x512xf32>
    %c8_258 = arith.constant 8 : index
    %c0_259 = arith.constant 0 : index
    %c0_260 = arith.constant 0 : index
    %312 = vector.load %arg2[%c8_258, %c0_259, %c0_260] : memref<9x8x512xf32, #tpu.memory_space<vmem>>, vector<1x8x512xf32>
    %313 = vector.shape_cast %312 : vector<1x8x512xf32> to vector<8x512xf32>
    %314 = arith.mulf %311, %313 : vector<8x512xf32>
    %c8_261 = arith.constant 8 : index
    %c0_262 = arith.constant 0 : index
    %c0_263 = arith.constant 0 : index
    %315 = vector.load %arg9[%c8_261, %c0_262, %c0_263] : memref<9x8x8xbf16, #tpu.memory_space<vmem>>, vector<1x8x8xbf16>
    %316 = vector.shape_cast %315 : vector<1x8x8xbf16> to vector<8x8xbf16>
    %317 = arith.truncf %314 : vector<8x512xf32> to vector<8x512xbf16>
    %cst_264 = arith.constant dense<0.000000e+00> : vector<8x512xf32>
    %318 = tpu.matmul %316, %317, %cst_264 {dimension_numbers = #tpu.dot_dimension_numbers<[1], [0], [0], [1], [0, 0, 1, 1], [], []>} : vector<8x8xbf16>, vector<8x512xbf16>, vector<8x512xf32> -> vector<8x512xf32>
    %319 = arith.addf %310, %318 : vector<8x512xf32>
    %c0_265 = arith.constant 0 : index
    %c0_266 = arith.constant 0 : index
    %320 = vector.load %arg10[%c0_265, %c0_266] : memref<8x1xf32, #tpu.memory_space<vmem>>, vector<8x1xf32>
    %321 = vector.broadcast %320 : vector<8x1xf32> to vector<8x512xf32>
    %322 = arith.addf %319, %321 : vector<8x512xf32>
    %c0_267 = arith.constant 0 : index
    %c0_268 = arith.constant 0 : index
    %323 = vector.load %arg11[%c0_267, %c0_268] : memref<8x512xf32, #tpu.memory_space<vmem>>, vector<8x512xf32>
    tpu.vector_store %arg11[%c0_267, %c0_268], %322 {strides = array<i32>} : memref<8x512xf32, #tpu.memory_space<vmem>>, vector<8x512xf32>,
    %324 = arith.subf %0, %322 : vector<8x512xf32>
    %c17_i32_269 = arith.constant 17 : i32
    %325 = tpu.dynamic_rotate %324 by %c17_i32_269 dim 1 : vector<8x512xf32>, i32 -> vector<8x512xf32>
    %c0_270 = arith.constant 0 : index
    %c0_271 = arith.constant 0 : index
    %c0_272 = arith.constant 0 : index
    %326 = vector.load %arg2[%c0_270, %c0_271, %c0_272] : memref<9x8x512xf32, #tpu.memory_space<vmem>>, vector<1x8x512xf32>
    %327 = vector.shape_cast %326 : vector<1x8x512xf32> to vector<8x512xf32>
    %328 = arith.mulf %325, %327 : vector<8x512xf32>
    %c0_273 = arith.constant 0 : index
    %c0_274 = arith.constant 0 : index
    %c0_275 = arith.constant 0 : index
    %329 = vector.load %arg3[%c0_273, %c0_274, %c0_275] : memref<9x8x8xbf16, #tpu.memory_space<vmem>>, vector<1x8x8xbf16>
    %330 = vector.shape_cast %329 : vector<1x8x8xbf16> to vector<8x8xbf16>
    %331 = arith.truncf %328 : vector<8x512xf32> to vector<8x512xbf16>
    %cst_276 = arith.constant dense<0.000000e+00> : vector<8x512xf32>
    %332 = tpu.matmul %330, %331, %cst_276 {dimension_numbers = #tpu.dot_dimension_numbers<[1], [0], [0], [1], [0, 0, 1, 1], [], []>} : vector<8x8xbf16>, vector<8x512xbf16>, vector<8x512xf32> -> vector<8x512xf32>
    %c16_i32_277 = arith.constant 16 : i32
    %333 = tpu.dynamic_rotate %324 by %c16_i32_277 dim 1 : vector<8x512xf32>, i32 -> vector<8x512xf32>
    %c1_278 = arith.constant 1 : index
    %c0_279 = arith.constant 0 : index
    %c0_280 = arith.constant 0 : index
    %334 = vector.load %arg2[%c1_278, %c0_279, %c0_280] : memref<9x8x512xf32, #tpu.memory_space<vmem>>, vector<1x8x512xf32>
    %335 = vector.shape_cast %334 : vector<1x8x512xf32> to vector<8x512xf32>
    %336 = arith.mulf %333, %335 : vector<8x512xf32>
    %c1_281 = arith.constant 1 : index
    %c0_282 = arith.constant 0 : index
    %c0_283 = arith.constant 0 : index
    %337 = vector.load %arg3[%c1_281, %c0_282, %c0_283] : memref<9x8x8xbf16, #tpu.memory_space<vmem>>, vector<1x8x8xbf16>
    %338 = vector.shape_cast %337 : vector<1x8x8xbf16> to vector<8x8xbf16>
    %339 = arith.truncf %336 : vector<8x512xf32> to vector<8x512xbf16>
    %cst_284 = arith.constant dense<0.000000e+00> : vector<8x512xf32>
    %340 = tpu.matmul %338, %339, %cst_284 {dimension_numbers = #tpu.dot_dimension_numbers<[1], [0], [0], [1], [0, 0, 1, 1], [], []>} : vector<8x8xbf16>, vector<8x512xbf16>, vector<8x512xf32> -> vector<8x512xf32>
    %341 = arith.addf %332, %340 : vector<8x512xf32>
    %c15_i32_285 = arith.constant 15 : i32
    %342 = tpu.dynamic_rotate %324 by %c15_i32_285 dim 1 : vector<8x512xf32>, i32 -> vector<8x512xf32>
    %c2_286 = arith.constant 2 : index
    %c0_287 = arith.constant 0 : index
    %c0_288 = arith.constant 0 : index
    %343 = vector.load %arg2[%c2_286, %c0_287, %c0_288] : memref<9x8x512xf32, #tpu.memory_space<vmem>>, vector<1x8x512xf32>
    %344 = vector.shape_cast %343 : vector<1x8x512xf32> to vector<8x512xf32>
    %345 = arith.mulf %342, %344 : vector<8x512xf32>
    %c2_289 = arith.constant 2 : index
    %c0_290 = arith.constant 0 : index
    %c0_291 = arith.constant 0 : index
    %346 = vector.load %arg3[%c2_289, %c0_290, %c0_291] : memref<9x8x8xbf16, #tpu.memory_space<vmem>>, vector<1x8x8xbf16>
    %347 = vector.shape_cast %346 : vector<1x8x8xbf16> to vector<8x8xbf16>
    %348 = arith.truncf %345 : vector<8x512xf32> to vector<8x512xbf16>
    %cst_292 = arith.constant dense<0.000000e+00> : vector<8x512xf32>
    %349 = tpu.matmul %347, %348, %cst_292 {dimension_numbers = #tpu.dot_dimension_numbers<[1], [0], [0], [1], [0, 0, 1, 1], [], []>} : vector<8x8xbf16>, vector<8x512xbf16>, vector<8x512xf32> -> vector<8x512xf32>
    %350 = arith.addf %341, %349 : vector<8x512xf32>
    %c1_i32_293 = arith.constant 1 : i32
    %351 = tpu.dynamic_rotate %324 by %c1_i32_293 dim 1 : vector<8x512xf32>, i32 -> vector<8x512xf32>
    %c3_294 = arith.constant 3 : index
    %c0_295 = arith.constant 0 : index
    %c0_296 = arith.constant 0 : index
    %352 = vector.load %arg2[%c3_294, %c0_295, %c0_296] : memref<9x8x512xf32, #tpu.memory_space<vmem>>, vector<1x8x512xf32>
    %353 = vector.shape_cast %352 : vector<1x8x512xf32> to vector<8x512xf32>
    %354 = arith.mulf %351, %353 : vector<8x512xf32>
    %c3_297 = arith.constant 3 : index
    %c0_298 = arith.constant 0 : index
    %c0_299 = arith.constant 0 : index
    %355 = vector.load %arg3[%c3_297, %c0_298, %c0_299] : memref<9x8x8xbf16, #tpu.memory_space<vmem>>, vector<1x8x8xbf16>
    %356 = vector.shape_cast %355 : vector<1x8x8xbf16> to vector<8x8xbf16>
    %357 = arith.truncf %354 : vector<8x512xf32> to vector<8x512xbf16>
    %cst_300 = arith.constant dense<0.000000e+00> : vector<8x512xf32>
    %358 = tpu.matmul %356, %357, %cst_300 {dimension_numbers = #tpu.dot_dimension_numbers<[1], [0], [0], [1], [0, 0, 1, 1], [], []>} : vector<8x8xbf16>, vector<8x512xbf16>, vector<8x512xf32> -> vector<8x512xf32>
    %359 = arith.addf %350, %358 : vector<8x512xf32>
    %c4_301 = arith.constant 4 : index
    %c0_302 = arith.constant 0 : index
    %c0_303 = arith.constant 0 : index
    %360 = vector.load %arg3[%c4_301, %c0_302, %c0_303] : memref<9x8x8xbf16, #tpu.memory_space<vmem>>, vector<1x8x8xbf16>
    %361 = vector.shape_cast %360 : vector<1x8x8xbf16> to vector<8x8xbf16>
    %362 = arith.truncf %324 : vector<8x512xf32> to vector<8x512xbf16>
    %cst_304 = arith.constant dense<0.000000e+00> : vector<8x512xf32>
    %363 = tpu.matmul %361, %362, %cst_304 {dimension_numbers = #tpu.dot_dimension_numbers<[1], [0], [0], [1], [0, 0, 1, 1], [], []>} : vector<8x8xbf16>, vector<8x512xbf16>, vector<8x512xf32> -> vector<8x512xf32>
    %364 = arith.addf %359, %363 : vector<8x512xf32>
    %c511_i32_305 = arith.constant 511 : i32
    %365 = tpu.dynamic_rotate %324 by %c511_i32_305 dim 1 : vector<8x512xf32>, i32 -> vector<8x512xf32>
    %c5_306 = arith.constant 5 : index
    %c0_307 = arith.constant 0 : index
    %c0_308 = arith.constant 0 : index
    %366 = vector.load %arg2[%c5_306, %c0_307, %c0_308] : memref<9x8x512xf32, #tpu.memory_space<vmem>>, vector<1x8x512xf32>
    %367 = vector.shape_cast %366 : vector<1x8x512xf32> to vector<8x512xf32>
    %368 = arith.mulf %365, %367 : vector<8x512xf32>
    %c5_309 = arith.constant 5 : index
    %c0_310 = arith.constant 0 : index
    %c0_311 = arith.constant 0 : index
    %369 = vector.load %arg3[%c5_309, %c0_310, %c0_311] : memref<9x8x8xbf16, #tpu.memory_space<vmem>>, vector<1x8x8xbf16>
    %370 = vector.shape_cast %369 : vector<1x8x8xbf16> to vector<8x8xbf16>
    %371 = arith.truncf %368 : vector<8x512xf32> to vector<8x512xbf16>
    %cst_312 = arith.constant dense<0.000000e+00> : vector<8x512xf32>
    %372 = tpu.matmul %370, %371, %cst_312 {dimension_numbers = #tpu.dot_dimension_numbers<[1], [0], [0], [1], [0, 0, 1, 1], [], []>} : vector<8x8xbf16>, vector<8x512xbf16>, vector<8x512xf32> -> vector<8x512xf32>
    %373 = arith.addf %364, %372 : vector<8x512xf32>
    %c497_i32_313 = arith.constant 497 : i32
    %374 = tpu.dynamic_rotate %324 by %c497_i32_313 dim 1 : vector<8x512xf32>, i32 -> vector<8x512xf32>
    %c6_314 = arith.constant 6 : index
    %c0_315 = arith.constant 0 : index
    %c0_316 = arith.constant 0 : index
    %375 = vector.load %arg2[%c6_314, %c0_315, %c0_316] : memref<9x8x512xf32, #tpu.memory_space<vmem>>, vector<1x8x512xf32>
    %376 = vector.shape_cast %375 : vector<1x8x512xf32> to vector<8x512xf32>
    %377 = arith.mulf %374, %376 : vector<8x512xf32>
    %c6_317 = arith.constant 6 : index
    %c0_318 = arith.constant 0 : index
    %c0_319 = arith.constant 0 : index
    %378 = vector.load %arg3[%c6_317, %c0_318, %c0_319] : memref<9x8x8xbf16, #tpu.memory_space<vmem>>, vector<1x8x8xbf16>
    %379 = vector.shape_cast %378 : vector<1x8x8xbf16> to vector<8x8xbf16>
    %380 = arith.truncf %377 : vector<8x512xf32> to vector<8x512xbf16>
    %cst_320 = arith.constant dense<0.000000e+00> : vector<8x512xf32>
    %381 = tpu.matmul %379, %380, %cst_320 {dimension_numbers = #tpu.dot_dimension_numbers<[1], [0], [0], [1], [0, 0, 1, 1], [], []>} : vector<8x8xbf16>, vector<8x512xbf16>, vector<8x512xf32> -> vector<8x512xf32>
    %382 = arith.addf %373, %381 : vector<8x512xf32>
    %c496_i32_321 = arith.constant 496 : i32
    %383 = tpu.dynamic_rotate %324 by %c496_i32_321 dim 1 : vector<8x512xf32>, i32 -> vector<8x512xf32>
    %c7_322 = arith.constant 7 : index
    %c0_323 = arith.constant 0 : index
    %c0_324 = arith.constant 0 : index
    %384 = vector.load %arg2[%c7_322, %c0_323, %c0_324] : memref<9x8x512xf32, #tpu.memory_space<vmem>>, vector<1x8x512xf32>
    %385 = vector.shape_cast %384 : vector<1x8x512xf32> to vector<8x512xf32>
    %386 = arith.mulf %383, %385 : vector<8x512xf32>
    %c7_325 = arith.constant 7 : index
    %c0_326 = arith.constant 0 : index
    %c0_327 = arith.constant 0 : index
    %387 = vector.load %arg3[%c7_325, %c0_326, %c0_327] : memref<9x8x8xbf16, #tpu.memory_space<vmem>>, vector<1x8x8xbf16>
    %388 = vector.shape_cast %387 : vector<1x8x8xbf16> to vector<8x8xbf16>
    %389 = arith.truncf %386 : vector<8x512xf32> to vector<8x512xbf16>
    %cst_328 = arith.constant dense<0.000000e+00> : vector<8x512xf32>
    %390 = tpu.matmul %388, %389, %cst_328 {dimension_numbers = #tpu.dot_dimension_numbers<[1], [0], [0], [1], [0, 0, 1, 1], [], []>} : vector<8x8xbf16>, vector<8x512xbf16>, vector<8x512xf32> -> vector<8x512xf32>
    %391 = arith.addf %382, %390 : vector<8x512xf32>
    %c495_i32_329 = arith.constant 495 : i32
    %392 = tpu.dynamic_rotate %324 by %c495_i32_329 dim 1 : vector<8x512xf32>, i32 -> vector<8x512xf32>
    %c8_330 = arith.constant 8 : index
    %c0_331 = arith.constant 0 : index
    %c0_332 = arith.constant 0 : index
    %393 = vector.load %arg2[%c8_330, %c0_331, %c0_332] : memref<9x8x512xf32, #tpu.memory_space<vmem>>, vector<1x8x512xf32>
    %394 = vector.shape_cast %393 : vector<1x8x512xf32> to vector<8x512xf32>
    %395 = arith.mulf %392, %394 : vector<8x512xf32>
    %c8_333 = arith.constant 8 : index
    %c0_334 = arith.constant 0 : index
    %c0_335 = arith.constant 0 : index
    %396 = vector.load %arg3[%c8_333, %c0_334, %c0_335] : memref<9x8x8xbf16, #tpu.memory_space<vmem>>, vector<1x8x8xbf16>
    %397 = vector.shape_cast %396 : vector<1x8x8xbf16> to vector<8x8xbf16>
    %398 = arith.truncf %395 : vector<8x512xf32> to vector<8x512xbf16>
    %cst_336 = arith.constant dense<0.000000e+00> : vector<8x512xf32>
    %399 = tpu.matmul %397, %398, %cst_336 {dimension_numbers = #tpu.dot_dimension_numbers<[1], [0], [0], [1], [0, 0, 1, 1], [], []>} : vector<8x8xbf16>, vector<8x512xbf16>, vector<8x512xf32> -> vector<8x512xf32>
    %400 = arith.addf %391, %399 : vector<8x512xf32>
    %c0_337 = arith.constant 0 : index
    %c0_338 = arith.constant 0 : index
    %401 = vector.load %arg4[%c0_337, %c0_338] : memref<8x1xf32, #tpu.memory_space<vmem>>, vector<8x1xf32>
    %402 = vector.broadcast %401 : vector<8x1xf32> to vector<8x512xf32>
    %403 = arith.addf %400, %402 : vector<8x512xf32>
    %cst_339 = arith.constant 0.000000e+00 : f32
    %404 = vector.broadcast %cst_339 : f32 to vector<8x512xf32>
    %405 = arith.maximumf %403, %404 : vector<8x512xf32>
    %c17_i32_340 = arith.constant 17 : i32
    %406 = tpu.dynamic_rotate %405 by %c17_i32_340 dim 1 : vector<8x512xf32>, i32 -> vector<8x512xf32>
    %c0_341 = arith.constant 0 : index
    %c0_342 = arith.constant 0 : index
    %c0_343 = arith.constant 0 : index
    %407 = vector.load %arg2[%c0_341, %c0_342, %c0_343] : memref<9x8x512xf32, #tpu.memory_space<vmem>>, vector<1x8x512xf32>
    %408 = vector.shape_cast %407 : vector<1x8x512xf32> to vector<8x512xf32>
    %409 = arith.mulf %406, %408 : vector<8x512xf32>
    %c0_344 = arith.constant 0 : index
    %c0_345 = arith.constant 0 : index
    %c0_346 = arith.constant 0 : index
    %410 = vector.load %arg5[%c0_344, %c0_345, %c0_346] : memref<9x16x8xbf16, #tpu.memory_space<vmem>>, vector<1x16x8xbf16>
    %411 = vector.shape_cast %410 : vector<1x16x8xbf16> to vector<16x8xbf16>
    %412 = arith.truncf %409 : vector<8x512xf32> to vector<8x512xbf16>
    %cst_347 = arith.constant dense<0.000000e+00> : vector<16x512xf32>
    %413 = tpu.matmul %411, %412, %cst_347 {dimension_numbers = #tpu.dot_dimension_numbers<[1], [0], [0], [1], [0, 0, 1, 1], [], []>} : vector<16x8xbf16>, vector<8x512xbf16>, vector<16x512xf32> -> vector<16x512xf32>
    %c16_i32_348 = arith.constant 16 : i32
    %414 = tpu.dynamic_rotate %405 by %c16_i32_348 dim 1 : vector<8x512xf32>, i32 -> vector<8x512xf32>
    %c1_349 = arith.constant 1 : index
    %c0_350 = arith.constant 0 : index
    %c0_351 = arith.constant 0 : index
    %415 = vector.load %arg2[%c1_349, %c0_350, %c0_351] : memref<9x8x512xf32, #tpu.memory_space<vmem>>, vector<1x8x512xf32>
    %416 = vector.shape_cast %415 : vector<1x8x512xf32> to vector<8x512xf32>
    %417 = arith.mulf %414, %416 : vector<8x512xf32>
    %c1_352 = arith.constant 1 : index
    %c0_353 = arith.constant 0 : index
    %c0_354 = arith.constant 0 : index
    %418 = vector.load %arg5[%c1_352, %c0_353, %c0_354] : memref<9x16x8xbf16, #tpu.memory_space<vmem>>, vector<1x16x8xbf16>
    %419 = vector.shape_cast %418 : vector<1x16x8xbf16> to vector<16x8xbf16>
    %420 = arith.truncf %417 : vector<8x512xf32> to vector<8x512xbf16>
    %cst_355 = arith.constant dense<0.000000e+00> : vector<16x512xf32>
    %421 = tpu.matmul %419, %420, %cst_355 {dimension_numbers = #tpu.dot_dimension_numbers<[1], [0], [0], [1], [0, 0, 1, 1], [], []>} : vector<16x8xbf16>, vector<8x512xbf16>, vector<16x512xf32> -> vector<16x512xf32>
    %422 = arith.addf %413, %421 : vector<16x512xf32>
    %c15_i32_356 = arith.constant 15 : i32
    %423 = tpu.dynamic_rotate %405 by %c15_i32_356 dim 1 : vector<8x512xf32>, i32 -> vector<8x512xf32>
    %c2_357 = arith.constant 2 : index
    %c0_358 = arith.constant 0 : index
    %c0_359 = arith.constant 0 : index
    %424 = vector.load %arg2[%c2_357, %c0_358, %c0_359] : memref<9x8x512xf32, #tpu.memory_space<vmem>>, vector<1x8x512xf32>
    %425 = vector.shape_cast %424 : vector<1x8x512xf32> to vector<8x512xf32>
    %426 = arith.mulf %423, %425 : vector<8x512xf32>
    %c2_360 = arith.constant 2 : index
    %c0_361 = arith.constant 0 : index
    %c0_362 = arith.constant 0 : index
    %427 = vector.load %arg5[%c2_360, %c0_361, %c0_362] : memref<9x16x8xbf16, #tpu.memory_space<vmem>>, vector<1x16x8xbf16>
    %428 = vector.shape_cast %427 : vector<1x16x8xbf16> to vector<16x8xbf16>
    %429 = arith.truncf %426 : vector<8x512xf32> to vector<8x512xbf16>
    %cst_363 = arith.constant dense<0.000000e+00> : vector<16x512xf32>
    %430 = tpu.matmul %428, %429, %cst_363 {dimension_numbers = #tpu.dot_dimension_numbers<[1], [0], [0], [1], [0, 0, 1, 1], [], []>} : vector<16x8xbf16>, vector<8x512xbf16>, vector<16x512xf32> -> vector<16x512xf32>
    %431 = arith.addf %422, %430 : vector<16x512xf32>
    %c1_i32_364 = arith.constant 1 : i32
    %432 = tpu.dynamic_rotate %405 by %c1_i32_364 dim 1 : vector<8x512xf32>, i32 -> vector<8x512xf32>
    %c3_365 = arith.constant 3 : index
    %c0_366 = arith.constant 0 : index
    %c0_367 = arith.constant 0 : index
    %433 = vector.load %arg2[%c3_365, %c0_366, %c0_367] : memref<9x8x512xf32, #tpu.memory_space<vmem>>, vector<1x8x512xf32>
    %434 = vector.shape_cast %433 : vector<1x8x512xf32> to vector<8x512xf32>
    %435 = arith.mulf %432, %434 : vector<8x512xf32>
    %c3_368 = arith.constant 3 : index
    %c0_369 = arith.constant 0 : index
    %c0_370 = arith.constant 0 : index
    %436 = vector.load %arg5[%c3_368, %c0_369, %c0_370] : memref<9x16x8xbf16, #tpu.memory_space<vmem>>, vector<1x16x8xbf16>
    %437 = vector.shape_cast %436 : vector<1x16x8xbf16> to vector<16x8xbf16>
    %438 = arith.truncf %435 : vector<8x512xf32> to vector<8x512xbf16>
    %cst_371 = arith.constant dense<0.000000e+00> : vector<16x512xf32>
    %439 = tpu.matmul %437, %438, %cst_371 {dimension_numbers = #tpu.dot_dimension_numbers<[1], [0], [0], [1], [0, 0, 1, 1], [], []>} : vector<16x8xbf16>, vector<8x512xbf16>, vector<16x512xf32> -> vector<16x512xf32>
    %440 = arith.addf %431, %439 : vector<16x512xf32>
    %c4_372 = arith.constant 4 : index
    %c0_373 = arith.constant 0 : index
    %c0_374 = arith.constant 0 : index
    %441 = vector.load %arg5[%c4_372, %c0_373, %c0_374] : memref<9x16x8xbf16, #tpu.memory_space<vmem>>, vector<1x16x8xbf16>
    %442 = vector.shape_cast %441 : vector<1x16x8xbf16> to vector<16x8xbf16>
    %443 = arith.truncf %405 : vector<8x512xf32> to vector<8x512xbf16>
    %cst_375 = arith.constant dense<0.000000e+00> : vector<16x512xf32>
    %444 = tpu.matmul %442, %443, %cst_375 {dimension_numbers = #tpu.dot_dimension_numbers<[1], [0], [0], [1], [0, 0, 1, 1], [], []>} : vector<16x8xbf16>, vector<8x512xbf16>, vector<16x512xf32> -> vector<16x512xf32>
    %445 = arith.addf %440, %444 : vector<16x512xf32>
    %c511_i32_376 = arith.constant 511 : i32
    %446 = tpu.dynamic_rotate %405 by %c511_i32_376 dim 1 : vector<8x512xf32>, i32 -> vector<8x512xf32>
    %c5_377 = arith.constant 5 : index
    %c0_378 = arith.constant 0 : index
    %c0_379 = arith.constant 0 : index
    %447 = vector.load %arg2[%c5_377, %c0_378, %c0_379] : memref<9x8x512xf32, #tpu.memory_space<vmem>>, vector<1x8x512xf32>
    %448 = vector.shape_cast %447 : vector<1x8x512xf32> to vector<8x512xf32>
    %449 = arith.mulf %446, %448 : vector<8x512xf32>
    %c5_380 = arith.constant 5 : index
    %c0_381 = arith.constant 0 : index
    %c0_382 = arith.constant 0 : index
    %450 = vector.load %arg5[%c5_380, %c0_381, %c0_382] : memref<9x16x8xbf16, #tpu.memory_space<vmem>>, vector<1x16x8xbf16>
    %451 = vector.shape_cast %450 : vector<1x16x8xbf16> to vector<16x8xbf16>
    %452 = arith.truncf %449 : vector<8x512xf32> to vector<8x512xbf16>
    %cst_383 = arith.constant dense<0.000000e+00> : vector<16x512xf32>
    %453 = tpu.matmul %451, %452, %cst_383 {dimension_numbers = #tpu.dot_dimension_numbers<[1], [0], [0], [1], [0, 0, 1, 1], [], []>} : vector<16x8xbf16>, vector<8x512xbf16>, vector<16x512xf32> -> vector<16x512xf32>
    %454 = arith.addf %445, %453 : vector<16x512xf32>
    %c497_i32_384 = arith.constant 497 : i32
    %455 = tpu.dynamic_rotate %405 by %c497_i32_384 dim 1 : vector<8x512xf32>, i32 -> vector<8x512xf32>
    %c6_385 = arith.constant 6 : index
    %c0_386 = arith.constant 0 : index
    %c0_387 = arith.constant 0 : index
    %456 = vector.load %arg2[%c6_385, %c0_386, %c0_387] : memref<9x8x512xf32, #tpu.memory_space<vmem>>, vector<1x8x512xf32>
    %457 = vector.shape_cast %456 : vector<1x8x512xf32> to vector<8x512xf32>
    %458 = arith.mulf %455, %457 : vector<8x512xf32>
    %c6_388 = arith.constant 6 : index
    %c0_389 = arith.constant 0 : index
    %c0_390 = arith.constant 0 : index
    %459 = vector.load %arg5[%c6_388, %c0_389, %c0_390] : memref<9x16x8xbf16, #tpu.memory_space<vmem>>, vector<1x16x8xbf16>
    %460 = vector.shape_cast %459 : vector<1x16x8xbf16> to vector<16x8xbf16>
    %461 = arith.truncf %458 : vector<8x512xf32> to vector<8x512xbf16>
    %cst_391 = arith.constant dense<0.000000e+00> : vector<16x512xf32>
    %462 = tpu.matmul %460, %461, %cst_391 {dimension_numbers = #tpu.dot_dimension_numbers<[1], [0], [0], [1], [0, 0, 1, 1], [], []>} : vector<16x8xbf16>, vector<8x512xbf16>, vector<16x512xf32> -> vector<16x512xf32>
    %463 = arith.addf %454, %462 : vector<16x512xf32>
    %c496_i32_392 = arith.constant 496 : i32
    %464 = tpu.dynamic_rotate %405 by %c496_i32_392 dim 1 : vector<8x512xf32>, i32 -> vector<8x512xf32>
    %c7_393 = arith.constant 7 : index
    %c0_394 = arith.constant 0 : index
    %c0_395 = arith.constant 0 : index
    %465 = vector.load %arg2[%c7_393, %c0_394, %c0_395] : memref<9x8x512xf32, #tpu.memory_space<vmem>>, vector<1x8x512xf32>
    %466 = vector.shape_cast %465 : vector<1x8x512xf32> to vector<8x512xf32>
    %467 = arith.mulf %464, %466 : vector<8x512xf32>
    %c7_396 = arith.constant 7 : index
    %c0_397 = arith.constant 0 : index
    %c0_398 = arith.constant 0 : index
    %468 = vector.load %arg5[%c7_396, %c0_397, %c0_398] : memref<9x16x8xbf16, #tpu.memory_space<vmem>>, vector<1x16x8xbf16>
    %469 = vector.shape_cast %468 : vector<1x16x8xbf16> to vector<16x8xbf16>
    %470 = arith.truncf %467 : vector<8x512xf32> to vector<8x512xbf16>
    %cst_399 = arith.constant dense<0.000000e+00> : vector<16x512xf32>
    %471 = tpu.matmul %469, %470, %cst_399 {dimension_numbers = #tpu.dot_dimension_numbers<[1], [0], [0], [1], [0, 0, 1, 1], [], []>} : vector<16x8xbf16>, vector<8x512xbf16>, vector<16x512xf32> -> vector<16x512xf32>
    %472 = arith.addf %463, %471 : vector<16x512xf32>
    %c495_i32_400 = arith.constant 495 : i32
    %473 = tpu.dynamic_rotate %405 by %c495_i32_400 dim 1 : vector<8x512xf32>, i32 -> vector<8x512xf32>
    %c8_401 = arith.constant 8 : index
    %c0_402 = arith.constant 0 : index
    %c0_403 = arith.constant 0 : index
    %474 = vector.load %arg2[%c8_401, %c0_402, %c0_403] : memref<9x8x512xf32, #tpu.memory_space<vmem>>, vector<1x8x512xf32>
    %475 = vector.shape_cast %474 : vector<1x8x512xf32> to vector<8x512xf32>
    %476 = arith.mulf %473, %475 : vector<8x512xf32>
    %c8_404 = arith.constant 8 : index
    %c0_405 = arith.constant 0 : index
    %c0_406 = arith.constant 0 : index
    %477 = vector.load %arg5[%c8_404, %c0_405, %c0_406] : memref<9x16x8xbf16, #tpu.memory_space<vmem>>, vector<1x16x8xbf16>
    %478 = vector.shape_cast %477 : vector<1x16x8xbf16> to vector<16x8xbf16>
    %479 = arith.truncf %476 : vector<8x512xf32> to vector<8x512xbf16>
    %cst_407 = arith.constant dense<0.000000e+00> : vector<16x512xf32>
    %480 = tpu.matmul %478, %479, %cst_407 {dimension_numbers = #tpu.dot_dimension_numbers<[1], [0], [0], [1], [0, 0, 1, 1], [], []>} : vector<16x8xbf16>, vector<8x512xbf16>, vector<16x512xf32> -> vector<16x512xf32>
    %481 = arith.addf %472, %480 : vector<16x512xf32>
    %c0_408 = arith.constant 0 : index
    %c0_409 = arith.constant 0 : index
    %482 = vector.load %arg6[%c0_408, %c0_409] : memref<16x1xf32, #tpu.memory_space<vmem>>, vector<16x1xf32>
    %483 = vector.broadcast %482 : vector<16x1xf32> to vector<16x512xf32>
    %484 = arith.addf %481, %483 : vector<16x512xf32>
    %cst_410 = arith.constant 0.000000e+00 : f32
    %485 = vector.broadcast %cst_410 : f32 to vector<16x512xf32>
    %486 = arith.maximumf %484, %485 : vector<16x512xf32>
    %487 = arith.subf %486, %162 : vector<16x512xf32>
    %488 = arith.mulf %487, %487 : vector<16x512xf32>
    %489 = vector.shape_cast %488 : vector<16x512xf32> to vector<1x16x512xf32>
    %cst_411 = arith.constant dense<0.000000e+00> : vector<1xf32>
    %490 = vector.multi_reduction <add>, %489, %cst_411 [1, 2] : vector<1x16x512xf32> to vector<1xf32>
    %491 = vector.shape_cast %490 : vector<1xf32> to vector<1x1x1xf32>
    %492 = vector.extract %491[0, 0, 0] : f32 from vector<1x1x1xf32>
    %493 = arith.mulf %322, %322 : vector<8x512xf32>
    %494 = vector.shape_cast %493 : vector<8x512xf32> to vector<1x8x512xf32>
    %cst_412 = arith.constant dense<0.000000e+00> : vector<1xf32>
    %495 = vector.multi_reduction <add>, %494, %cst_412 [1, 2] : vector<1x8x512xf32> to vector<1xf32>
    %496 = vector.shape_cast %495 : vector<1xf32> to vector<1x1x1xf32>
    %497 = vector.extract %496[0, 0, 0] : f32 from vector<1x1x1xf32>
    %498 = tpu.iota {dimensions = array<i32: 0>} : vector<8x512xi32>
    %c1_i32_413 = arith.constant 1 : i32
    %499 = vector.broadcast %c1_i32_413 : i32 to vector<8x512xi32>
    %500 = arith.cmpi sge, %498, %499 : vector<8x512xi32>
    %c4_i32 = arith.constant 4 : i32
    %501 = vector.broadcast %c4_i32 : i32 to vector<8x512xi32>
    %502 = arith.cmpi slt, %498, %501 : vector<8x512xi32>
    %503 = arith.andi %500, %502 : vector<8x512xi1>
    %504 = arith.extui %503 : vector<8x512xi1> to vector<8x512xi32>
    %505 = arith.sitofp %504 : vector<8x512xi32> to vector<8x512xf32>
    %c1_i32_414 = arith.constant 1 : i32
    %506 = tpu.dynamic_rotate %324 by %c1_i32_414 dim 0 : vector<8x512xf32>, i32 -> vector<8x512xf32>
    %507 = arith.subf %324, %506 : vector<8x512xf32>
    %508 = arith.mulf %507, %505 : vector<8x512xf32>
    %c16_i32_415 = arith.constant 16 : i32
    %509 = tpu.dynamic_rotate %324 by %c16_i32_415 dim 1 : vector<8x512xf32>, i32 -> vector<8x512xf32>
    %510 = arith.subf %324, %509 : vector<8x512xf32>
    %c1_416 = arith.constant 1 : index
    %c0_417 = arith.constant 0 : index
    %c0_418 = arith.constant 0 : index
    %511 = vector.load %arg2[%c1_416, %c0_417, %c0_418] : memref<9x8x512xf32, #tpu.memory_space<vmem>>, vector<1x8x512xf32>
    %512 = vector.shape_cast %511 : vector<1x8x512xf32> to vector<8x512xf32>
    %513 = arith.mulf %510, %512 : vector<8x512xf32>
    %514 = arith.mulf %513, %513 : vector<8x512xf32>
    %515 = vector.shape_cast %514 : vector<8x512xf32> to vector<1x8x512xf32>
    %cst_419 = arith.constant dense<0.000000e+00> : vector<1xf32>
    %516 = vector.multi_reduction <add>, %515, %cst_419 [1, 2] : vector<1x8x512xf32> to vector<1xf32>
    %517 = vector.shape_cast %516 : vector<1xf32> to vector<1x1x1xf32>
    %518 = vector.extract %517[0, 0, 0] : f32 from vector<1x1x1xf32>
    %519 = arith.mulf %508, %508 : vector<8x512xf32>
    %520 = vector.shape_cast %519 : vector<8x512xf32> to vector<1x8x512xf32>
    %cst_420 = arith.constant dense<0.000000e+00> : vector<1xf32>
    %521 = vector.multi_reduction <add>, %520, %cst_420 [1, 2] : vector<1x8x512xf32> to vector<1xf32>
    %522 = vector.shape_cast %521 : vector<1xf32> to vector<1x1x1xf32>
    %523 = vector.extract %522[0, 0, 0] : f32 from vector<1x1x1xf32>
    %524 = arith.addf %518, %523 : f32
    %525 = tpu.iota {dimensions = array<i32: 1>} : vector<8x128xi32>
    %c0_i32 = arith.constant 0 : i32
    %526 = vector.broadcast %c0_i32 : i32 to vector<8x128xi32>
    %527 = arith.cmpi eq, %525, %526 : vector<8x128xi32>
    %528 = arith.extui %527 : vector<8x128xi1> to vector<8x128xi32>
    %529 = arith.sitofp %528 : vector<8x128xi32> to vector<8x128xf32>
    %530 = vector.broadcast %492 : f32 to vector<8x128xf32>
    %531 = arith.mulf %530, %529 : vector<8x128xf32>
    %c1_i32_421 = arith.constant 1 : i32
    %532 = vector.broadcast %c1_i32_421 : i32 to vector<8x128xi32>
    %533 = arith.cmpi eq, %525, %532 : vector<8x128xi32>
    %534 = arith.extui %533 : vector<8x128xi1> to vector<8x128xi32>
    %535 = arith.sitofp %534 : vector<8x128xi32> to vector<8x128xf32>
    %536 = vector.broadcast %497 : f32 to vector<8x128xf32>
    %537 = arith.mulf %536, %535 : vector<8x128xf32>
    %538 = arith.addf %531, %537 : vector<8x128xf32>
    %c2_i32 = arith.constant 2 : i32
    %539 = vector.broadcast %c2_i32 : i32 to vector<8x128xi32>
    %540 = arith.cmpi eq, %525, %539 : vector<8x128xi32>
    %541 = arith.extui %540 : vector<8x128xi1> to vector<8x128xi32>
    %542 = arith.sitofp %541 : vector<8x128xi32> to vector<8x128xf32>
    %543 = vector.broadcast %524 : f32 to vector<8x128xf32>
    %544 = arith.mulf %543, %542 : vector<8x128xf32>
    %545 = arith.addf %538, %544 : vector<8x128xf32>
    %c0_422 = arith.constant 0 : index
    %c0_423 = arith.constant 0 : index
    %546 = vector.load %arg12[%c0_422, %c0_423] : memref<8x128xf32, #tpu.memory_space<vmem>>, vector<8x128xf32>
    tpu.vector_store %arg12[%c0_422, %c0_423], %545 {strides = array<i32>} : memref<8x128xf32, #tpu.memory_space<vmem>>, vector<8x128xf32>,
    return
  }
  func.func @transform_0(%arg0: i32) -> (i32, i32) {
    %c0_i32 = arith.constant 0 : i32
    %c0_i32_0 = arith.constant 0 : i32
    %c0_i32_1 = arith.constant 0 : i32
    return %c0_i32, %c0_i32_0 : i32, i32
  }
  func.func @transform_1(%arg0: i32) -> (i32, i32, i32) {
    %c0_i32 = arith.constant 0 : i32
    %c0_i32_0 = arith.constant 0 : i32
    %c0_i32_1 = arith.constant 0 : i32
    %c0_i32_2 = arith.constant 0 : i32
    return %c0_i32, %c0_i32_0, %c0_i32_1 : i32, i32, i32
  }
  func.func @transform_2(%arg0: i32) -> (i32, i32, i32) {
    %c0_i32 = arith.constant 0 : i32
    %c0_i32_0 = arith.constant 0 : i32
    %c0_i32_1 = arith.constant 0 : i32
    %c0_i32_2 = arith.constant 0 : i32
    return %c0_i32, %c0_i32_0, %c0_i32_1 : i32, i32, i32
  }
  func.func @transform_3(%arg0: i32) -> (i32, i32) {
    %c0_i32 = arith.constant 0 : i32
    %c0_i32_0 = arith.constant 0 : i32
    %c0_i32_1 = arith.constant 0 : i32
    return %c0_i32, %c0_i32_0 : i32, i32
  }
  func.func @transform_4(%arg0: i32) -> (i32, i32, i32) {
    %c0_i32 = arith.constant 0 : i32
    %c0_i32_0 = arith.constant 0 : i32
    %c0_i32_1 = arith.constant 0 : i32
    %c0_i32_2 = arith.constant 0 : i32
    return %c0_i32, %c0_i32_0, %c0_i32_1 : i32, i32, i32
  }
  func.func @transform_5(%arg0: i32) -> (i32, i32) {
    %c0_i32 = arith.constant 0 : i32
    %c0_i32_0 = arith.constant 0 : i32
    %c0_i32_1 = arith.constant 0 : i32
    return %c0_i32, %c0_i32_0 : i32, i32
  }
  func.func @transform_6(%arg0: i32) -> (i32, i32, i32) {
    %c0_i32 = arith.constant 0 : i32
    %c0_i32_0 = arith.constant 0 : i32
    %c0_i32_1 = arith.constant 0 : i32
    %c0_i32_2 = arith.constant 0 : i32
    return %c0_i32, %c0_i32_0, %c0_i32_1 : i32, i32, i32
  }
  func.func @transform_7(%arg0: i32) -> (i32, i32) {
    %c0_i32 = arith.constant 0 : i32
    %c0_i32_0 = arith.constant 0 : i32
    %c0_i32_1 = arith.constant 0 : i32
    return %c0_i32, %c0_i32_0 : i32, i32
  }
  func.func @transform_8(%arg0: i32) -> (i32, i32, i32) {
    %c0_i32 = arith.constant 0 : i32
    %c0_i32_0 = arith.constant 0 : i32
    %c0_i32_1 = arith.constant 0 : i32
    %c0_i32_2 = arith.constant 0 : i32
    return %c0_i32, %c0_i32_0, %c0_i32_1 : i32, i32, i32
  }
  func.func @transform_9(%arg0: i32) -> (i32, i32) {
    %c0_i32 = arith.constant 0 : i32
    %c0_i32_0 = arith.constant 0 : i32
    %c0_i32_1 = arith.constant 0 : i32
    return %c0_i32, %c0_i32_0 : i32, i32
  }
  func.func @transform_10(%arg0: i32) -> (i32, i32) {
    %c0_i32 = arith.constant 0 : i32
    %c0_i32_0 = arith.constant 0 : i32
    %c0_i32_1 = arith.constant 0 : i32
    return %c0_i32, %c0_i32_0 : i32, i32
  }
  func.func @transform_11(%arg0: i32) -> (i32, i32) {
    %c0_i32 = arith.constant 0 : i32
    %c0_i32_0 = arith.constant 0 : i32
    %c0_i32_1 = arith.constant 0 : i32
    return %c0_i32, %c0_i32_0 : i32, i32
  }
}

</mosaic_0001>

<bundles_post_ra>
// kernel: autoencoder_forward.1
= control target key start
LH: loop header
LB: loop body
LE: loop exit
PB: predicated region body
PF: predicated region fallthrough
CT: control target
= control target key end

     0   :  { %v10130_v2 = vmov 0   ;;  %s7783_s21 = smov 16   ;;  %s7784_s26 = smov 17   ;;  %v10126_v6 = vlaneseq  ;;  %vm102_vm2 = vcmask 1043456   ;;  %vm98_vm3 = vcmask 64512   ;;  %s10114_s0 = inlined_call_operand.vmem [shape: f32[8,512], index: 0, kind: input, shape index: {}]   ;;  %s10115_s3 = inlined_call_operand.vmem [shape: f32[8,1], index: 3, kind: input, shape index: {}]   ;;  %s10116_s1 = inlined_call_operand.vmem [shape: f32[9,8,512], index: 1, kind: input, shape index: {}]   ;;  %s10117_s2 = inlined_call_operand.vmem [shape: bf16[9,8,8], index: 2, kind: input, shape index: {}]   ;;  %s10118_s4 = inlined_call_operand.vmem [shape: bf16[9,16,8], index: 4, kind: input, shape index: {}]   ;;  %s10119_s5 = inlined_call_operand.vmem [shape: f32[16,1], index: 5, kind: input, shape index: {}]   ;;  %s10120_s7 = inlined_call_operand.vmem [shape: f32[8,1], index: 7, kind: input, shape index: {}]   ;;  %s10121_s6 = inlined_call_operand.vmem [shape: bf16[9,8,16], index: 6, kind: input, shape index: {}]   ;;  %s10122_s9 = inlined_call_operand.vmem [shape: f32[8,1], index: 9, kind: input, shape index: {}]   ;;  %s10123_s8 = inlined_call_operand.vmem [shape: bf16[9,8,8], index: 8, kind: input, shape index: {}]   ;;  %s10124_s10 = inlined_call_operand.vmem [shape: f32[8,512], index: 10, kind: output, shape index: {0}]   ;;  %s10125_s11 = inlined_call_operand.vmem [shape: f32[8,128], index: 11, kind: output, shape index: {1}]  }
   0x1   :  { %v7855_v0 = vld [vmem:[%s10114_s0 + $0x10] sm:$0xff]  ;;  %v7860_v1 = vld [vmem:[%s10114_s0] sm:$0xff]  ;;  %147 = vmatprep.mubr.bf16.mxu0 %v10130_v2  ;;  %188 = vmatprep.mubr.bf16.mxu1 %v10130_v2  ;;  %v7871_v3 = vld [vmem:[%s10114_s0 + $0x18] sm:$0xff]  ;;  %s7785_s27 = smov 15   ;;  %s7786_s28 = smov 1   ;;  %vm2446_vm10 = vcmask 130048  }
   0x2   :  { %74 = vrot.lane.b32.xlu1 %v7855_v0, %s7783_s21  ;;  %70 = vrot.lane.b32.xlu0 %v7860_v1, %s7783_s21  ;;  %v7876_v4 = vld [vmem:[%s10114_s0 + $0x8] sm:$0xff]  ;;  %s7787_s29 = smov 127   ;;  %s7788_s30 = smov 113   ;;  %v1175_v5 = vld [vmem:[%s10115_s3] sm:$0xff]  ;;  %v7944_v7 = vand.u32 127, %v10126_v6 }
   0x3   :  { %7566 = vset.pattern.permute.xlu0 %v10130_v2  ;;  %7567 = vset.pattern.permute.xlu1 %v10130_v2  ;;  %s7789_s12 = smov 112   ;;  %s7790_s13 = smov 111   ;;  %v7950_v10 = vld [vmem:[%s10116_s1 + $0x28] sm:$0xff]  ;;  %v7955_v11 = vld [vmem:[%s10116_s1 + $0x38] sm:$0xff]  ;;  %v7960_v12 = vld [vmem:[%s10116_s1 + $0x20] sm:$0xff] }
   0x4   :  { %vm78_vm0 = vcmp.lt.s32.totalorder %v7944_v7, 16  ;;  %v7965_v13 = vld [vmem:[%s10116_s1 + $0x30] sm:$0xff]  ;;  %vm52_vm1 = vcmp.lt.s32.totalorder %v7944_v7, 17  ;;  %v7983_v24 = vld [vmem:[%s10116_s1 + $0x8] sm:$0xff]  ;;  %v7995_v35 = vld [vmem:[%s10116_s1] sm:$0xff]  ;;  %vm302_vm4 = vcmp.lt.s32.totalorder %v7944_v7, 15 }
   0x5   :  { %v8000_v36 = vld [vmem:[%s10116_s1 + $0x10] sm:$0xff]  ;;  %v8005_v37 = vld [vmem:[%s10116_s1 + $0x18] sm:$0xff]  ;;  %v7084_v38 = vld [vmem:[%s10117_s2 + $0x4] sm:$0xf]  ;;  %vm431_vm5 = vcmp.lt.s32.totalorder %v7944_v7, 1  ;;  %vm667_vm6 = vcmp.lt.s32.totalorder %v7944_v7, 127 }
   0x6   :  { %76 = vrot.lane.b32.xlu1 %v7871_v3, %s7783_s21  ;;  %72 = vrot.lane.b32.xlu0 %v7876_v4, %s7783_s21  ;;  %v8026_v48 = vld [vmem:[%s10116_s1 + $0x48] sm:$0xff]  ;;  %v8039_v58 = vld [vmem:[%s10116_s1 + $0x40] sm:$0xff]  ;;  %vm796_vm7 = vcmp.lt.s32.totalorder %v7944_v7, 113  ;;  %vm925_vm8 = vcmp.lt.s32.totalorder %v7944_v7, 112  ;;  %vm1054_vm9 = vcmp.lt.s32.totalorder %v7944_v7, 111  ;;  %vm7054_vm14 = vcmp.eq.s32.totalorder %v7944_v7, 0 }
   0x7   :  { %v8044_v59 = vld [vmem:[%s10116_s1 + $0x50] sm:$0xff]  ;;  %v8049_v60 = vld [vmem:[%s10116_s1 + $0x58] sm:$0xff]  ;;  %v65_v61 = vld [vmem:[%s10117_s2] sm:$0xf]  ;;  %vm7059_vm15 = vcmp.eq.s32.totalorder %v7944_v7, 1 }
   0xa   :  { %44 = vrot.lane.b32.xlu1 %v7876_v4, %s7784_s26  ;;  %42 = vrot.lane.b32.xlu0 %v7860_v1, %s7784_s26 }
   0xe   :  { %48 = vrot.lane.b32.xlu1 %v7871_v3, %s7784_s26  ;;  %46 = vrot.lane.b32.xlu0 %v7855_v0, %s7784_s26 }
  0x12   :  { %296 = vrot.lane.b32.xlu1 %v7876_v4, %s7785_s27  ;;  %294 = vrot.lane.b32.xlu0 %v7860_v1, %s7785_s27 }
  0x16   :  { %300 = vrot.lane.b32.xlu1 %v7871_v3, %s7785_s27  ;;  %298 = vrot.lane.b32.xlu0 %v7855_v0, %s7785_s27 }
  0x1a   :  { %425 = vrot.lane.b32.xlu1 %v7876_v4, %s7786_s28  ;;  %423 = vrot.lane.b32.xlu0 %v7860_v1, %s7786_s28 }
  0x1e   :  { %429 = vrot.lane.b32.xlu1 %v7871_v3, %s7786_s28  ;;  %427 = vrot.lane.b32.xlu0 %v7855_v0, %s7786_s28 }
  0x22   :  { %661 = vrot.lane.b32.xlu1 %v7876_v4, %s7787_s29  ;;  %659 = vrot.lane.b32.xlu0 %v7860_v1, %s7787_s29 }
  0x26   :  { %665 = vrot.lane.b32.xlu1 %v7871_v3, %s7787_s29  ;;  %663 = vrot.lane.b32.xlu0 %v7855_v0, %s7787_s29 }
  0x2a   :  { %790 = vrot.lane.b32.xlu1 %v7876_v4, %s7788_s30  ;;  %788 = vrot.lane.b32.xlu0 %v7860_v1, %s7788_s30 }
  0x2e   :  { %794 = vrot.lane.b32.xlu1 %v7871_v3, %s7788_s30  ;;  %792 = vrot.lane.b32.xlu0 %v7855_v0, %s7788_s30 }
  0x32   :  { %919 = vrot.lane.b32.xlu1 %v7876_v4, %s7789_s12  ;;  %917 = vrot.lane.b32.xlu0 %v7860_v1, %s7789_s12 }
  0x36   :  { %923 = vrot.lane.b32.xlu1 %v7871_v3, %s7789_s12  ;;  %921 = vrot.lane.b32.xlu0 %v7855_v0, %s7789_s12 }
  0x3a   :  { %1048 = vrot.lane.b32.xlu1 %v7876_v4, %s7790_s13  ;;  %1046 = vrot.lane.b32.xlu0 %v7860_v1, %s7790_s13 }
  0x3e   :  { %1052 = vrot.lane.b32.xlu1 %v7871_v3, %s7790_s13  ;;  %1050 = vrot.lane.b32.xlu0 %v7855_v0, %s7790_s13 }
  0x42   :  { %1178 = vperm.xlu0 %7566, %v1175_v5  }
  0x74   :  { %v75_v8 = vpop.permute.xlu1 %74  ;;  %v71_v9 = vpop.permute.xlu0 %70 }
  0x78   :  { %v77_v14 = vpop.permute.xlu1 %76  ;;  %v73_v15 = vpop.permute.xlu0 %72 }
  0x79   :  { %v82_v16 = vsel %vm78_vm0, %v77_v14, %v71_v9  ;;  %v80_v17 = vsel %vm78_vm0, %v73_v15, %v75_v8  ;;  %v81_v18 = vsel %vm78_vm0, %v71_v9, %v73_v15  ;;  %v79_v19 = vsel %vm78_vm0, %v75_v8, %v77_v14 }
  0x7a   :  { %v89_v20 = vmul.f32 %v7950_v10, %v81_v18  ;;  %v91_v21 = vmul.f32 %v7955_v11, %v79_v19  ;;  %v88_v22 = vmul.f32 %v7960_v12, %v82_v16  ;;  %v90_v23 = vmul.f32 %v7965_v13, %v80_v17  ;;  %v8070_v18 = vld [vmem:[%s10116_s1 + $0x68] sm:$0xff] }
  0x7c   :  { %v45_v25 = vpop.permute.xlu1 %44  ;;  %v43_v26 = vpop.permute.xlu0 %42  ;;  %v95_v27 = vpack.c.bf16 %v89_v20, %v89_v20  ;;  %v97_v28 = vpack.c.bf16 %v91_v21, %v91_v21  ;;  %v94_v29 = vpack.c.bf16 %v88_v22, %v88_v22  ;;  %v96_v30 = vpack.c.bf16 %v90_v23, %v90_v23 }
  0x7d   :  { %v55_v31 = vsel %vm52_vm1, %v43_v26, %v45_v25 }
  0x7e   :  { %v62_v32 = vmul.f32 %v7983_v24, %v55_v31  ;;  %7085 = vmatprep.subr.msk.bf16.mxu0 %vm102_vm2, %v95_v27  ;;  %7087 = vmatprep.subr.msk.bf16.mxu1 %vm102_vm2, %v97_v28  ;;  %v104_v33 = vsel %vm102_vm2, %v94_v29, 0  ;;  %v110_v34 = vsel %vm102_vm2, %v96_v30, 0  ;;  %v8083_v29 = vld [vmem:[%s10116_s1 + $0x60] sm:$0xff]  ;;  %v8088_v30 = vld [vmem:[%s10116_s1 + $0x70] sm:$0xff]  ;;  %v8093_v31 = vld [vmem:[%s10116_s1 + $0x78] sm:$0xff] }
  0x7f   :  { %116 = vmatpush1.bf16.msra.mxu0 %v104_v33  ;;  %157 = vmatpush1.bf16.msra.mxu1 %v110_v34 }
  0x80   :  { %v67_v39 = vpack.c.bf16 %v62_v32, %v62_v32  ;;  %v49_v40 = vpop.permute.xlu1 %48  ;;  %v47_v41 = vpop.permute.xlu0 %46  ;;  %v7097_v32 = vld [vmem:[%s10117_s2 + $0x8] sm:$0xf] }
  0x81   :  { %v56_v42 = vsel %vm52_vm1, %v49_v40, %v43_v26  ;;  %v53_v43 = vsel %vm52_vm1, %v47_v41, %v49_v40  ;;  %v54_v44 = vsel %vm52_vm1, %v45_v25, %v47_v41 }
  0x82   :  { %v61_v45 = vmul.f32 %v7995_v35, %v56_v42  ;;  %v63_v46 = vmul.f32 %v8000_v36, %v54_v44  ;;  %v64_v47 = vmul.f32 %v8005_v37, %v53_v43  ;;  %7086 = vmatmul.mubr.msk.bf16.vlgmr.msra.gmra.mrb[0].mxu0 %vm98_vm3, %v7084_v38  ;;  %7088 = vmatmul.mubr.msk.bf16.vlgmr.msra.gmra.mrb[0].mxu1 %vm98_vm3, %v7084_v38 }
  0x83   :  { %7089 = vmatprep.subr.msk.bf16.mxu0 %vm102_vm2, %v67_v39  ;;  %244 = vmatprep.mubr.bf16.mxu0 %v10130_v2 }
  0x84   :  { %v66_v49 = vpack.c.bf16 %v61_v45, %v61_v45  ;;  %v68_v50 = vpack.c.bf16 %v63_v46, %v63_v46  ;;  %v69_v51 = vpack.c.bf16 %v64_v47, %v64_v47  ;;  %v297_v52 = vpop.permute.xlu1 %296  ;;  %v295_v53 = vpop.permute.xlu0 %294  ;;  %285 = vmatprep.mubr.bf16.mxu1 %v10130_v2  ;;  %v555_v45 = vpack.c.bf16 %v7876_v4, %v7876_v4 }
  0x85   :  { %v305_v54 = vsel %vm302_vm4, %v295_v53, %v297_v52  ;;  %v557_v46 = vpack.c.bf16 %v7871_v3, %v7871_v3  ;;  %v554_v47 = vpack.c.bf16 %v7860_v1, %v7860_v1  ;;  %v556_v4 = vpack.c.bf16 %v7855_v0, %v7855_v0  ;;  %v8138_v0 = vld [vmem:[%s10116_s1 + $0xb8] sm:$0xff] }
  0x86   :  { %v313_v55 = vmul.f32 %v8026_v48, %v305_v54  ;;  %7091 = vmatprep.subr.msk.bf16.mxu1 %vm102_vm2, %v69_v51  ;;  %v201_v56 = vsel %vm102_vm2, %v66_v49, 0  ;;  %v207_v57 = vsel %vm102_vm2, %v68_v50, 0 }
  0x87   :  { %213 = vmatpush1.bf16.msra.mxu0 %v201_v56  ;;  %254 = vmatpush1.bf16.msra.mxu1 %v207_v57  ;;  %v7106_v56 = vld [vmem:[%s10117_s2 + $0xc] sm:$0xf] }
  0x88   :  { %v319_v62 = vpack.c.bf16 %v313_v55, %v313_v55  ;;  %v301_v63 = vpop.permute.xlu1 %300  ;;  %v299_v5 = vpop.permute.xlu0 %298 }
  0x89   :  { %v306_v8 = vsel %vm302_vm4, %v301_v63, %v295_v53  ;;  %v303_v9 = vsel %vm302_vm4, %v299_v5, %v301_v63  ;;  %v304_v14 = vsel %vm302_vm4, %v297_v52, %v299_v5  ;;  %v8121_v53 = vld [vmem:[%s10116_s1 + $0xa0] sm:$0xff] }
  0x8a   :  { %v312_v15 = vmul.f32 %v8039_v58, %v306_v8  ;;  %v314_v16 = vmul.f32 %v8044_v59, %v304_v14  ;;  %v315_v17 = vmul.f32 %v8049_v60, %v303_v9  ;;  %7090 = vmatmul.mubr.msk.bf16.vlgmr.msra.gmra.mrb[4].mxu0 %vm98_vm3, %v65_v61  ;;  %7092 = vmatmul.mubr.msk.bf16.vlgmr.msra.gmra.mrb[4].mxu1 %vm98_vm3, %v65_v61  ;;  %v8143_v61 = vld [vmem:[%s10116_s1 + $0xa8] sm:$0xff]  ;;  %v562_v8 = vsel %vm102_vm2, %v554_v47, 0 }
  0x8b   :  { %7098 = vmatprep.subr.msk.bf16.mxu0 %vm102_vm2, %v319_v62  ;;  %369 = vmatprep.mubr.bf16.mxu0 %v10130_v2  ;;  %v8148_v62 = vld [vmem:[%s10116_s1 + $0xb0] sm:$0xff]  ;;  %v568_v9 = vsel %vm102_vm2, %v556_v4, 0 }
  0x8c   :  { %v318_v19 = vpack.c.bf16 %v312_v15, %v312_v15  ;;  %v320_v20 = vpack.c.bf16 %v314_v16, %v314_v16  ;;  %v321_v21 = vpack.c.bf16 %v315_v17, %v315_v17  ;;  %v426_v22 = vpop.permute.xlu1 %425  ;;  %v424_v23 = vpop.permute.xlu0 %423  ;;  %410 = vmatprep.mubr.bf16.mxu1 %v10130_v2 }
  0x8d   :  { %v434_v25 = vsel %vm431_vm5, %v424_v23, %v426_v22 }
  0x8e   :  { %v442_v26 = vmul.f32 %v8070_v18, %v434_v25  ;;  %7100 = vmatprep.subr.msk.bf16.mxu1 %vm102_vm2, %v321_v21  ;;  %v326_v27 = vsel %vm102_vm2, %v318_v19, 0  ;;  %v332_v28 = vsel %vm102_vm2, %v320_v20, 0 }
  0x8f   :  { %338 = vmatpush1.bf16.msra.mxu0 %v326_v27  ;;  %379 = vmatpush1.bf16.msra.mxu1 %v332_v28  ;;  %v8169_v27 = vld [vmem:[%s10116_s1 + $0xc0] sm:$0xff] }
  0x90   :  { %v448_v33 = vpack.c.bf16 %v442_v26, %v442_v26  ;;  %v430_v34 = vpop.permute.xlu1 %429  ;;  %v428_v38 = vpop.permute.xlu0 %427 }
  0x91   :  { %v435_v39 = vsel %vm431_vm5, %v430_v34, %v424_v23  ;;  %v432_v40 = vsel %vm431_vm5, %v428_v38, %v430_v34  ;;  %v433_v41 = vsel %vm431_vm5, %v426_v22, %v428_v38  ;;  %v8184_v38 = vld [vmem:[%s10116_s1 + $0xd8] sm:$0xff] }
  0x92   :  { %v441_v42 = vmul.f32 %v8083_v29, %v435_v39  ;;  %v443_v43 = vmul.f32 %v8088_v30, %v433_v41  ;;  %v444_v44 = vmul.f32 %v8093_v31, %v432_v40  ;;  %7099 = vmatmul.mubr.msk.bf16.vlgmr.msra.gmra.mrb[8].mxu0 %vm98_vm3, %v7097_v32  ;;  %7101 = vmatmul.mubr.msk.bf16.vlgmr.msra.gmra.mrb[8].mxu1 %vm98_vm3, %v7097_v32  ;;  %v8189_v39 = vld [vmem:[%s10116_s1 + $0xc8] sm:$0xff]  ;;  %v8194_v40 = vld [vmem:[%s10116_s1 + $0xd0] sm:$0xff] }
  0x93   :  { %7107 = vmatprep.subr.msk.bf16.mxu0 %vm102_vm2, %v448_v33  ;;  %498 = vmatprep.mubr.bf16.mxu0 %v10130_v2  ;;  %v7111_v33 = vld [vmem:[%s10117_s2 + $0x10] sm:$0xf] }
  0x94   :  { %v447_v49 = vpack.c.bf16 %v441_v42, %v441_v42  ;;  %v449_v50 = vpack.c.bf16 %v443_v43, %v443_v43  ;;  %v450_v51 = vpack.c.bf16 %v444_v44, %v444_v44  ;;  %v662_v52 = vpop.permute.xlu1 %661  ;;  %v660_v54 = vpop.permute.xlu0 %659  ;;  %539 = vmatprep.mubr.bf16.mxu1 %v10130_v2 }
  0x95   :  { %v670_v3 = vsel %vm667_vm6, %v660_v54, %v662_v52 }
  0x96   :  { %7109 = vmatprep.subr.msk.bf16.mxu1 %vm102_vm2, %v450_v51  ;;  %v455_v1 = vsel %vm102_vm2, %v447_v49, 0  ;;  %v461_v55 = vsel %vm102_vm2, %v449_v50, 0  ;;  %v677_v57 = vmul.f32 %v8121_v53, %v670_v3 }
  0x97   :  { %467 = vmatpush1.bf16.msra.mxu0 %v455_v1  ;;  %508 = vmatpush1.bf16.msra.mxu1 %v461_v55  ;;  %v8213_v55 = vld [vmem:[%s10116_s1 + $0xe0] sm:$0xff] }
  0x98   :  { %v666_v63 = vpop.permute.xlu1 %665  ;;  %v664_v5 = vpop.permute.xlu0 %663  ;;  %7112 = vmatprep.subr.msk.bf16.mxu0 %vm102_vm2, %v555_v45  ;;  %7114 = vmatprep.subr.msk.bf16.mxu1 %vm102_vm2, %v557_v46  ;;  %v683_v21 = vpack.c.bf16 %v677_v57, %v677_v57 }
  0x99   :  { %v671_v14 = vsel %vm667_vm6, %v666_v63, %v660_v54  ;;  %v668_v15 = vsel %vm667_vm6, %v664_v5, %v666_v63  ;;  %v669_v16 = vsel %vm667_vm6, %v662_v52, %v664_v5  ;;  %v7120_v63 = vld [vmem:[%s10117_s2 + $0x14] sm:$0xf] }
  0x9a   :  { %7108 = vmatmul.mubr.msk.bf16.vlgmr.msra.gmra.mrb[12].mxu0 %vm98_vm3, %v7106_v56  ;;  %7110 = vmatmul.mubr.msk.bf16.vlgmr.msra.gmra.mrb[12].mxu1 %vm98_vm3, %v7106_v56  ;;  %v680_v17 = vmul.f32 %v8138_v0, %v671_v14  ;;  %v678_v19 = vmul.f32 %v8143_v61, %v669_v16  ;;  %v679_v20 = vmul.f32 %v8148_v62, %v668_v15  ;;  %v691_v41 = vsel %vm102_vm2, %v683_v21, 0  ;;  %v8238_v14 = vld [vmem:[%s10116_s1 + $0xf0] sm:$0xff] }
  0x9b   :  { %574 = vmatpush1.bf16.msra.mxu0 %v562_v8  ;;  %615 = vmatpush1.bf16.msra.mxu1 %v568_v9  ;;  %v8228_v8 = vld [vmem:[%s10116_s1 + $0xf8] sm:$0xff]  ;;  %v8233_v9 = vld [vmem:[%s10116_s1 + $0xe8] sm:$0xff] }
  0x9c   :  { %v686_v22 = vpack.c.bf16 %v680_v17, %v680_v17  ;;  %v684_v23 = vpack.c.bf16 %v678_v19, %v678_v19  ;;  %v685_v25 = vpack.c.bf16 %v679_v20, %v679_v20  ;;  %v791_v26 = vpop.permute.xlu1 %790  ;;  %v789_v28 = vpop.permute.xlu0 %788  ;;  %605 = vmatprep.mubr.bf16.mxu0 %v10130_v2  ;;  %646 = vmatprep.mubr.bf16.mxu1 %v10130_v2 }
  0x9d   :  { %v799_v32 = vsel %vm796_vm7, %v789_v28, %v791_v26 }
  0x9e   :  { %7121 = vmatprep.subr.msk.bf16.mxu0 %vm102_vm2, %v684_v23  ;;  %7123 = vmatprep.subr.msk.bf16.mxu1 %vm102_vm2, %v686_v22  ;;  %v806_v34 = vmul.f32 %v8169_v27, %v799_v32  ;;  %v697_v44 = vsel %vm102_vm2, %v685_v25, 0 }
  0xa0   :  { %v795_v42 = vpop.permute.xlu1 %794  ;;  %v793_v43 = vpop.permute.xlu0 %792  ;;  %v812_v52 = vpack.c.bf16 %v806_v34, %v806_v34 }
  0xa1   :  { %v800_v45 = vsel %vm796_vm7, %v795_v42, %v789_v28  ;;  %v797_v46 = vsel %vm796_vm7, %v793_v43, %v795_v42  ;;  %v798_v47 = vsel %vm796_vm7, %v791_v26, %v793_v43  ;;  %v8257_v42 = vld [vmem:[%s10116_s1 + $0x100] sm:$0xff] }
  0xa2   :  { %7113 = vmatmul.mubr.msk.bf16.vlgmr.msra.gmra.mrb[16].mxu0 %vm98_vm3, %v7111_v33  ;;  %7115 = vmatmul.mubr.msk.bf16.vlgmr.msra.gmra.mrb[16].mxu1 %vm98_vm3, %v7111_v33  ;;  %v809_v49 = vmul.f32 %v8184_v38, %v800_v45  ;;  %v807_v50 = vmul.f32 %v8189_v39, %v798_v47  ;;  %v808_v51 = vmul.f32 %v8194_v40, %v797_v46  ;;  %v820_v15 = vsel %vm102_vm2, %v812_v52, 0  ;;  %v7129_v45 = vld [vmem:[%s10117_s2 + $0x18] sm:$0xf] }
  0xa3   :  { %703 = vmatpush1.bf16.msra.mxu0 %v691_v41  ;;  %744 = vmatpush1.bf16.msra.mxu1 %v697_v44  ;;  %v8272_v47 = vld [vmem:[%s10116_s1 + $0x118] sm:$0xff] }
  0xa4   :  { %v815_v54 = vpack.c.bf16 %v809_v49, %v809_v49  ;;  %v813_v4 = vpack.c.bf16 %v807_v50, %v807_v50  ;;  %v814_v3 = vpack.c.bf16 %v808_v51, %v808_v51  ;;  %v920_v1 = vpop.permute.xlu1 %919  ;;  %v918_v56 = vpop.permute.xlu0 %917  ;;  %734 = vmatprep.mubr.bf16.mxu0 %v10130_v2  ;;  %775 = vmatprep.mubr.bf16.mxu1 %v10130_v2  ;;  %v8277_v49 = vld [vmem:[%s10116_s1 + $0x108] sm:$0xff]  ;;  %v8282_v50 = vld [vmem:[%s10116_s1 + $0x110] sm:$0xff] }
  0xa5   :  { %v928_v57 = vsel %vm925_vm8, %v918_v56, %v920_v1 }
  0xa6   :  { %7130 = vmatprep.subr.msk.bf16.mxu0 %vm102_vm2, %v813_v4  ;;  %7132 = vmatprep.subr.msk.bf16.mxu1 %vm102_vm2, %v815_v54  ;;  %v935_v5 = vmul.f32 %v8213_v55, %v928_v57  ;;  %v826_v19 = vsel %vm102_vm2, %v814_v3, 0 }
  0xa8   :  { %v924_v16 = vpop.permute.xlu1 %923  ;;  %v922_v17 = vpop.permute.xlu0 %921  ;;  %v941_v28 = vpack.c.bf16 %v935_v5, %v935_v5 }
  0xa9   :  { %v929_v20 = vsel %vm925_vm8, %v924_v16, %v918_v56  ;;  %v926_v21 = vsel %vm925_vm8, %v922_v17, %v924_v16  ;;  %v927_v22 = vsel %vm925_vm8, %v920_v1, %v922_v17 }
  0xaa   :  { %7122 = vmatmul.mubr.msk.bf16.vlgmr.msra.gmra.mrb[20].mxu0 %vm98_vm3, %v7120_v63  ;;  %7124 = vmatmul.mubr.msk.bf16.vlgmr.msra.gmra.mrb[20].mxu1 %vm98_vm3, %v7120_v63  ;;  %v938_v23 = vmul.f32 %v8228_v8, %v929_v20  ;;  %v936_v25 = vmul.f32 %v8233_v9, %v927_v22  ;;  %v937_v26 = vmul.f32 %v8238_v14, %v926_v21  ;;  %v949_v51 = vsel %vm102_vm2, %v941_v28, 0  ;;  %v7138_v20 = vld [vmem:[%s10117_s2 + $0x1c] sm:$0xf] }
  0xab   :  { %832 = vmatpush1.bf16.msra.mxu0 %v820_v15  ;;  %873 = vmatpush1.bf16.msra.mxu1 %v826_v19 }
  0xac   :  { %v944_v32 = vpack.c.bf16 %v938_v23, %v938_v23  ;;  %v942_v33 = vpack.c.bf16 %v936_v25, %v936_v25  ;;  %v943_v34 = vpack.c.bf16 %v937_v26, %v937_v26  ;;  %v1049_v41 = vpop.permute.xlu1 %1048  ;;  %v1047_v43 = vpop.permute.xlu0 %1046  ;;  %863 = vmatprep.mubr.bf16.mxu0 %v10130_v2  ;;  %904 = vmatprep.mubr.bf16.mxu1 %v10130_v2  ;;  %v7147_v23 = vld [vmem:[%s10117_s2 + $0x20] sm:$0xf] }
  0xad   :  { %v1057_v44 = vsel %vm1054_vm9, %v1047_v43, %v1049_v41 }
  0xae   :  { %7139 = vmatprep.subr.msk.bf16.mxu0 %vm102_vm2, %v942_v33  ;;  %7141 = vmatprep.subr.msk.bf16.mxu1 %vm102_vm2, %v944_v32  ;;  %v1064_v46 = vmul.f32 %v8257_v42, %v1057_v44  ;;  %v955_v4 = vsel %vm102_vm2, %v943_v34, 0 }
  0xb0   :  { %v1053_v52 = vpop.permute.xlu1 %1052  ;;  %v1051_v54 = vpop.permute.xlu0 %1050  ;;  %v1070_v15 = vpack.c.bf16 %v1064_v46, %v1064_v46 }
  0xb1   :  { %v1058_v3 = vsel %vm1054_vm9, %v1053_v52, %v1047_v43  ;;  %v1055_v1 = vsel %vm1054_vm9, %v1051_v54, %v1053_v52  ;;  %v1056_v56 = vsel %vm1054_vm9, %v1049_v41, %v1051_v54 }
  0xb2   :  { %7131 = vmatmul.mubr.msk.bf16.vlgmr.msra.gmra.mrb[24].mxu0 %vm98_vm3, %v7129_v45  ;;  %7133 = vmatmul.mubr.msk.bf16.vlgmr.msra.gmra.mrb[24].mxu1 %vm98_vm3, %v7129_v45  ;;  %v1067_v57 = vmul.f32 %v8272_v47, %v1058_v3  ;;  %v1065_v63 = vmul.f32 %v8277_v49, %v1056_v56  ;;  %v1066_v5 = vmul.f32 %v8282_v50, %v1055_v1  ;;  %v1078_v21 = vsel %vm102_vm2, %v1070_v15, 0 }
  0xb3   :  { %961 = vmatpush1.bf16.msra.mxu0 %v949_v51  ;;  %1002 = vmatpush1.bf16.msra.mxu1 %v955_v4 }
  0xb4   :  { %v1073_v16 = vpack.c.bf16 %v1067_v57, %v1067_v57  ;;  %v1071_v17 = vpack.c.bf16 %v1065_v63, %v1065_v63  ;;  %v1072_v19 = vpack.c.bf16 %v1066_v5, %v1066_v5  ;;  %992 = vmatprep.mubr.bf16.mxu0 %v10130_v2  ;;  %1033 = vmatprep.mubr.bf16.mxu1 %v10130_v2 }
  0xb6   :  { %7148 = vmatprep.subr.msk.bf16.mxu0 %vm102_vm2, %v1071_v17  ;;  %7150 = vmatprep.subr.msk.bf16.mxu1 %vm102_vm2, %v1073_v16  ;;  %v1084_v22 = vsel %vm102_vm2, %v1072_v19, 0 }
  0xba   :  { %7140 = vmatmul.mubr.msk.bf16.vlgmr.msra.gmra.mrb[28].mxu0 %vm98_vm3, %v7138_v20  ;;  %7142 = vmatmul.mubr.msk.bf16.vlgmr.msra.gmra.mrb[28].mxu1 %vm98_vm3, %v7138_v20 }
  0xbb   :  { %1090 = vmatpush1.bf16.msra.mxu0 %v1078_v21  ;;  %1131 = vmatpush1.bf16.msra.mxu1 %v1084_v22 }
  0xbc   :  { %1121 = vmatprep.mubr.bf16.mxu0 %v10130_v2  ;;  %1162 = vmatprep.mubr.bf16.mxu1 %v10130_v2 }
  0xc2   :  { %7149 = vmatmul.mubr.msk.bf16.vlgmr.msra.gmra.mrb[32].mxu0 %vm98_vm3, %v7147_v23  ;;  %7151 = vmatmul.mubr.msk.bf16.vlgmr.msra.gmra.mrb[32].mxu1 %vm98_vm3, %v7147_v23 }
  0xc3   :  { %1286 = vmatprep.mubr.bf16.mxu0 %v10130_v2  ;;  %1329 = vmatprep.mubr.bf16.mxu1 %v10130_v2 }
 0x155   :  { %v149_v25 = vpop.f32.mrb[0].mxu0  ;;  %v190_v26 = vpop.f32.mrb[0].mxu1 }
 0x156   :  { %v151_v28 = vpop.f32.mrb[1].mxu0  ;;  %v192_v32 = vpop.f32.mrb[1].mxu1 }
 0x157   :  { %v153_v33 = vpop.f32.mrb[2].mxu0  ;;  %v194_v34 = vpop.f32.mrb[2].mxu1 }
 0x158   :  { %v154_v41 = vpop.f32.mrb[3].mxu0  ;;  %v195_v43 = vpop.f32.mrb[3].mxu1 }
 0x15d   :  { %v246_v44 = vpop.f32.mrb[4].mxu0  ;;  %v287_v45 = vpop.f32.mrb[4].mxu1 }
 0x15e   :  { %v247_v46 = vadd.f32 %v246_v44, %v149_v25  ;;  %v288_v51 = vadd.f32 %v287_v45, %v190_v26  ;;  %v248_v52 = vpop.f32.mrb[5].mxu0  ;;  %v289_v54 = vpop.f32.mrb[5].mxu1 }
 0x15f   :  { %v249_v4 = vadd.f32 %v248_v52, %v151_v28  ;;  %v290_v3 = vadd.f32 %v289_v54, %v192_v32  ;;  %v250_v1 = vpop.f32.mrb[6].mxu0  ;;  %v291_v56 = vpop.f32.mrb[6].mxu1 }
 0x160   :  { %v251_v57 = vpop.f32.mrb[7].mxu0  ;;  %v292_v63 = vpop.f32.mrb[7].mxu1 }
 0x165   :  { %v371_v5 = vpop.f32.mrb[8].mxu0  ;;  %v412_v15 = vpop.f32.mrb[8].mxu1 }
 0x166   :  { %v419_v16 = vadd.f32 %v371_v5, %v247_v46  ;;  %v421_v17 = vadd.f32 %v412_v15, %v288_v51  ;;  %v373_v19 = vpop.f32.mrb[9].mxu0  ;;  %v414_v20 = vpop.f32.mrb[9].mxu1 }
 0x167   :  { %v420_v21 = vadd.f32 %v373_v19, %v249_v4  ;;  %v422_v22 = vadd.f32 %v414_v20, %v290_v3  ;;  %v375_v23 = vpop.f32.mrb[10].mxu0  ;;  %v416_v33 = vpop.f32.mrb[10].mxu1 }
 0x168   :  { %v376_v25 = vpop.f32.mrb[11].mxu0  ;;  %v417_v26 = vpop.f32.mrb[11].mxu1 }
 0x16d   :  { %v500_v34 = vpop.f32.mrb[12].mxu0  ;;  %v541_v41 = vpop.f32.mrb[12].mxu1 }
 0x16e   :  { %v548_v28 = vadd.f32 %v500_v34, %v419_v16  ;;  %v550_v32 = vadd.f32 %v541_v41, %v421_v17  ;;  %v502_v43 = vpop.f32.mrb[13].mxu0  ;;  %v543_v44 = vpop.f32.mrb[13].mxu1 }
 0x16f   :  { %v549_v45 = vadd.f32 %v502_v43, %v420_v21  ;;  %v551_v52 = vadd.f32 %v543_v44, %v422_v22  ;;  %v504_v54 = vpop.f32.mrb[14].mxu0  ;;  %v545_v1 = vpop.f32.mrb[14].mxu1 }
 0x170   :  { %v505_v46 = vpop.f32.mrb[15].mxu0  ;;  %v546_v51 = vpop.f32.mrb[15].mxu1 }
 0x175   :  { %v607_v56 = vpop.f32.mrb[16].mxu0  ;;  %v648_v57 = vpop.f32.mrb[16].mxu1 }
 0x176   :  { %v655_v4 = vadd.f32 %v607_v56, %v548_v28  ;;  %v657_v3 = vadd.f32 %v648_v57, %v550_v32  ;;  %v609_v63 = vpop.f32.mrb[17].mxu0  ;;  %v650_v5 = vpop.f32.mrb[17].mxu1 }
 0x177   :  { %v656_v15 = vadd.f32 %v609_v63, %v549_v45  ;;  %v658_v19 = vadd.f32 %v650_v5, %v551_v52  ;;  %v611_v20 = vpop.f32.mrb[18].mxu0  ;;  %v652_v23 = vpop.f32.mrb[18].mxu1 }
 0x178   :  { %v612_v16 = vpop.f32.mrb[19].mxu0  ;;  %v653_v17 = vpop.f32.mrb[19].mxu1 }
 0x17d   :  { %v736_v33 = vpop.f32.mrb[20].mxu0  ;;  %v777_v25 = vpop.f32.mrb[20].mxu1 }
 0x17e   :  { %v784_v21 = vadd.f32 %v736_v33, %v655_v4  ;;  %v786_v22 = vadd.f32 %v777_v25, %v657_v3  ;;  %v738_v26 = vpop.f32.mrb[21].mxu0  ;;  %v779_v34 = vpop.f32.mrb[21].mxu1 }
 0x17f   :  { %v785_v41 = vadd.f32 %v738_v26, %v656_v15  ;;  %v787_v43 = vadd.f32 %v779_v34, %v658_v19  ;;  %v740_v44 = vpop.f32.mrb[22].mxu0  ;;  %v781_v54 = vpop.f32.mrb[22].mxu1 }
 0x180   :  { %v741_v28 = vpop.f32.mrb[23].mxu0  ;;  %v782_v32 = vpop.f32.mrb[23].mxu1 }
 0x181   :  { %v1179_v54 = vpop.permute.xlu0 %1178 }
 0x185   :  { %v865_v1 = vpop.f32.mrb[24].mxu0  ;;  %v906_v46 = vpop.f32.mrb[24].mxu1 }
 0x186   :  { %v913_v45 = vadd.f32 %v865_v1, %v784_v21  ;;  %v915_v52 = vadd.f32 %v906_v46, %v786_v22  ;;  %v867_v51 = vpop.f32.mrb[25].mxu0  ;;  %v908_v56 = vpop.f32.mrb[25].mxu1 }
 0x187   :  { %v914_v57 = vadd.f32 %v867_v51, %v785_v41  ;;  %v916_v63 = vadd.f32 %v908_v56, %v787_v43  ;;  %v869_v5 = vpop.f32.mrb[26].mxu0  ;;  %v910_v20 = vpop.f32.mrb[26].mxu1 }
 0x188   :  { %v870_v4 = vpop.f32.mrb[27].mxu0  ;;  %v911_v3 = vpop.f32.mrb[27].mxu1 }
 0x18d   :  { %v994_v23 = vpop.f32.mrb[28].mxu0  ;;  %v1035_v16 = vpop.f32.mrb[28].mxu1 }
 0x18e   :  { %v1042_v15 = vadd.f32 %v994_v23, %v913_v45  ;;  %v1044_v19 = vadd.f32 %v1035_v16, %v915_v52  ;;  %v996_v17 = vpop.f32.mrb[29].mxu0  ;;  %v1037_v33 = vpop.f32.mrb[29].mxu1 }
 0x18f   :  { %v1043_v25 = vadd.f32 %v996_v17, %v914_v57  ;;  %v1045_v26 = vadd.f32 %v1037_v33, %v916_v63  ;;  %v998_v34 = vpop.f32.mrb[30].mxu0  ;;  %v1039_v44 = vpop.f32.mrb[30].mxu1  ;;  %v2389_v17 = vld [vmem:[%s10119_s5] sm:$0xff]  ;;  %v2390_v33 = vld [vmem:[%s10119_s5 + $0x8] sm:$0xff] }
 0x190   :  { %v999_v21 = vpop.f32.mrb[31].mxu0  ;;  %v1040_v22 = vpop.f32.mrb[31].mxu1 }
 0x195   :  { %v1123_v28 = vpop.f32.mrb[32].mxu0  ;;  %v1164_v41 = vpop.f32.mrb[32].mxu1 }
 0x196   :  { %v1171_v43 = vadd.f32 %v1123_v28, %v1042_v15  ;;  %v1173_v32 = vadd.f32 %v1164_v41, %v1044_v19  ;;  %v1125_v1 = vpop.f32.mrb[33].mxu0  ;;  %v1166_v46 = vpop.f32.mrb[33].mxu1 }
 0x197   :  { %v1172_v51 = vadd.f32 %v1125_v1, %v1043_v25  ;;  %v1174_v56 = vadd.f32 %v1166_v46, %v1045_v26  ;;  %v1127_v5 = vpop.f32.mrb[34].mxu0  ;;  %v1168_v45 = vpop.f32.mrb[34].mxu1 }
 0x198   :  { %v1181_v52 = vadd.f32 %v1179_v54, %v1171_v43  ;;  %v1183_v20 = vadd.f32 %v1179_v54, %v1173_v32  ;;  %v1128_v4 = vpop.f32.mrb[35].mxu0  ;;  %v1169_v57 = vpop.f32.mrb[35].mxu1 }
 0x199   :  { %v1182_v63 = vadd.f32 %v1179_v54, %v1172_v51  ;;  %v1184_v16 = vadd.f32 %v1179_v54, %v1174_v56 }
 0x19a   :  { %v8317_v3 = vmax.f32 %v1181_v52, 0.0  ;;  %v8319_v23 = vmax.f32 %v1183_v20, 0.0 }
 0x19b   :  { %v8325_v15 = vmax.f32 %v1182_v63, 0.0  ;;  %v8327_v19 = vmax.f32 %v1184_v16, 0.0  ;;  %v7728_v16 = vld [vmem:[%s10118_s4 + $0x8] sm:$0xff]  }
 0x19c   :  { %1215 = vrot.lane.b32.xlu0 %v8319_v23, %s7783_s21  ;;  %1211 = vrot.lane.b32.xlu1 %v8317_v3, %s7783_s21 }
 0x1a0   :  { %1189 = vrot.lane.b32.xlu0 %v8317_v3, %s7784_s26  ;;  %1213 = vrot.lane.b32.xlu1 %v8325_v15, %s7783_s21 }
 0x1a4   :  { %1193 = vrot.lane.b32.xlu0 %v8319_v23, %s7784_s26  ;;  %1217 = vrot.lane.b32.xlu1 %v8327_v19, %s7783_s21 }
 0x1a8   :  { %1446 = vrot.lane.b32.xlu0 %v8317_v3, %s7785_s27  ;;  %1191 = vrot.lane.b32.xlu1 %v8325_v15, %s7784_s26 }
 0x1ac   :  { %1450 = vrot.lane.b32.xlu0 %v8319_v23, %s7785_s27  ;;  %1195 = vrot.lane.b32.xlu1 %v8327_v19, %s7784_s26 }
 0x1b0   :  { %1583 = vrot.lane.b32.xlu0 %v8317_v3, %s7786_s28  ;;  %1448 = vrot.lane.b32.xlu1 %v8325_v15, %s7785_s27 }
 0x1b4   :  { %1587 = vrot.lane.b32.xlu0 %v8319_v23, %s7786_s28  ;;  %1452 = vrot.lane.b32.xlu1 %v8327_v19, %s7785_s27 }
 0x1b8   :  { %1841 = vrot.lane.b32.xlu0 %v8317_v3, %s7787_s29  ;;  %1585 = vrot.lane.b32.xlu1 %v8325_v15, %s7786_s28 }
 0x1bc   :  { %1845 = vrot.lane.b32.xlu0 %v8319_v23, %s7787_s29  ;;  %1589 = vrot.lane.b32.xlu1 %v8327_v19, %s7786_s28 }
 0x1c0   :  { %1978 = vrot.lane.b32.xlu0 %v8317_v3, %s7788_s30  ;;  %1843 = vrot.lane.b32.xlu1 %v8325_v15, %s7787_s29 }
 0x1c4   :  { %1982 = vrot.lane.b32.xlu0 %v8319_v23, %s7788_s30  ;;  %1847 = vrot.lane.b32.xlu1 %v8327_v19, %s7787_s29 }
 0x1c8   :  { %2115 = vrot.lane.b32.xlu0 %v8317_v3, %s7789_s12  ;;  %1980 = vrot.lane.b32.xlu1 %v8325_v15, %s7788_s30 }
 0x1cc   :  { %2119 = vrot.lane.b32.xlu0 %v8319_v23, %s7789_s12  ;;  %1984 = vrot.lane.b32.xlu1 %v8327_v19, %s7788_s30 }
 0x1d0   :  { %2252 = vrot.lane.b32.xlu0 %v8317_v3, %s7790_s13  ;;  %2117 = vrot.lane.b32.xlu1 %v8325_v15, %s7789_s12 }
 0x1d4   :  { %2256 = vrot.lane.b32.xlu0 %v8319_v23, %s7790_s13  ;;  %2121 = vrot.lane.b32.xlu1 %v8327_v19, %s7789_s12 }
 0x1d8   :  { %2393 = vperm.xlu0 %7566, %v2389_v17   ;;  %2254 = vrot.lane.b32.xlu1 %v8325_v15, %s7790_s13 }
 0x1dc   :  { %2258 = vrot.lane.b32.xlu1 %v8327_v19, %s7790_s13 }
 0x1e0   :  { %2398 = vperm.xlu1 %7567, %v2390_v33  }
 0x20e   :  { %v1216_v25 = vpop.permute.xlu0 %1215  ;;  %v1212_v26 = vpop.permute.xlu1 %1211 }
 0x212   :  { %v1190_v34 = vpop.permute.xlu0 %1189  ;;  %v1214_v44 = vpop.permute.xlu1 %1213 }
 0x213   :  { %v1220_v21 = vsel %vm78_vm0, %v1214_v44, %v1216_v25  ;;  %v1221_v22 = vsel %vm78_vm0, %v1212_v26, %v1214_v44 }
 0x214   :  { %v1224_v54 = vmul.f32 %v7950_v10, %v1221_v22  ;;  %v1225_v28 = vmul.f32 %v7965_v13, %v1220_v21 }
 0x216   :  { %v1231_v41 = vpack.c.bf16 %v1224_v54, %v1224_v54  ;;  %v1194_v43 = vpop.permute.xlu0 %1193  ;;  %v1218_v32 = vpop.permute.xlu1 %1217  ;;  %v1232_v51 = vpack.c.bf16 %v1225_v28, %v1225_v28 }
 0x217   :  { %v1219_v1 = vsel %vm78_vm0, %v1216_v25, %v1218_v32  ;;  %v1222_v46 = vsel %vm78_vm0, %v1218_v32, %v1212_v26 }
 0x218   :  { %v1223_v56 = vmul.f32 %v7960_v12, %v1222_v46  ;;  %v1226_v5 = vmul.f32 %v7955_v11, %v1219_v1  ;;  %7155 = vmatprep.subr.msk.bf16.mxu0 %vm102_vm2, %v1231_v41  ;;  %v1249_v12 = vsel %vm102_vm2, %v1232_v51, 0 }
 0x21a   :  { %v1230_v45 = vpack.c.bf16 %v1223_v56, %v1223_v56  ;;  %v1233_v10 = vpack.c.bf16 %v1226_v5, %v1226_v5  ;;  %v1447_v52 = vpop.permute.xlu0 %1446  ;;  %v1192_v13 = vpop.permute.xlu1 %1191 }
 0x21b   :  { %v1198_v20 = vsel %vm52_vm1, %v1192_v13, %v1194_v43  ;;  %v1199_v4 = vsel %vm52_vm1, %v1190_v34, %v1192_v13 }
 0x21c   :  { %v1202_v57 = vmul.f32 %v1199_v4, %v7983_v24  ;;  %v1203_v63 = vmul.f32 %v1198_v20, %v8000_v36  ;;  %7157 = vmatprep.subr.msk.bf16.mxu1 %vm102_vm2, %v1233_v10  ;;  %v1243_v11 = vsel %vm102_vm2, %v1230_v45, 0 }
 0x21d   :  { %1255 = vmatpush1.bf16.msra.mxu0 %v1243_v11  ;;  %1298 = vmatpush1.bf16.msra.mxu1 %v1249_v12 }
 0x21e   :  { %v1208_v17 = vpack.c.bf16 %v1202_v57, %v1202_v57  ;;  %v1196_v33 = vpop.permute.xlu1 %1195  ;;  %v1209_v36 = vpack.c.bf16 %v1203_v63, %v1203_v63  ;;  %v1451_v26 = vpop.permute.xlu0 %1450 }
 0x21f   :  { %v1197_v25 = vsel %vm52_vm1, %v1194_v43, %v1196_v33  ;;  %v1200_v24 = vsel %vm52_vm1, %v1196_v33, %v1190_v34 }
 0x220   :  { %v1201_v44 = vmul.f32 %v1200_v24, %v7995_v35  ;;  %v1204_v21 = vmul.f32 %v1197_v25, %v8005_v37  ;;  %7156 = vmatmul.mubr.msk.bf16.vlgmr.msra.gmra.mrb[36].mxu0 %vm98_vm3, %v7728_v16  ;;  %7158 = vmatmul.mubr.msk.bf16.vlgmr.msra.gmra.mrb[36].mxu1 %vm98_vm3, %v7728_v16  ;;  %v1355_v43 = vsel %vm102_vm2, %v1209_v36, 0 }
 0x221   :  { %7160 = vmatprep.subr.msk.bf16.mxu0 %vm102_vm2, %v1208_v17  ;;  %1392 = vmatprep.mubr.bf16.mxu0 %v10130_v2 }
 0x222   :  { %v1207_v22 = vpack.c.bf16 %v1201_v44, %v1201_v44  ;;  %v1210_v54 = vpack.c.bf16 %v1204_v21, %v1204_v21  ;;  %v1449_v28 = vpop.permute.xlu1 %1448  ;;  %1435 = vmatprep.mubr.bf16.mxu1 %v10130_v2  ;;  %v1584_v1 = vpop.permute.xlu0 %1583 }
 0x223   :  { %v1455_v34 = vsel %vm302_vm4, %v1449_v28, %v1451_v26  ;;  %v1456_v35 = vsel %vm302_vm4, %v1447_v52, %v1449_v28  ;;  %v1726_v28 = vpack.c.bf16 %v8327_v19, %v8327_v19 }
 0x224   :  { %v1459_v37 = vmul.f32 %v8026_v48, %v1456_v35  ;;  %7162 = vmatprep.subr.msk.bf16.mxu1 %vm102_vm2, %v1210_v54  ;;  %v1349_v41 = vsel %vm102_vm2, %v1207_v22, 0  ;;  %v1460_v32 = vmul.f32 %v8044_v59, %v1455_v34  ;;  %v7729_v59 = vld [vmem:[%s10118_s4] sm:$0xff]   ;;  %v7730_v22 = vld [vmem:[%s10118_s4 + $0x10] sm:$0xff]  }
 0x225   :  { %1361 = vmatpush1.bf16.msra.mxu0 %v1349_v41  ;;  %1404 = vmatpush1.bf16.msra.mxu1 %v1355_v43 }
 0x226   :  { %v1466_v46 = vpack.c.bf16 %v1459_v37, %v1459_v37  ;;  %v1453_v51 = vpop.permute.xlu1 %1452  ;;  %v1467_v10 = vpack.c.bf16 %v1460_v32, %v1460_v32  ;;  %v1588_v63 = vpop.permute.xlu0 %1587  ;;  %v7731_v32 = vld [vmem:[%s10118_s4 + $0x18] sm:$0xff]  }
 0x227   :  { %v1454_v56 = vsel %vm302_vm4, %v1451_v26, %v1453_v51  ;;  %v1457_v5 = vsel %vm302_vm4, %v1453_v51, %v1447_v52 }
 0x228   :  { %v1458_v48 = vmul.f32 %v8039_v58, %v1457_v5  ;;  %v1461_v45 = vmul.f32 %v8049_v60, %v1454_v56  ;;  %7167 = vmatprep.subr.msk.bf16.mxu0 %vm102_vm2, %v1466_v46  ;;  %v1484_v11 = vsel %vm102_vm2, %v1467_v10, 0  ;;  %v1725_v46 = vpack.c.bf16 %v8319_v23, %v8319_v23 }
 0x22a   :  { %v1465_v13 = vpack.c.bf16 %v1458_v48, %v1458_v48  ;;  %v1468_v20 = vpack.c.bf16 %v1461_v45, %v1461_v45  ;;  %v1586_v4 = vpop.permute.xlu1 %1585  ;;  %v1842_v54 = vpop.permute.xlu0 %1841 }
 0x22b   :  { %v1593_v57 = vsel %vm431_vm5, %v1584_v1, %v1586_v4  ;;  %v1592_v60 = vsel %vm431_vm5, %v1586_v4, %v1588_v63 }
 0x22c   :  { %v1596_v52 = vmul.f32 %v8070_v18, %v1593_v57  ;;  %7161 = vmatmul.mubr.msk.bf16.vlgmr.msra.gmra.mrb[36].mxu0 %vm98_vm3, %v7729_v59  ;;  %7163 = vmatmul.mubr.msk.bf16.vlgmr.msra.gmra.mrb[36].mxu1 %vm98_vm3, %v7729_v59  ;;  %v1478_v58 = vsel %vm102_vm2, %v1465_v13, 0  ;;  %v1597_v33 = vmul.f32 %v8088_v30, %v1592_v60 }
 0x22d   :  { %7169 = vmatprep.subr.msk.bf16.mxu1 %vm102_vm2, %v1468_v20  ;;  %1490 = vmatpush1.bf16.msra.mxu0 %v1478_v58 }
 0x22e   :  { %v1603_v12 = vpack.c.bf16 %v1596_v52, %v1596_v52  ;;  %1533 = vmatpush1.bf16.msra.mxu1 %v1484_v11  ;;  %v1590_v16 = vpop.permute.xlu1 %1589  ;;  %1521 = vmatprep.mubr.bf16.mxu0 %v10130_v2  ;;  %v1604_v26 = vpack.c.bf16 %v1597_v33, %v1597_v33  ;;  %v1846_v35 = vpop.permute.xlu0 %1845 }
 0x22f   :  { %v1591_v18 = vsel %vm431_vm5, %v1588_v63, %v1590_v16  ;;  %v1594_v17 = vsel %vm431_vm5, %v1590_v16, %v1584_v1  ;;  %1564 = vmatprep.mubr.bf16.mxu1 %v10130_v2  ;;  %v1723_v1 = vpack.c.bf16 %v8317_v3, %v8317_v3 }
 0x230   :  { %v1595_v25 = vmul.f32 %v8083_v29, %v1594_v17  ;;  %v1598_v24 = vmul.f32 %v8093_v31, %v1591_v18  ;;  %7174 = vmatprep.subr.msk.bf16.mxu0 %vm102_vm2, %v1603_v12  ;;  %v1621_v30 = vsel %vm102_vm2, %v1604_v26, 0  ;;  %v1724_v31 = vpack.c.bf16 %v8325_v15, %v8325_v15 }
 0x232   :  { %v1605_v36 = vpack.c.bf16 %v1598_v24, %v1598_v24  ;;  %v1602_v44 = vpack.c.bf16 %v1595_v25, %v1595_v25  ;;  %v1844_v21 = vpop.permute.xlu1 %1843  ;;  %v1979_v51 = vpop.permute.xlu0 %1978 }
 0x233   :  { %v1850_v37 = vsel %vm667_vm6, %v1844_v21, %v1846_v35  ;;  %v1851_v48 = vsel %vm667_vm6, %v1842_v54, %v1844_v21 }
 0x234   :  { %7176 = vmatprep.subr.msk.bf16.mxu1 %vm102_vm2, %v1605_v36  ;;  %v1615_v29 = vsel %vm102_vm2, %v1602_v44, 0  ;;  %v1854_v19 = vmul.f32 %v8143_v61, %v1850_v37  ;;  %v1742_v61 = vsel %vm102_vm2, %v1725_v46, 0  ;;  %v1853_v45 = vmul.f32 %v8121_v53, %v1851_v48  ;;  %v7732_v53 = vld [vmem:[%s10118_s4 + $0x20] sm:$0xff]  }
 0x236   :  { %v1848_v34 = vpop.permute.xlu1 %1847  ;;  %v1861_v56 = vpack.c.bf16 %v1854_v19, %v1854_v19  ;;  %v1983_v59 = vpop.permute.xlu0 %1982  ;;  %v1860_v4 = vpack.c.bf16 %v1853_v45, %v1853_v45 }
 0x237   :  { %v1852_v15 = vsel %vm667_vm6, %v1848_v34, %v1842_v54  ;;  %v1849_v3 = vsel %vm667_vm6, %v1846_v35, %v1848_v34 }
 0x238   :  { %7168 = vmatmul.mubr.msk.bf16.vlgmr.msra.gmra.mrb[36].mxu0 %vm98_vm3, %v7730_v22  ;;  %7170 = vmatmul.mubr.msk.bf16.vlgmr.msra.gmra.mrb[36].mxu1 %vm98_vm3, %v7730_v22  ;;  %v1856_v41 = vmul.f32 %v8138_v0, %v1852_v15  ;;  %v1736_v0 = vsel %vm102_vm2, %v1723_v1, 0  ;;  %v1855_v10 = vmul.f32 %v8148_v62, %v1849_v3  ;;  %v1873_v12 = vsel %vm102_vm2, %v1860_v4, 0 }
 0x239   :  { %1627 = vmatpush1.bf16.msra.mxu0 %v1615_v29  ;;  %1670 = vmatpush1.bf16.msra.mxu1 %v1621_v30 }
 0x23a   :  { %7181 = vmatprep.subr.msk.bf16.mxu0 %vm102_vm2, %v1724_v31  ;;  %7183 = vmatprep.subr.msk.bf16.mxu1 %vm102_vm2, %v1726_v28  ;;  %v1981_v43 = vpop.permute.xlu1 %1980  ;;  %v1863_v5 = vpack.c.bf16 %v1856_v41, %v1856_v41  ;;  %v1862_v57 = vpack.c.bf16 %v1855_v10, %v1855_v10  ;;  %v2116_v60 = vpop.permute.xlu0 %2115 }
 0x23b   :  { %1658 = vmatprep.mubr.bf16.mxu0 %v10130_v2  ;;  %1701 = vmatprep.mubr.bf16.mxu1 %v10130_v2  ;;  %v1987_v13 = vsel %vm796_vm7, %v1981_v43, %v1983_v59 }
 0x23c   :  { %v1991_v63 = vmul.f32 %v8189_v39, %v1987_v13  ;;  %v1879_v16 = vsel %vm102_vm2, %v1862_v57, 0  ;;  %v1988_v39 = vsel %vm796_vm7, %v1979_v51, %v1981_v43 }
 0x23d   :  { %v1990_v17 = vmul.f32 %v8169_v27, %v1988_v39  ;;  %v7733_v27 = vld [vmem:[%s10118_s4 + $0x28] sm:$0xff]  }
 0x23e   :  { %v1985_v23 = vpop.permute.xlu1 %1984  ;;  %v1998_v11 = vpack.c.bf16 %v1991_v63, %v1991_v63  ;;  %v2120_v33 = vpop.permute.xlu0 %2119 }
 0x23f   :  { %v1989_v20 = vsel %vm796_vm7, %v1985_v23, %v1979_v51  ;;  %v1997_v26 = vpack.c.bf16 %v1990_v17, %v1990_v17  ;;  %v7734_v51 = vld [vmem:[%s10118_s4 + $0x30] sm:$0xff]  }
 0x240   :  { %v1993_v52 = vmul.f32 %v8184_v38, %v1989_v20  ;;  %v1986_v38 = vsel %vm796_vm7, %v1983_v59, %v1985_v23  ;;  %v7735_v23 = vld [vmem:[%s10118_s4 + $0x38] sm:$0xff]  }
 0x241   :  { %v1992_v25 = vmul.f32 %v8194_v40, %v1986_v38  ;;  %v2010_v31 = vsel %vm102_vm2, %v1997_v26, 0 }
 0x242   :  { %v2118_v58 = vpop.permute.xlu1 %2117  ;;  %v2000_v62 = vpack.c.bf16 %v1993_v52, %v1993_v52  ;;  %v2253_v29 = vpop.permute.xlu0 %2252 }
 0x243   :  { %v2124_v24 = vsel %vm925_vm8, %v2118_v58, %v2120_v33  ;;  %v1999_v44 = vpack.c.bf16 %v1992_v25, %v1992_v25 }
 0x244   :  { %7175 = vmatmul.mubr.msk.bf16.vlgmr.msra.gmra.mrb[36].mxu0 %vm98_vm3, %v7731_v32  ;;  %7177 = vmatmul.mubr.msk.bf16.vlgmr.msra.gmra.mrb[36].mxu1 %vm98_vm3, %v7731_v32  ;;  %v2128_v21 = vmul.f32 %v8233_v9, %v2124_v24  ;;  %v2125_v9 = vsel %vm925_vm8, %v2116_v60, %v2118_v58 }
 0x245   :  { %1748 = vmatpush1.bf16.msra.mxu0 %v1736_v0  ;;  %1791 = vmatpush1.bf16.msra.mxu1 %v1742_v61  ;;  %v2016_v28 = vsel %vm102_vm2, %v1999_v44, 0  ;;  %v2127_v35 = vmul.f32 %v8213_v55, %v2125_v9 }
 0x246   :  { %7188 = vmatprep.subr.msk.bf16.mxu0 %vm102_vm2, %v1861_v56  ;;  %7190 = vmatprep.subr.msk.bf16.mxu1 %vm102_vm2, %v1863_v5  ;;  %v2122_v18 = vpop.permute.xlu1 %2121  ;;  %v2135_v30 = vpack.c.bf16 %v2128_v21, %v2128_v21  ;;  %v2257_v37 = vpop.permute.xlu0 %2256 }
 0x247   :  { %1779 = vmatprep.mubr.bf16.mxu0 %v10130_v2  ;;  %1822 = vmatprep.mubr.bf16.mxu1 %v10130_v2  ;;  %v2126_v36 = vsel %vm925_vm8, %v2122_v18, %v2116_v60  ;;  %v2134_v43 = vpack.c.bf16 %v2127_v35, %v2127_v35 }
 0x248   :  { %v2130_v22 = vmul.f32 %v8228_v8, %v2126_v36  ;;  %v2123_v8 = vsel %vm925_vm8, %v2120_v33, %v2122_v18 }
 0x249   :  { %v2129_v15 = vmul.f32 %v8238_v14, %v2123_v8  ;;  %v2147_v14 = vsel %vm102_vm2, %v2134_v43, 0 }
 0x24a   :  { %v2255_v54 = vpop.permute.xlu1 %2254  ;;  %v2137_v40 = vpack.c.bf16 %v2130_v22, %v2130_v22 }
 0x24b   :  { %v2261_v19 = vsel %vm1054_vm9, %v2255_v54, %v2257_v37  ;;  %v2136_v32 = vpack.c.bf16 %v2129_v15, %v2129_v15  ;;  %v2262_v0 = vsel %vm1054_vm9, %v2253_v29, %v2255_v54 }
 0x24c   :  { %v2265_v1 = vmul.f32 %v8277_v49, %v2261_v19  ;;  %v2264_v49 = vmul.f32 %v8257_v42, %v2262_v0  ;;  %v7736_v42 = vld [vmem:[%s10118_s4 + $0x40] sm:$0xff]  }
 0x24d   :  { %v2153_v5 = vsel %vm102_vm2, %v2136_v32, 0 }
 0x24e   :  { %v2259_v34 = vpop.permute.xlu1 %2258  ;;  %v2272_v55 = vpack.c.bf16 %v2265_v1, %v2265_v1  ;;  %v2271_v48 = vpack.c.bf16 %v2264_v49, %v2264_v49 }
 0x24f   :  { %v2263_v41 = vsel %vm1054_vm9, %v2259_v34, %v2253_v29 }
 0x250   :  { %7182 = vmatmul.mubr.msk.bf16.vlgmr.msra.gmra.mrb[36].mxu0 %vm98_vm3, %v7732_v53  ;;  %7184 = vmatmul.mubr.msk.bf16.vlgmr.msra.gmra.mrb[36].mxu1 %vm98_vm3, %v7732_v53  ;;  %v2267_v46 = vmul.f32 %v8272_v47, %v2263_v41  ;;  %v2260_v47 = vsel %vm1054_vm9, %v2257_v37, %v2259_v34  ;;  %v2284_v45 = vsel %vm102_vm2, %v2271_v48, 0 }
 0x251   :  { %1885 = vmatpush1.bf16.msra.mxu0 %v1873_v12  ;;  %1928 = vmatpush1.bf16.msra.mxu1 %v1879_v16  ;;  %v2266_v61 = vmul.f32 %v8282_v50, %v2260_v47 }
 0x252   :  { %7195 = vmatprep.subr.msk.bf16.mxu0 %vm102_vm2, %v1998_v11  ;;  %7197 = vmatprep.subr.msk.bf16.mxu1 %vm102_vm2, %v2000_v62  ;;  %v2274_v56 = vpack.c.bf16 %v2267_v46, %v2267_v46 }
 0x253   :  { %1916 = vmatprep.mubr.bf16.mxu0 %v10130_v2  ;;  %1959 = vmatprep.mubr.bf16.mxu1 %v10130_v2  ;;  %v2273_v3 = vpack.c.bf16 %v2266_v61, %v2266_v61 }
 0x255   :  { %v2290_v59 = vsel %vm102_vm2, %v2273_v3, 0 }
 0x257   :  { %v2394_v50 = vpop.permute.xlu0 %2393 }
 0x25c   :  { %7189 = vmatmul.mubr.msk.bf16.vlgmr.msra.gmra.mrb[36].mxu0 %vm98_vm3, %v7733_v27  ;;  %7191 = vmatmul.mubr.msk.bf16.vlgmr.msra.gmra.mrb[36].mxu1 %vm98_vm3, %v7733_v27 }
 0x25d   :  { %2022 = vmatpush1.bf16.msra.mxu0 %v2010_v31  ;;  %2065 = vmatpush1.bf16.msra.mxu1 %v2016_v28 }
 0x25e   :  { %7202 = vmatprep.subr.msk.bf16.mxu0 %vm102_vm2, %v2135_v30  ;;  %7204 = vmatprep.subr.msk.bf16.mxu1 %vm102_vm2, %v2137_v40  ;;  %v3492_v30 = vld [vmem:[%s10120_s7] sm:$0xff] }
 0x25f   :  { %2053 = vmatprep.mubr.bf16.mxu0 %v10130_v2  ;;  %2096 = vmatprep.mubr.bf16.mxu1 %v10130_v2  ;;  %v2399_v10 = vpop.permute.xlu1 %2398 }
 0x268   :  { %7196 = vmatmul.mubr.msk.bf16.vlgmr.msra.gmra.mrb[36].mxu0 %vm98_vm3, %v7734_v51  ;;  %7198 = vmatmul.mubr.msk.bf16.vlgmr.msra.gmra.mrb[36].mxu1 %vm98_vm3, %v7734_v51 }
 0x269   :  { %2159 = vmatpush1.bf16.msra.mxu0 %v2147_v14  ;;  %2202 = vmatpush1.bf16.msra.mxu1 %v2153_v5 }
 0x26a   :  { %7209 = vmatprep.subr.msk.bf16.mxu0 %vm102_vm2, %v2272_v55  ;;  %7211 = vmatprep.subr.msk.bf16.mxu1 %vm102_vm2, %v2274_v56 }
 0x26b   :  { %2190 = vmatprep.mubr.bf16.mxu0 %v10130_v2  ;;  %2233 = vmatprep.mubr.bf16.mxu1 %v10130_v2 }
 0x274   :  { %7203 = vmatmul.mubr.msk.bf16.vlgmr.msra.gmra.mrb[36].mxu0 %vm98_vm3, %v7735_v23  ;;  %7205 = vmatmul.mubr.msk.bf16.vlgmr.msra.gmra.mrb[36].mxu1 %vm98_vm3, %v7735_v23 }
 0x275   :  { %2296 = vmatpush1.bf16.msra.mxu0 %v2284_v45  ;;  %2339 = vmatpush1.bf16.msra.mxu1 %v2290_v59 }
 0x276   :  { %2327 = vmatprep.mubr.bf16.mxu0 %v10130_v2  ;;  %2370 = vmatprep.mubr.bf16.mxu1 %v10130_v2 }
 0x280   :  { %7210 = vmatmul.mubr.msk.bf16.vlgmr.msra.gmra.mrb[36].mxu0 %vm98_vm3, %v7736_v42  ;;  %7212 = vmatmul.mubr.msk.bf16.vlgmr.msra.gmra.mrb[36].mxu1 %vm98_vm3, %v7736_v42 }
 0x281   :  { %2482 = vmatprep.mubr.bf16.mxu0 %v10130_v2  ;;  %2523 = vmatprep.mubr.bf16.mxu1 %v10130_v2 }
 0x353   :  { %v2329_v13 = vpop.f32.mrb[36].mxu0  ;;  %v2372_v20 = vpop.f32.mrb[36].mxu1 }
 0x354   :  { %v2401_v4 = vadd.f32 %v2394_v50, %v2329_v13  ;;  %v2331_v57 = vpop.f32.mrb[37].mxu0  ;;  %v2374_v63 = vpop.f32.mrb[37].mxu1  ;;  %v2403_v18 = vadd.f32 %v2394_v50, %v2372_v20 }
 0x355   :  { %v2402_v52 = vadd.f32 %v2394_v50, %v2331_v57  ;;  %v2376_v58 = vpop.f32.mrb[38].mxu1  ;;  %v2333_v53 = vpop.f32.mrb[38].mxu0  ;;  %v2404_v25 = vadd.f32 %v2394_v50, %v2374_v63  ;;  %v2441_v50 = vld [vmem:[%s10121_s6] sm:$0xf] }
 0x356   :  { %v2407_v60 = vadd.f32 %v2399_v10, %v2376_v58  ;;  %v2405_v11 = vadd.f32 %v2399_v10, %v2333_v53  ;;  %v2335_v62 = vpop.f32.mrb[39].mxu0  ;;  %v2378_v12 = vpop.f32.mrb[39].mxu1  ;;  %v8598_v38 = vmax.f32 %v2401_v4, 0.0  ;;  %v8614_v22 = vmax.f32 %v2403_v18, 0.0 }
 0x357   :  { %v2406_v16 = vadd.f32 %v2399_v10, %v2335_v62  ;;  %v2408_v39 = vadd.f32 %v2399_v10, %v2378_v12  ;;  %v8602_v33 = vmax.f32 %v2402_v52, 0.0  ;;  %v8617_v54 = vmax.f32 %v2404_v25, 0.0 }
 0x358   :  { %v8600_v17 = vmax.f32 %v2405_v11, 0.0  ;;  %v8606_v36 = vmax.f32 %v2407_v60, 0.0  ;;  %10145 = vst [vmem:[#allocation7_spill] sm:$0xff] %v8614_v22 }
 0x359   :  { %10141 = vst [vmem:[#allocation3_spill] sm:$0xff] %v8602_v33  ;;  %v8604_v24 = vmax.f32 %v2406_v16, 0.0  ;;  %v8610_v44 = vmax.f32 %v2408_v39, 0.0  ;;  %10146 = vst [vmem:[#allocation8_spill] sm:$0xff] %v8617_v54 }
 0x35a   :  { %10140 = vst [vmem:[#allocation2_spill] sm:$0xff] %v8600_v17  ;;  %10143 = vst [vmem:[#allocation5_spill] sm:$0xff] %v8606_v36  ;;  %v7568_v26 = vpack.i.bf16 %v8600_v17, %v8598_v38  ;;  %v7573_v27 = vpack.i.bf16 %v8606_v36, %v8614_v22 }
 0x35b   :  { %10142 = vst [vmem:[#allocation4_spill] sm:$0xff] %v8604_v24  ;;  %10144 = vst [vmem:[#allocation6_spill] sm:$0xff] %v8610_v44  ;;  %v7608_v21 = vpack.i.bf16 %v8604_v24, %v8602_v33  ;;  %v7613_v29 = vpack.i.bf16 %v8610_v44, %v8617_v54 }
 0x35c   :  { %7569 = vrot.lane.b32.xlu0 %v7568_v26, %s7784_s26 }
 0x35d   :  { %7609 = vrot.lane.b32.xlu1 %v7608_v21, %s7784_s26 }
 0x360   :  { %7574 = vrot.lane.b32.xlu0 %v7573_v27, %s7784_s26 }
 0x361   :  { %7614 = vrot.lane.b32.xlu1 %v7613_v29, %s7784_s26 }
 0x364   :  { %7579 = vrot.lane.b32.xlu0 %v7568_v26, %s7783_s21 }
 0x365   :  { %7619 = vrot.lane.b32.xlu1 %v7608_v21, %s7783_s21 }
 0x368   :  { %7584 = vrot.lane.b32.xlu0 %v7573_v27, %s7783_s21 }
 0x369   :  { %7624 = vrot.lane.b32.xlu1 %v7613_v29, %s7783_s21 }
 0x36c   :  { %7589 = vrot.lane.b32.xlu0 %v7568_v26, %s7785_s27 }
 0x36d   :  { %7629 = vrot.lane.b32.xlu1 %v7608_v21, %s7785_s27 }
 0x370   :  { %7594 = vrot.lane.b32.xlu0 %v7573_v27, %s7785_s27 }
 0x371   :  { %7634 = vrot.lane.b32.xlu1 %v7613_v29, %s7785_s27 }
 0x374   :  { %7599 = vrot.lane.b32.xlu0 %v7568_v26, %s7786_s28 }
 0x375   :  { %7639 = vrot.lane.b32.xlu1 %v7608_v21, %s7786_s28 }
 0x378   :  { %7604 = vrot.lane.b32.xlu0 %v7573_v27, %s7786_s28 }
 0x379   :  { %7644 = vrot.lane.b32.xlu1 %v7613_v29, %s7786_s28 }
 0x37c   :  { %7649 = vrot.lane.b32.xlu0 %v7568_v26, %s7787_s29 }
 0x37d   :  { %7689 = vrot.lane.b32.xlu1 %v7608_v21, %s7787_s29 }
 0x380   :  { %7654 = vrot.lane.b32.xlu0 %v7573_v27, %s7787_s29 }
 0x381   :  { %7694 = vrot.lane.b32.xlu1 %v7613_v29, %s7787_s29 }
 0x384   :  { %7659 = vrot.lane.b32.xlu0 %v7568_v26, %s7788_s30 }
 0x385   :  { %7699 = vrot.lane.b32.xlu1 %v7608_v21, %s7788_s30 }
 0x388   :  { %7664 = vrot.lane.b32.xlu0 %v7573_v27, %s7788_s30 }
 0x389   :  { %7704 = vrot.lane.b32.xlu1 %v7613_v29, %s7788_s30 }
 0x38c   :  { %7669 = vrot.lane.b32.xlu0 %v7568_v26, %s7789_s12 }
 0x38d   :  { %7709 = vrot.lane.b32.xlu1 %v7608_v21, %s7789_s12 }
 0x390   :  { %7674 = vrot.lane.b32.xlu0 %v7573_v27, %s7789_s12 }
 0x391   :  { %7714 = vrot.lane.b32.xlu1 %v7613_v29, %s7789_s12 }
 0x394   :  { %7679 = vrot.lane.b32.xlu0 %v7568_v26, %s7790_s13 }
 0x395   :  { %7719 = vrot.lane.b32.xlu1 %v7608_v21, %s7790_s13 }
 0x398   :  { %7684 = vrot.lane.b32.xlu0 %v7573_v27, %s7790_s13 }
 0x399   :  { %7724 = vrot.lane.b32.xlu1 %v7613_v29, %s7790_s13 }
 0x39c   :  { %3495 = vperm.xlu0 %7566, %v3492_v30  }
 0x3ce   :  { %v7570_v40 = vpop.permute.xlu0 %7569 }
 0x3cf   :  { %v7572_v31 = vunpack.i.h.bf16 %v7570_v40  ;;  %v7571_v28 = vunpack.i.l.bf16 %v7570_v40  ;;  %v7610_v9 = vpop.permute.xlu1 %7609 }
 0x3d0   :  { %v7612_v8 = vunpack.i.h.bf16 %v7610_v9  ;;  %v7611_v34 = vunpack.i.l.bf16 %v7610_v9 }
 0x3d2   :  { %v7575_v35 = vpop.permute.xlu0 %7574  ;;  %v2437_v37 = vsel %vm52_vm1, %v7571_v28, %v7611_v34  ;;  %v2438_v15 = vsel %vm52_vm1, %v7572_v31, %v7612_v8 }
 0x3d3   :  { %v7577_v19 = vunpack.i.h.bf16 %v7575_v35  ;;  %v7576_v41 = vunpack.i.l.bf16 %v7575_v35  ;;  %v7615_v43 = vpop.permute.xlu1 %7614  ;;  %v2443_v32 = vpack.c.bf16 %v2438_v15, %v2437_v37 }
 0x3d4   :  { %v7617_v1 = vunpack.i.h.bf16 %v7615_v43  ;;  %v7616_v46 = vunpack.i.l.bf16 %v7615_v43 }
 0x3d5   :  { %v2435_v51 = vsel %vm52_vm1, %v7611_v34, %v7576_v41  ;;  %v2436_v55 = vsel %vm52_vm1, %v7612_v8, %v7577_v19  ;;  %2450 = vmatprep.subr.bf16.mxu0 %v2443_v32 }
 0x3d6   :  { %v2440_v56 = vsel %vm52_vm1, %v7617_v1, %v7572_v31  ;;  %v2439_v14 = vsel %vm52_vm1, %v7616_v46, %v7571_v28  ;;  %v7580_v5 = vpop.permute.xlu0 %7579  ;;  %v2433_v0 = vsel %vm52_vm1, %v7576_v41, %v7616_v46  ;;  %v2434_v47 = vsel %vm52_vm1, %v7577_v19, %v7617_v1  ;;  %v7215_v28 = vld [vmem:[%s10121_s6 + $0x4] sm:$0xf] }
 0x3d7   :  { %v7582_v49 = vunpack.i.h.bf16 %v7580_v5  ;;  %v7581_v61 = vunpack.i.l.bf16 %v7580_v5  ;;  %v7620_v48 = vpop.permute.xlu1 %7619  ;;  %v2442_v3 = vpack.c.bf16 %v2440_v56, %v2439_v14  ;;  %v2445_v23 = vpack.c.bf16 %v2434_v47, %v2433_v0 }
 0x3d8   :  { %v7622_v45 = vunpack.i.h.bf16 %v7620_v48  ;;  %v7621_v59 = vunpack.i.l.bf16 %v7620_v48  ;;  %v2444_v42 = vpack.c.bf16 %v2436_v55, %v2435_v51 }
 0x3d9   :  { %2451 = vmatpush1.bf16.msra.mxu0 %v2442_v3  ;;  %2491 = vmatprep.subr.bf16.mxu1 %v2445_v23 }
 0x3da   :  { %v7585_v10 = vpop.permute.xlu0 %7584  ;;  %2492 = vmatpush1.bf16.msra.mxu1 %v2444_v42  ;;  %v2556_v13 = vsel %vm78_vm0, %v7581_v61, %v7621_v59  ;;  %v2557_v20 = vsel %vm78_vm0, %v7582_v49, %v7622_v45 }
 0x3db   :  { %v7587_v4 = vunpack.i.h.bf16 %v7585_v10  ;;  %v7586_v57 = vunpack.i.l.bf16 %v7585_v10  ;;  %v7625_v63 = vpop.permute.xlu1 %7624  ;;  %v2563_v52 = vpack.c.bf16 %v2557_v20, %v2556_v13 }
 0x3dc   :  { %v7627_v58 = vunpack.i.h.bf16 %v7625_v63  ;;  %v7626_v53 = vunpack.i.l.bf16 %v7625_v63  ;;  %7213 = vmatmul.mubr.msk.bf16.vlgmr.msra.gmra.mrb[40].mxu0 %vm2446_vm10, %v2441_v50 }
 0x3dd   :  { %v2554_v60 = vsel %vm78_vm0, %v7621_v59, %v7586_v57  ;;  %v2555_v11 = vsel %vm78_vm0, %v7622_v45, %v7587_v4  ;;  %7214 = vmatmul.mubr.msk.bf16.vlgmr.msra.gmra.mrb[40].mxu1 %vm2446_vm10, %v2441_v50  ;;  %2569 = vmatprep.subr.bf16.mxu0 %v2563_v52  ;;  %v7218_v45 = vld [vmem:[%s10121_s6 + $0x8] sm:$0xf] }
 0x3de   :  { %v2559_v62 = vsel %vm78_vm0, %v7627_v58, %v7582_v49  ;;  %v2558_v12 = vsel %vm78_vm0, %v7626_v53, %v7581_v61  ;;  %v7590_v16 = vpop.permute.xlu0 %7589  ;;  %v2552_v39 = vsel %vm78_vm0, %v7586_v57, %v7626_v53  ;;  %v2553_v18 = vsel %vm78_vm0, %v7587_v4, %v7627_v58  ;;  %2601 = vmatprep.mubr.bf16.mxu0 %v10130_v2 }
 0x3df   :  { %v7592_v25 = vunpack.i.h.bf16 %v7590_v16  ;;  %v7591_v26 = vunpack.i.l.bf16 %v7590_v16  ;;  %v7630_v21 = vpop.permute.xlu1 %7629  ;;  %v2562_v27 = vpack.c.bf16 %v2559_v62, %v2558_v12  ;;  %v2565_v29 = vpack.c.bf16 %v2553_v18, %v2552_v39  ;;  %2642 = vmatprep.mubr.bf16.mxu1 %v10130_v2 }
 0x3e0   :  { %v7632_v30 = vunpack.i.h.bf16 %v7630_v21  ;;  %v7631_v40 = vunpack.i.l.bf16 %v7630_v21  ;;  %v2564_v31 = vpack.c.bf16 %v2555_v11, %v2554_v60  ;;  %v2910_v21 = vpack.c.bf16 %v8610_v44, %v8617_v54 }
 0x3e1   :  { %2570 = vmatpush1.bf16.msra.mxu0 %v2562_v27  ;;  %2610 = vmatprep.subr.bf16.mxu1 %v2565_v29  ;;  %v7221_v27 = vld [vmem:[%s10121_s6 + $0xc] sm:$0xf] }
 0x3e2   :  { %v7595_v9 = vpop.permute.xlu0 %7594  ;;  %2611 = vmatpush1.bf16.msra.mxu1 %v2564_v31  ;;  %v2679_v8 = vsel %vm302_vm4, %v7591_v26, %v7631_v40  ;;  %v2680_v34 = vsel %vm302_vm4, %v7592_v25, %v7632_v30  ;;  %v2907_v31 = vpack.c.bf16 %v8600_v17, %v8598_v38 }
 0x3e3   :  { %v7597_v35 = vunpack.i.h.bf16 %v7595_v9  ;;  %v7596_v37 = vunpack.i.l.bf16 %v7595_v9  ;;  %v7635_v15 = vpop.permute.xlu1 %7634  ;;  %v2686_v19 = vpack.c.bf16 %v2680_v34, %v2679_v8 }
 0x3e4   :  { %v7637_v41 = vunpack.i.h.bf16 %v7635_v15  ;;  %v7636_v43 = vunpack.i.l.bf16 %v7635_v15  ;;  %7216 = vmatmul.mubr.msk.bf16.vlgmr.msra.gmra.mrb[44].mxu0 %vm2446_vm10, %v7215_v28 }
 0x3e5   :  { %v2677_v32 = vsel %vm302_vm4, %v7631_v40, %v7596_v37  ;;  %v2678_v1 = vsel %vm302_vm4, %v7632_v30, %v7597_v35  ;;  %7217 = vmatmul.mubr.msk.bf16.vlgmr.msra.gmra.mrb[44].mxu1 %vm2446_vm10, %v7215_v28  ;;  %2692 = vmatprep.subr.bf16.mxu0 %v2686_v19  ;;  %v2909_v19 = vpack.c.bf16 %v8606_v36, %v8614_v22 }
 0x3e6   :  { %v2682_v46 = vsel %vm302_vm4, %v7637_v41, %v7592_v25  ;;  %v2681_v51 = vsel %vm302_vm4, %v7636_v43, %v7591_v26  ;;  %v7600_v55 = vpop.permute.xlu0 %7599  ;;  %v2675_v56 = vsel %vm302_vm4, %v7596_v37, %v7636_v43  ;;  %v2676_v14 = vsel %vm302_vm4, %v7597_v35, %v7637_v41  ;;  %2724 = vmatprep.mubr.bf16.mxu0 %v10130_v2 }
 0x3e7   :  { %v7602_v5 = vunpack.i.h.bf16 %v7600_v55  ;;  %v7601_v0 = vunpack.i.l.bf16 %v7600_v55  ;;  %v7640_v47 = vpop.permute.xlu1 %7639  ;;  %v2685_v49 = vpack.c.bf16 %v2682_v46, %v2681_v51  ;;  %v2688_v61 = vpack.c.bf16 %v2676_v14, %v2675_v56  ;;  %2765 = vmatprep.mubr.bf16.mxu1 %v10130_v2 }
 0x3e8   :  { %v7642_v48 = vunpack.i.h.bf16 %v7640_v47  ;;  %v7641_v3 = vunpack.i.l.bf16 %v7640_v47  ;;  %v2687_v23 = vpack.c.bf16 %v2678_v1, %v2677_v32  ;;  %v2908_v26 = vpack.c.bf16 %v8604_v24, %v8602_v33 }
 0x3e9   :  { %2693 = vmatpush1.bf16.msra.mxu0 %v2685_v49  ;;  %2733 = vmatprep.subr.bf16.mxu1 %v2688_v61  ;;  %v7224_v49 = vld [vmem:[%s10121_s6 + $0x10] sm:$0xf] }
 0x3ea   :  { %v7605_v59 = vpop.permute.xlu0 %7604  ;;  %2734 = vmatpush1.bf16.msra.mxu1 %v2687_v23  ;;  %v2802_v42 = vsel %vm431_vm5, %v7601_v0, %v7641_v3  ;;  %v2803_v50 = vsel %vm431_vm5, %v7602_v5, %v7642_v48 }
 0x3eb   :  { %v7607_v10 = vunpack.i.h.bf16 %v7605_v59  ;;  %v7606_v13 = vunpack.i.l.bf16 %v7605_v59  ;;  %v7645_v20 = vpop.permute.xlu1 %7644  ;;  %v2809_v4 = vpack.c.bf16 %v2803_v50, %v2802_v42 }
 0x3ec   :  { %v7647_v57 = vunpack.i.h.bf16 %v7645_v20  ;;  %v7646_v63 = vunpack.i.l.bf16 %v7645_v20  ;;  %7219 = vmatmul.mubr.msk.bf16.vlgmr.msra.gmra.mrb[48].mxu0 %vm2446_vm10, %v7218_v45 }
 0x3ed   :  { %v2800_v52 = vsel %vm431_vm5, %v7641_v3, %v7606_v13  ;;  %v2801_v58 = vsel %vm431_vm5, %v7642_v48, %v7607_v10  ;;  %7220 = vmatmul.mubr.msk.bf16.vlgmr.msra.gmra.mrb[48].mxu1 %vm2446_vm10, %v7218_v45  ;;  %2815 = vmatprep.subr.bf16.mxu0 %v2809_v4 }
 0x3ee   :  { %v2805_v53 = vsel %vm431_vm5, %v7647_v57, %v7602_v5  ;;  %v2804_v60 = vsel %vm431_vm5, %v7646_v63, %v7601_v0  ;;  %v7650_v11 = vpop.permute.xlu0 %7649  ;;  %v2798_v62 = vsel %vm431_vm5, %v7606_v13, %v7646_v63  ;;  %v2799_v12 = vsel %vm431_vm5, %v7607_v10, %v7647_v57  ;;  %2847 = vmatprep.mubr.bf16.mxu0 %v10130_v2 }
 0x3ef   :  { %v7690_v16 = vpop.permute.xlu1 %7689  ;;  %v2808_v39 = vpack.c.bf16 %v2805_v53, %v2804_v60  ;;  %v2811_v18 = vpack.c.bf16 %v2799_v12, %v2798_v62  ;;  %2888 = vmatprep.mubr.bf16.mxu1 %v10130_v2  ;;  %v2810_v25 = vpack.c.bf16 %v2801_v58, %v2800_v52  ;;  %v7652_v29 = vunpack.i.h.bf16 %v7650_v11 }
 0x3f0   :  { %v7651_v30 = vunpack.i.l.bf16 %v7650_v11  ;;  %v7692_v28 = vunpack.i.h.bf16 %v7690_v16  ;;  %v7691_v9 = vunpack.i.l.bf16 %v7690_v16 }
 0x3f1   :  { %2816 = vmatpush1.bf16.msra.mxu0 %v2808_v39  ;;  %2856 = vmatprep.subr.bf16.mxu1 %v2811_v18 }
 0x3f2   :  { %v7655_v40 = vpop.permute.xlu0 %7654  ;;  %2857 = vmatpush1.bf16.msra.mxu1 %v2810_v25  ;;  %2914 = vmatprep.subr.bf16.mxu0 %v2908_v26  ;;  %v3021_v51 = vsel %vm667_vm6, %v7652_v29, %v7692_v28  ;;  %v3020_v55 = vsel %vm667_vm6, %v7651_v30, %v7691_v9  ;;  %v7227_v25 = vld [vmem:[%s10121_s6 + $0x14] sm:$0xf] }
 0x3f3   :  { %v7657_v8 = vunpack.i.h.bf16 %v7655_v40  ;;  %v7656_v34 = vunpack.i.l.bf16 %v7655_v40  ;;  %v7695_v35 = vpop.permute.xlu1 %7694  ;;  %2955 = vmatprep.subr.bf16.mxu1 %v2910_v21  ;;  %v3026_v23 = vpack.c.bf16 %v3021_v51, %v3020_v55 }
 0x3f4   :  { %v7697_v37 = vunpack.i.h.bf16 %v7695_v35  ;;  %v7696_v15 = vunpack.i.l.bf16 %v7695_v35  ;;  %7222 = vmatmul.mubr.msk.bf16.vlgmr.msra.gmra.mrb[52].mxu0 %vm2446_vm10, %v7221_v27 }
 0x3f5   :  { %7223 = vmatmul.mubr.msk.bf16.vlgmr.msra.gmra.mrb[52].mxu1 %vm2446_vm10, %v7221_v27  ;;  %2915 = vmatpush1.bf16.msra.mxu0 %v2907_v31  ;;  %v3018_v41 = vsel %vm667_vm6, %v7691_v9, %v7656_v34  ;;  %v3019_v43 = vsel %vm667_vm6, %v7692_v28, %v7657_v8 }
 0x3f6   :  { %v7660_v32 = vpop.permute.xlu0 %7659  ;;  %2956 = vmatpush1.bf16.msra.mxu1 %v2909_v19  ;;  %v3027_v1 = vpack.c.bf16 %v3019_v43, %v3018_v41  ;;  %v3022_v46 = vsel %vm667_vm6, %v7696_v15, %v7651_v30  ;;  %v3023_v14 = vsel %vm667_vm6, %v7697_v37, %v7652_v29  ;;  %2946 = vmatprep.mubr.bf16.mxu0 %v10130_v2 }
 0x3f7   :  { %v7700_v56 = vpop.permute.xlu1 %7699  ;;  %2987 = vmatprep.mubr.bf16.mxu1 %v10130_v2  ;;  %v3029_v5 = vpack.c.bf16 %v3023_v14, %v3022_v46  ;;  %v3017_v0 = vsel %vm667_vm6, %v7657_v8, %v7697_v37  ;;  %v3016_v47 = vsel %vm667_vm6, %v7656_v34, %v7696_v15  ;;  %v7662_v61 = vunpack.i.h.bf16 %v7660_v32 }
 0x3f8   :  { %3033 = vmatprep.subr.bf16.mxu0 %v3027_v1  ;;  %v7661_v48 = vunpack.i.l.bf16 %v7660_v32  ;;  %v7702_v45 = vunpack.i.h.bf16 %v7700_v56  ;;  %v7701_v59 = vunpack.i.l.bf16 %v7700_v56  ;;  %v3028_v4 = vpack.c.bf16 %v3017_v0, %v3016_v47 }
 0x3f9   :  { %3074 = vmatprep.subr.bf16.mxu1 %v3029_v5  ;;  %v7230_v5 = vld [vmem:[%s10121_s6 + $0x18] sm:$0xf] }
 0x3fa   :  { %v7665_v3 = vpop.permute.xlu0 %7664  ;;  %v3144_v60 = vsel %vm796_vm7, %v7662_v61, %v7702_v45  ;;  %v3143_v11 = vsel %vm796_vm7, %v7661_v48, %v7701_v59 }
 0x3fb   :  { %v7667_v42 = vunpack.i.h.bf16 %v7665_v3  ;;  %v7666_v50 = vunpack.i.l.bf16 %v7665_v3  ;;  %v7705_v10 = vpop.permute.xlu1 %7704  ;;  %v3149_v29 = vpack.c.bf16 %v3144_v60, %v3143_v11 }
 0x3fc   :  { %v7707_v13 = vunpack.i.h.bf16 %v7705_v10  ;;  %v7706_v20 = vunpack.i.l.bf16 %v7705_v10  ;;  %7225 = vmatmul.mubr.msk.bf16.vlgmr.msra.gmra.mrb[56].mxu0 %vm2446_vm10, %v7224_v49 }
 0x3fd   :  { %3034 = vmatpush1.bf16.msra.mxu0 %v3026_v23  ;;  %7226 = vmatmul.mubr.msk.bf16.vlgmr.msra.gmra.mrb[56].mxu1 %vm2446_vm10, %v7224_v49  ;;  %v3141_v57 = vsel %vm796_vm7, %v7701_v59, %v7666_v50  ;;  %v3142_v63 = vsel %vm796_vm7, %v7702_v45, %v7667_v42 }
 0x3fe   :  { %3075 = vmatpush1.bf16.msra.mxu1 %v3028_v4  ;;  %v7670_v52 = vpop.permute.xlu0 %7669  ;;  %v3150_v58 = vpack.c.bf16 %v3142_v63, %v3141_v57  ;;  %v3145_v53 = vsel %vm796_vm7, %v7706_v20, %v7661_v48  ;;  %v3146_v12 = vsel %vm796_vm7, %v7707_v13, %v7662_v61  ;;  %3065 = vmatprep.mubr.bf16.mxu0 %v10130_v2 }
 0x3ff   :  { %v7710_v62 = vpop.permute.xlu1 %7709  ;;  %3106 = vmatprep.mubr.bf16.mxu1 %v10130_v2  ;;  %v3152_v16 = vpack.c.bf16 %v3146_v12, %v3145_v53  ;;  %v3140_v39 = vsel %vm796_vm7, %v7667_v42, %v7707_v13  ;;  %v3139_v18 = vsel %vm796_vm7, %v7666_v50, %v7706_v20  ;;  %v7672_v26 = vunpack.i.h.bf16 %v7670_v52 }
 0x400   :  { %3156 = vmatprep.subr.bf16.mxu0 %v3150_v58  ;;  %v7671_v21 = vunpack.i.l.bf16 %v7670_v52  ;;  %v7712_v30 = vunpack.i.h.bf16 %v7710_v62  ;;  %v7711_v40 = vunpack.i.l.bf16 %v7710_v62  ;;  %v3151_v35 = vpack.c.bf16 %v3140_v39, %v3139_v18  ;;  %v7233_v62 = vld [vmem:[%s10121_s6 + $0x1c] sm:$0xf]  ;;  %v7236_v39 = vld [vmem:[%s10121_s6 + $0x20] sm:$0xf] }
 0x401   :  { %3197 = vmatprep.subr.bf16.mxu1 %v3152_v16 }
 0x402   :  { %v7675_v27 = vpop.permute.xlu0 %7674  ;;  %v3267_v32 = vsel %vm925_vm8, %v7672_v26, %v7712_v30  ;;  %v3266_v1 = vsel %vm925_vm8, %v7671_v21, %v7711_v40 }
 0x403   :  { %v7677_v31 = vunpack.i.h.bf16 %v7675_v27  ;;  %v7676_v28 = vunpack.i.l.bf16 %v7675_v27  ;;  %v7715_v9 = vpop.permute.xlu1 %7714  ;;  %v3272_v49 = vpack.c.bf16 %v3267_v32, %v3266_v1  ;;  %v8883_v32 = vld [vmem:[%s10116_s1 + $0x28] sm:$0xff] }
 0x404   :  { %v7717_v8 = vunpack.i.h.bf16 %v7715_v9  ;;  %v7716_v34 = vunpack.i.l.bf16 %v7715_v9  ;;  %7228 = vmatmul.mubr.msk.bf16.vlgmr.msra.gmra.mrb[60].mxu0 %vm2446_vm10, %v7227_v25 }
 0x405   :  { %3157 = vmatpush1.bf16.msra.mxu0 %v3149_v29  ;;  %7229 = vmatmul.mubr.msk.bf16.vlgmr.msra.gmra.mrb[60].mxu1 %vm2446_vm10, %v7227_v25  ;;  %v3264_v37 = vsel %vm925_vm8, %v7711_v40, %v7676_v28  ;;  %v3265_v15 = vsel %vm925_vm8, %v7712_v30, %v7677_v31 }
 0x406   :  { %3198 = vmatpush1.bf16.msra.mxu1 %v3151_v35  ;;  %v7680_v19 = vpop.permute.xlu0 %7679  ;;  %v3273_v41 = vpack.c.bf16 %v3265_v15, %v3264_v37  ;;  %v3268_v43 = vsel %vm925_vm8, %v7716_v34, %v7671_v21  ;;  %v3269_v51 = vsel %vm925_vm8, %v7717_v8, %v7672_v26  ;;  %3188 = vmatprep.mubr.bf16.mxu0 %v10130_v2  ;;  %v8871_v15 = vld [vmem:[%s10116_s1 + $0x8] sm:$0xff] }
 0x407   :  { %v7720_v46 = vpop.permute.xlu1 %7719  ;;  %3229 = vmatprep.mubr.bf16.mxu1 %v10130_v2  ;;  %v3275_v55 = vpack.c.bf16 %v3269_v51, %v3268_v43  ;;  %v3263_v56 = vsel %vm925_vm8, %v7677_v31, %v7717_v8  ;;  %v3262_v14 = vsel %vm925_vm8, %v7676_v28, %v7716_v34  ;;  %v7682_v0 = vunpack.i.h.bf16 %v7680_v19  ;;  %v8859_v28 = vld [vmem:[%s10116_s1] sm:$0xff] }
 0x408   :  { %3279 = vmatprep.subr.bf16.mxu0 %v3273_v41  ;;  %v7722_v61 = vunpack.i.h.bf16 %v7720_v46  ;;  %v7721_v48 = vunpack.i.l.bf16 %v7720_v46  ;;  %v7681_v59 = vunpack.i.l.bf16 %v7680_v19  ;;  %v3274_v10 = vpack.c.bf16 %v3263_v56, %v3262_v14  ;;  %v8865_v8 = vld [vmem:[%s10116_s1 + $0x20] sm:$0xff]  ;;  %v8877_v41 = vld [vmem:[%s10116_s1 + $0x10] sm:$0xff]  ;;  %v8895_v14 = vld [vmem:[%s10116_s1 + $0x18] sm:$0xff] }
 0x409   :  { %3320 = vmatprep.subr.bf16.mxu1 %v3275_v55  ;;  %v8889_v46 = vld [vmem:[%s10116_s1 + $0x30] sm:$0xff] }
 0x40a   :  { %v7685_v47 = vpop.permute.xlu0 %7684  ;;  %v3390_v52 = vsel %vm1054_vm9, %v7682_v0, %v7722_v61  ;;  %v3389_v58 = vsel %vm1054_vm9, %v7681_v59, %v7721_v48 }
 0x40b   :  { %v7687_v3 = vunpack.i.h.bf16 %v7685_v47  ;;  %v7686_v23 = vunpack.i.l.bf16 %v7685_v47  ;;  %v7725_v45 = vpop.permute.xlu1 %7724  ;;  %v3395_v12 = vpack.c.bf16 %v3390_v52, %v3389_v58  ;;  %v8901_v47 = vld [vmem:[%s10116_s1 + $0x38] sm:$0xff] }
 0x40c   :  { %v7727_v42 = vunpack.i.h.bf16 %v7725_v45  ;;  %v7726_v50 = vunpack.i.l.bf16 %v7725_v45  ;;  %7231 = vmatmul.mubr.msk.bf16.vlgmr.msra.gmra.mrb[64].mxu0 %vm2446_vm10, %v7230_v5 }
 0x40d   :  { %3280 = vmatpush1.bf16.msra.mxu0 %v3272_v49  ;;  %7232 = vmatmul.mubr.msk.bf16.vlgmr.msra.gmra.mrb[64].mxu1 %vm2446_vm10, %v7230_v5  ;;  %v3387_v13 = vsel %vm1054_vm9, %v7721_v48, %v7686_v23  ;;  %v3388_v20 = vsel %vm1054_vm9, %v7722_v61, %v7687_v3 }
 0x40e   :  { %3321 = vmatpush1.bf16.msra.mxu1 %v3274_v10  ;;  %v3396_v4 = vpack.c.bf16 %v3388_v20, %v3387_v13  ;;  %v3391_v57 = vsel %vm1054_vm9, %v7726_v50, %v7681_v59  ;;  %v3392_v63 = vsel %vm1054_vm9, %v7727_v42, %v7682_v0  ;;  %3311 = vmatprep.mubr.bf16.mxu0 %v10130_v2 }
 0x40f   :  { %3352 = vmatprep.mubr.bf16.mxu1 %v10130_v2  ;;  %v3398_v53 = vpack.c.bf16 %v3392_v63, %v3391_v57  ;;  %v3386_v60 = vsel %vm1054_vm9, %v7687_v3, %v7727_v42  ;;  %v3385_v11 = vsel %vm1054_vm9, %v7686_v23, %v7726_v50  ;;  %v8907_v50 = vld [vmem:[%s10116_s1 + $0x40] sm:$0xff]  ;;  %v8919_v63 = vld [vmem:[%s10116_s1 + $0x50] sm:$0xff] }
 0x410   :  { %3402 = vmatprep.subr.bf16.mxu0 %v3396_v4  ;;  %v3397_v16 = vpack.c.bf16 %v3386_v60, %v3385_v11  ;;  %v8913_v4 = vld [vmem:[%s10116_s1 + $0x48] sm:$0xff]  ;;  %v8925_v11 = vld [vmem:[%s10116_s1 + $0x58] sm:$0xff] }
 0x411   :  { %3443 = vmatprep.subr.bf16.mxu1 %v3398_v53 }
 0x414   :  { %7234 = vmatmul.mubr.msk.bf16.vlgmr.msra.gmra.mrb[68].mxu0 %vm2446_vm10, %v7233_v62 }
 0x415   :  { %3403 = vmatpush1.bf16.msra.mxu0 %v3395_v12  ;;  %7235 = vmatmul.mubr.msk.bf16.vlgmr.msra.gmra.mrb[68].mxu1 %vm2446_vm10, %v7233_v62 }
 0x416   :  { %3444 = vmatpush1.bf16.msra.mxu1 %v3397_v16  ;;  %3434 = vmatprep.mubr.bf16.mxu0 %v10130_v2 }
 0x417   :  { %3475 = vmatprep.mubr.bf16.mxu1 %v10130_v2 }
 0x41c   :  { %7237 = vmatmul.mubr.msk.bf16.vlgmr.msra.gmra.mrb[72].mxu0 %vm2446_vm10, %v7236_v39 }
 0x41d   :  { %7238 = vmatmul.mubr.msk.bf16.vlgmr.msra.gmra.mrb[72].mxu1 %vm2446_vm10, %v7236_v39  ;;  %3596 = vmatprep.mubr.bf16.mxu0 %v10130_v2 }
 0x41e   :  { %3637 = vmatprep.mubr.bf16.mxu1 %v10130_v2 }
 0x4af   :  { %v2484_v18 = vpop.f32.mrb[40].mxu0 }
 0x4b0   :  { %v2486_v25 = vpop.f32.mrb[41].mxu0  ;;  %v2525_v26 = vpop.f32.mrb[40].mxu1  ;;  %v2532_v9 = vmul.f32 %v8859_v28, %v2484_v18 }
 0x4b1   :  { %v2488_v21 = vpop.f32.mrb[42].mxu0  ;;  %v2527_v27 = vpop.f32.mrb[41].mxu1  ;;  %v2533_v19 = vmul.f32 %v8871_v15, %v2486_v25  ;;  %v2534_v43 = vmul.f32 %v8877_v41, %v2525_v26 }
 0x4b2   :  { %v2489_v29 = vpop.f32.mrb[43].mxu0  ;;  %v2529_v30 = vpop.f32.mrb[42].mxu1  ;;  %v2535_v5 = vmul.f32 %v8895_v14, %v2527_v27  ;;  %v8931_v27 = vld [vmem:[%s10116_s1 + $0x60] sm:$0xff] }
 0x4b3   :  { %v2530_v40 = vpop.f32.mrb[43].mxu1 }
 0x4b7   :  { %v2603_v31 = vpop.f32.mrb[44].mxu0 }
 0x4b8   :  { %v2651_v34 = vmul.f32 %v8865_v8, %v2603_v31  ;;  %v2605_v35 = vpop.f32.mrb[45].mxu0  ;;  %v2644_v37 = vpop.f32.mrb[44].mxu1  ;;  %v8937_v31 = vld [vmem:[%s10116_s1 + $0x68] sm:$0xff] }
 0x4b9   :  { %v2652_v1 = vmul.f32 %v8883_v32, %v2605_v35  ;;  %v2653_v51 = vmul.f32 %v8889_v46, %v2644_v37  ;;  %v2607_v55 = vpop.f32.mrb[46].mxu0  ;;  %v2646_v56 = vpop.f32.mrb[45].mxu1 }
 0x4ba   :  { %v2655_v0 = vadd.f32 %v2651_v34, %v2532_v9  ;;  %v2654_v49 = vmul.f32 %v8901_v47, %v2646_v56  ;;  %v2608_v61 = vpop.f32.mrb[47].mxu0  ;;  %v2648_v48 = vpop.f32.mrb[46].mxu1  ;;  %v8943_v34 = vld [vmem:[%s10116_s1 + $0x70] sm:$0xff] }
 0x4bb   :  { %v2656_v3 = vadd.f32 %v2652_v1, %v2533_v19  ;;  %v2657_v23 = vadd.f32 %v2653_v51, %v2534_v43  ;;  %v2649_v45 = vpop.f32.mrb[47].mxu1  ;;  %v8949_v43 = vld [vmem:[%s10116_s1 + $0x78] sm:$0xff] }
 0x4bc   :  { %v2658_v59 = vadd.f32 %v2654_v49, %v2535_v5 }
 0x4bf   :  { %v2726_v42 = vpop.f32.mrb[48].mxu0 }
 0x4c0   :  { %v2774_v10 = vmul.f32 %v8907_v50, %v2726_v42  ;;  %v2728_v13 = vpop.f32.mrb[49].mxu0  ;;  %v2767_v20 = vpop.f32.mrb[48].mxu1 }
 0x4c1   :  { %v2775_v57 = vmul.f32 %v8913_v4, %v2728_v13  ;;  %v2776_v52 = vmul.f32 %v8919_v63, %v2767_v20  ;;  %v2730_v58 = vpop.f32.mrb[50].mxu0  ;;  %v2769_v53 = vpop.f32.mrb[49].mxu1 }
 0x4c2   :  { %v2778_v60 = vadd.f32 %v2774_v10, %v2655_v0  ;;  %v2777_v62 = vmul.f32 %v8925_v11, %v2769_v53  ;;  %v2731_v12 = vpop.f32.mrb[51].mxu0  ;;  %v2771_v16 = vpop.f32.mrb[50].mxu1 }
 0x4c3   :  { %v2779_v39 = vadd.f32 %v2775_v57, %v2656_v3  ;;  %v2780_v18 = vadd.f32 %v2776_v52, %v2657_v23  ;;  %v2772_v25 = vpop.f32.mrb[51].mxu1 }
 0x4c4   :  { %v2781_v26 = vadd.f32 %v2777_v62, %v2658_v59  ;;  %v8967_v25 = vld [vmem:[%s10116_s1 + $0xb0] sm:$0xff] }
 0x4c7   :  { %v2849_v21 = vpop.f32.mrb[52].mxu0 }
 0x4c8   :  { %v2897_v29 = vmul.f32 %v8931_v27, %v2849_v21  ;;  %v2851_v30 = vpop.f32.mrb[53].mxu0  ;;  %v2890_v40 = vpop.f32.mrb[52].mxu1 }
 0x4c9   :  { %v2898_v9 = vmul.f32 %v8937_v31, %v2851_v30  ;;  %v2899_v35 = vmul.f32 %v8943_v34, %v2890_v40  ;;  %v2853_v37 = vpop.f32.mrb[54].mxu0  ;;  %v2892_v19 = vpop.f32.mrb[53].mxu1  ;;  %v8973_v40 = vld [vmem:[%s10116_s1 + $0xb8] sm:$0xff] }
 0x4ca   :  { %v2900_v1 = vmul.f32 %v8949_v43, %v2892_v19  ;;  %v2854_v51 = vpop.f32.mrb[55].mxu0  ;;  %v2894_v55 = vpop.f32.mrb[54].mxu1  ;;  %v2901_v56 = vadd.f32 %v2897_v29, %v2778_v60  ;;  %v8955_v60 = vld [vmem:[%s10116_s1 + $0xa0] sm:$0xff] }
 0x4cb   :  { %v2895_v5 = vpop.f32.mrb[55].mxu1  ;;  %v2902_v0 = vadd.f32 %v2898_v9, %v2779_v39  ;;  %v2903_v49 = vadd.f32 %v2899_v35, %v2780_v18  ;;  %v8961_v39 = vld [vmem:[%s10116_s1 + $0xa8] sm:$0xff] }
 0x4cc   :  { %v2904_v61 = vadd.f32 %v2900_v1, %v2781_v26  ;;  %v8979_v5 = vld [vmem:[%s10116_s1 + $0xc0] sm:$0xff] }
 0x4cf   :  { %v2948_v48 = vpop.f32.mrb[56].mxu0 }
 0x4d0   :  { %v2996_v3 = vadd.f32 %v2948_v48, %v2901_v56  ;;  %v2950_v23 = vpop.f32.mrb[57].mxu0  ;;  %v2989_v45 = vpop.f32.mrb[56].mxu1  ;;  %v8985_v48 = vld [vmem:[%s10116_s1 + $0xc8] sm:$0xff] }
 0x4d1   :  { %v2997_v59 = vadd.f32 %v2950_v23, %v2902_v0  ;;  %v2998_v42 = vadd.f32 %v2989_v45, %v2903_v49  ;;  %v2952_v10 = vpop.f32.mrb[58].mxu0  ;;  %v2991_v13 = vpop.f32.mrb[57].mxu1  ;;  %v8991_v23 = vld [vmem:[%s10116_s1 + $0xd0] sm:$0xff] }
 0x4d2   :  { %v2999_v20 = vadd.f32 %v2991_v13, %v2904_v61  ;;  %v2953_v57 = vpop.f32.mrb[59].mxu0  ;;  %v2993_v52 = vpop.f32.mrb[58].mxu1  ;;  %v8997_v13 = vld [vmem:[%s10116_s1 + $0xd8] sm:$0xff] }
 0x4d3   :  { %v2994_v58 = vpop.f32.mrb[59].mxu1 }
 0x4d7   :  { %v3067_v53 = vpop.f32.mrb[60].mxu0 }
 0x4d8   :  { %v3115_v62 = vmul.f32 %v8955_v60, %v3067_v53  ;;  %v3069_v12 = vpop.f32.mrb[61].mxu0  ;;  %v3108_v16 = vpop.f32.mrb[60].mxu1 }
 0x4d9   :  { %v3116_v18 = vmul.f32 %v8961_v39, %v3069_v12  ;;  %v3117_v26 = vmul.f32 %v8967_v25, %v3108_v16  ;;  %v3071_v21 = vpop.f32.mrb[62].mxu0  ;;  %v3110_v29 = vpop.f32.mrb[61].mxu1 }
 0x4da   :  { %v3119_v30 = vadd.f32 %v3115_v62, %v2996_v3  ;;  %v3118_v9 = vmul.f32 %v8973_v40, %v3110_v29  ;;  %v3072_v35 = vpop.f32.mrb[63].mxu0  ;;  %v3112_v37 = vpop.f32.mrb[62].mxu1 }
 0x4db   :  { %v3120_v19 = vadd.f32 %v3116_v18, %v2997_v59  ;;  %v3121_v1 = vadd.f32 %v3117_v26, %v2998_v42  ;;  %v3113_v51 = vpop.f32.mrb[63].mxu1  ;;  %v9003_v18 = vld [vmem:[%s10116_s1 + $0xe0] sm:$0xff]  ;;  %v9015_v35 = vld [vmem:[%s10116_s1 + $0xf0] sm:$0xff] }
 0x4dc   :  { %v3122_v55 = vadd.f32 %v3118_v9, %v2999_v20 }
 0x4df   :  { %v3190_v56 = vpop.f32.mrb[64].mxu0 }
 0x4e0   :  { %v3238_v0 = vmul.f32 %v8979_v5, %v3190_v56  ;;  %v3192_v49 = vpop.f32.mrb[65].mxu0  ;;  %v3231_v61 = vpop.f32.mrb[64].mxu1 }
 0x4e1   :  { %v3239_v3 = vmul.f32 %v8985_v48, %v3192_v49  ;;  %v3240_v45 = vmul.f32 %v8991_v23, %v3231_v61  ;;  %v3194_v59 = vpop.f32.mrb[66].mxu0  ;;  %v3233_v42 = vpop.f32.mrb[65].mxu1 }
 0x4e2   :  { %v3242_v10 = vadd.f32 %v3238_v0, %v3119_v30  ;;  %v3241_v20 = vmul.f32 %v8997_v13, %v3233_v42  ;;  %v3195_v57 = vpop.f32.mrb[67].mxu0  ;;  %v3235_v52 = vpop.f32.mrb[66].mxu1  ;;  %v9009_v30 = vld [vmem:[%s10116_s1 + $0xe8] sm:$0xff] }
 0x4e3   :  { %v3243_v58 = vadd.f32 %v3239_v3, %v3120_v19  ;;  %v3244_v53 = vadd.f32 %v3240_v45, %v3121_v1  ;;  %v3236_v62 = vpop.f32.mrb[67].mxu1 }
 0x4e4   :  { %v3245_v12 = vadd.f32 %v3241_v20, %v3122_v55  ;;  %v9021_v55 = vld [vmem:[%s10116_s1 + $0xf8] sm:$0xff]  ;;  %v9027_v20 = vld [vmem:[%s10116_s1 + $0x100] sm:$0xff]  ;;  %v9033_v62 = vld [vmem:[%s10116_s1 + $0x108] sm:$0xff] }
 0x4e7   :  { %v3313_v16 = vpop.f32.mrb[68].mxu0 }
 0x4e8   :  { %v3361_v26 = vmul.f32 %v9003_v18, %v3313_v16  ;;  %v3315_v21 = vpop.f32.mrb[69].mxu0  ;;  %v3354_v29 = vpop.f32.mrb[68].mxu1 }
 0x4e9   :  { %v3362_v9 = vmul.f32 %v9009_v30, %v3315_v21  ;;  %v3363_v37 = vmul.f32 %v9015_v35, %v3354_v29  ;;  %v3317_v19 = vpop.f32.mrb[70].mxu0  ;;  %v3356_v1 = vpop.f32.mrb[69].mxu1  ;;  %v9045_v29 = vld [vmem:[%s10116_s1 + $0x118] sm:$0xff] }
 0x4ea   :  { %v3365_v51 = vadd.f32 %v3361_v26, %v3242_v10  ;;  %v3364_v56 = vmul.f32 %v9021_v55, %v3356_v1  ;;  %v3318_v0 = vpop.f32.mrb[71].mxu0  ;;  %v3358_v49 = vpop.f32.mrb[70].mxu1 }
 0x4eb   :  { %v3366_v61 = vadd.f32 %v3362_v9, %v3243_v58  ;;  %v3367_v3 = vadd.f32 %v3363_v37, %v3244_v53  ;;  %v3359_v45 = vpop.f32.mrb[71].mxu1  ;;  %v9039_v53 = vld [vmem:[%s10116_s1 + $0x110] sm:$0xff]  ;;  %v3496_v1 = vpop.permute.xlu0 %3495 }
 0x4ec   :  { %v3368_v59 = vadd.f32 %v3364_v56, %v3245_v12 }
 0x4ef   :  { %v3436_v42 = vpop.f32.mrb[72].mxu0 }
 0x4f0   :  { %v3484_v10 = vmul.f32 %v9027_v20, %v3436_v42  ;;  %v3438_v57 = vpop.f32.mrb[73].mxu0  ;;  %v3477_v52 = vpop.f32.mrb[72].mxu1 }
 0x4f1   :  { %v3485_v58 = vmul.f32 %v9033_v62, %v3438_v57  ;;  %v3486_v12 = vmul.f32 %v9039_v53, %v3477_v52  ;;  %v3440_v16 = vpop.f32.mrb[74].mxu0  ;;  %v3479_v26 = vpop.f32.mrb[73].mxu1 }
 0x4f2   :  { %v3488_v21 = vadd.f32 %v3484_v10, %v3365_v51  ;;  %v3487_v9 = vmul.f32 %v9045_v29, %v3479_v26  ;;  %v3441_v37 = vpop.f32.mrb[75].mxu0  ;;  %v3481_v19 = vpop.f32.mrb[74].mxu1 }
 0x4f3   :  { %v3489_v56 = vadd.f32 %v3485_v58, %v3366_v61  ;;  %v3490_v0 = vadd.f32 %v3486_v12, %v3367_v3  ;;  %v3482_v49 = vpop.f32.mrb[75].mxu1  ;;  %v4588_v3 = vld [vmem:[%s10122_s9] sm:$0xff] }
 0x4f4   :  { %v3498_v45 = vadd.f32 %v3496_v1, %v3488_v21  ;;  %v3491_v42 = vadd.f32 %v3487_v9, %v3368_v59 }
 0x4f5   :  { %v3499_v57 = vadd.f32 %v3496_v1, %v3489_v56  ;;  %v3500_v16 = vadd.f32 %v3496_v1, %v3490_v0 }
 0x4f6   :  { %v9048_v52 = vmax.f32 %v3498_v45, 0.0  ;;  %v3501_v10 = vadd.f32 %v3496_v1, %v3491_v42 }
 0x4f7   :  { %v9050_v51 = vmax.f32 %v3499_v57, 0.0  ;;  %v9056_v26 = vmax.f32 %v3500_v16, 0.0 }
 0x4f8   :  { %3527 = vrot.lane.b32.xlu1 %v9048_v52, %s7783_s21  ;;  %v9058_v61 = vmax.f32 %v3501_v10, 0.0 }
 0x4f9   :  { %3529 = vrot.lane.b32.xlu0 %v9050_v51, %s7783_s21 }
 0x4fc   :  { %3531 = vrot.lane.b32.xlu1 %v9056_v26, %s7783_s21 }
 0x4fd   :  { %3533 = vrot.lane.b32.xlu0 %v9058_v61, %s7783_s21 }
 0x500   :  { %3506 = vrot.lane.b32.xlu1 %v9048_v52, %s7784_s26 }
 0x501   :  { %3508 = vrot.lane.b32.xlu0 %v9050_v51, %s7784_s26 }
 0x504   :  { %3510 = vrot.lane.b32.xlu1 %v9056_v26, %s7784_s26 }
 0x505   :  { %3512 = vrot.lane.b32.xlu0 %v9058_v61, %s7784_s26 }
 0x508   :  { %3743 = vrot.lane.b32.xlu1 %v9048_v52, %s7785_s27 }
 0x509   :  { %3745 = vrot.lane.b32.xlu0 %v9050_v51, %s7785_s27 }
 0x50c   :  { %3747 = vrot.lane.b32.xlu1 %v9056_v26, %s7785_s27 }
 0x50d   :  { %3749 = vrot.lane.b32.xlu0 %v9058_v61, %s7785_s27 }
 0x510   :  { %3866 = vrot.lane.b32.xlu1 %v9048_v52, %s7786_s28 }
 0x511   :  { %3868 = vrot.lane.b32.xlu0 %v9050_v51, %s7786_s28 }
 0x514   :  { %3870 = vrot.lane.b32.xlu1 %v9056_v26, %s7786_s28 }
 0x515   :  { %3872 = vrot.lane.b32.xlu0 %v9058_v61, %s7786_s28 }
 0x518   :  { %4096 = vrot.lane.b32.xlu1 %v9048_v52, %s7787_s29 }
 0x519   :  { %4098 = vrot.lane.b32.xlu0 %v9050_v51, %s7787_s29 }
 0x51c   :  { %4100 = vrot.lane.b32.xlu1 %v9056_v26, %s7787_s29 }
 0x51d   :  { %4102 = vrot.lane.b32.xlu0 %v9058_v61, %s7787_s29 }
 0x520   :  { %4219 = vrot.lane.b32.xlu1 %v9048_v52, %s7788_s30 }
 0x521   :  { %4221 = vrot.lane.b32.xlu0 %v9050_v51, %s7788_s30 }
 0x524   :  { %4223 = vrot.lane.b32.xlu1 %v9056_v26, %s7788_s30 }
 0x525   :  { %4225 = vrot.lane.b32.xlu0 %v9058_v61, %s7788_s30 }
 0x528   :  { %4342 = vrot.lane.b32.xlu1 %v9048_v52, %s7789_s12 }
 0x529   :  { %4344 = vrot.lane.b32.xlu0 %v9050_v51, %s7789_s12 }
 0x52c   :  { %4346 = vrot.lane.b32.xlu1 %v9056_v26, %s7789_s12 }
 0x52d   :  { %4348 = vrot.lane.b32.xlu0 %v9058_v61, %s7789_s12 }
 0x530   :  { %4465 = vrot.lane.b32.xlu1 %v9048_v52, %s7790_s13 }
 0x531   :  { %4467 = vrot.lane.b32.xlu0 %v9050_v51, %s7790_s13 }
 0x534   :  { %4469 = vrot.lane.b32.xlu1 %v9056_v26, %s7790_s13 }
 0x535   :  { %4471 = vrot.lane.b32.xlu0 %v9058_v61, %s7790_s13 }
 0x538   :  { %4591 = vperm.xlu1 %7567, %v4588_v3  }
 0x56a   :  { %v3528_v59 = vpop.permute.xlu1 %3527 }
 0x56b   :  { %v3530_v58 = vpop.permute.xlu0 %3529 }
 0x56c   :  { %v3537_v12 = vsel %vm78_vm0, %v3528_v59, %v3530_v58 }
 0x56d   :  { %v3540_v21 = vmul.f32 %v8883_v32, %v3537_v12 }
 0x56e   :  { %v3532_v9 = vpop.permute.xlu1 %3531 }
 0x56f   :  { %v3546_v37 = vpack.c.bf16 %v3540_v21, %v3540_v21  ;;  %v3536_v19 = vsel %vm78_vm0, %v3530_v58, %v3532_v9  ;;  %v3534_v1 = vpop.permute.xlu0 %3533 }
 0x570   :  { %v3541_v56 = vmul.f32 %v8889_v46, %v3536_v19  ;;  %v3535_v0 = vsel %vm78_vm0, %v3532_v9, %v3534_v1  ;;  %v3538_v49 = vsel %vm78_vm0, %v3534_v1, %v3528_v59 }
 0x571   :  { %v3539_v45 = vmul.f32 %v8865_v8, %v3538_v49  ;;  %v3542_v42 = vmul.f32 %v8901_v47, %v3535_v0  ;;  %7240 = vmatprep.subr.msk.bf16.mxu0 %vm102_vm2, %v3546_v37  ;;  %v7239_v47 = vld [vmem:[%s10123_s8 + $0x4] sm:$0xf] }
 0x572   :  { %v3547_v32 = vpack.c.bf16 %v3541_v56, %v3541_v56  ;;  %v3507_v57 = vpop.permute.xlu1 %3506 }
 0x573   :  { %v3545_v16 = vpack.c.bf16 %v3539_v45, %v3539_v45  ;;  %v3548_v10 = vpack.c.bf16 %v3542_v42, %v3542_v42  ;;  %v3509_v3 = vpop.permute.xlu0 %3508 }
 0x574   :  { %v3516_v46 = vsel %vm52_vm1, %v3507_v57, %v3509_v3  ;;  %v3559_v58 = vsel %vm102_vm2, %v3547_v32, 0 }
 0x575   :  { %v3519_v12 = vmul.f32 %v8871_v15, %v3516_v46  ;;  %7242 = vmatprep.subr.msk.bf16.mxu1 %vm102_vm2, %v3548_v10  ;;  %v3553_v8 = vsel %vm102_vm2, %v3545_v16, 0 }
 0x576   :  { %v3511_v59 = vpop.permute.xlu1 %3510  ;;  %3565 = vmatpush1.bf16.msra.mxu0 %v3553_v8  ;;  %3606 = vmatpush1.bf16.msra.mxu1 %v3559_v58 }
 0x577   :  { %v3524_v21 = vpack.c.bf16 %v3519_v12, %v3519_v12  ;;  %v3515_v9 = vsel %vm52_vm1, %v3509_v3, %v3511_v59  ;;  %v3513_v37 = vpop.permute.xlu0 %3512  ;;  %v3522_v3 = vld [vmem:[%s10123_s8] sm:$0xf] }
 0x578   :  { %v3520_v19 = vmul.f32 %v8877_v41, %v3515_v9  ;;  %v3514_v15 = vsel %vm52_vm1, %v3511_v59, %v3513_v37  ;;  %v3517_v1 = vsel %vm52_vm1, %v3513_v37, %v3507_v57 }
 0x579   :  { %v3518_v56 = vmul.f32 %v8859_v28, %v3517_v1  ;;  %v3521_v0 = vmul.f32 %v8895_v14, %v3514_v15  ;;  %7241 = vmatmul.mubr.msk.bf16.vlgmr.msra.gmra.mrb[76].mxu0 %vm98_vm3, %v7239_v47  ;;  %7243 = vmatmul.mubr.msk.bf16.vlgmr.msra.gmra.mrb[76].mxu1 %vm98_vm3, %v7239_v47 }
 0x57a   :  { %v3525_v49 = vpack.c.bf16 %v3520_v19, %v3520_v19  ;;  %7244 = vmatprep.subr.msk.bf16.mxu0 %vm102_vm2, %v3524_v21  ;;  %v3744_v45 = vpop.permute.xlu1 %3743  ;;  %3693 = vmatprep.mubr.bf16.mxu0 %v10130_v2 }
 0x57b   :  { %v3523_v41 = vpack.c.bf16 %v3518_v56, %v3518_v56  ;;  %v3526_v42 = vpack.c.bf16 %v3521_v0, %v3521_v0  ;;  %v3746_v32 = vpop.permute.xlu0 %3745  ;;  %3734 = vmatprep.mubr.bf16.mxu1 %v10130_v2 }
 0x57c   :  { %v3753_v28 = vsel %vm302_vm4, %v3744_v45, %v3746_v32  ;;  %v3656_v14 = vsel %vm102_vm2, %v3525_v49, 0  ;;  %v7248_v49 = vld [vmem:[%s10123_s8 + $0x8] sm:$0xf] }
 0x57d   :  { %v3756_v57 = vmul.f32 %v8913_v4, %v3753_v28  ;;  %7246 = vmatprep.subr.msk.bf16.mxu1 %vm102_vm2, %v3526_v42  ;;  %v3650_v16 = vsel %vm102_vm2, %v3523_v41, 0 }
 0x57e   :  { %v3748_v10 = vpop.permute.xlu1 %3747  ;;  %3662 = vmatpush1.bf16.msra.mxu0 %v3650_v16  ;;  %3703 = vmatpush1.bf16.msra.mxu1 %v3656_v14 }
 0x57f   :  { %v3762_v46 = vpack.c.bf16 %v3756_v57, %v3756_v57  ;;  %v3752_v58 = vsel %vm302_vm4, %v3746_v32, %v3748_v10  ;;  %v3750_v12 = vpop.permute.xlu0 %3749 }
 0x580   :  { %v3757_v8 = vmul.f32 %v8919_v63, %v3752_v58  ;;  %v3751_v4 = vsel %vm302_vm4, %v3748_v10, %v3750_v12  ;;  %v3754_v59 = vsel %vm302_vm4, %v3750_v12, %v3744_v45 }
 0x581   :  { %v3755_v47 = vmul.f32 %v8907_v50, %v3754_v59  ;;  %v3758_v21 = vmul.f32 %v8925_v11, %v3751_v4  ;;  %7245 = vmatmul.mubr.msk.bf16.vlgmr.msra.gmra.mrb[80].mxu0 %vm98_vm3, %v3522_v3  ;;  %7247 = vmatmul.mubr.msk.bf16.vlgmr.msra.gmra.mrb[80].mxu1 %vm98_vm3, %v3522_v3  ;;  %v3994_v4 = vpack.c.bf16 %v9058_v61, %v9058_v61 }
 0x582   :  { %v3763_v9 = vpack.c.bf16 %v3757_v8, %v3757_v8  ;;  %7249 = vmatprep.subr.msk.bf16.mxu0 %vm102_vm2, %v3762_v46  ;;  %v3867_v37 = vpop.permute.xlu1 %3866  ;;  %3812 = vmatprep.mubr.bf16.mxu0 %v10130_v2  ;;  %v3993_v59 = vpack.c.bf16 %v9056_v26, %v9056_v26 }
 0x583   :  { %v3761_v63 = vpack.c.bf16 %v3755_v47, %v3755_v47  ;;  %v3764_v19 = vpack.c.bf16 %v3758_v21, %v3758_v21  ;;  %v3869_v15 = vpop.permute.xlu0 %3868  ;;  %3853 = vmatprep.mubr.bf16.mxu1 %v10130_v2 }
 0x584   :  { %v3876_v50 = vsel %vm431_vm5, %v3867_v37, %v3869_v15  ;;  %v3775_v11 = vsel %vm102_vm2, %v3763_v9, 0 }
 0x585   :  { %v3879_v1 = vmul.f32 %v8937_v31, %v3876_v50  ;;  %7251 = vmatprep.subr.msk.bf16.mxu1 %vm102_vm2, %v3764_v19  ;;  %v3769_v56 = vsel %vm102_vm2, %v3761_v63, 0 }
 0x586   :  { %v3871_v0 = vpop.permute.xlu1 %3870  ;;  %3781 = vmatpush1.bf16.msra.mxu0 %v3769_v56  ;;  %3822 = vmatpush1.bf16.msra.mxu1 %v3775_v11 }
 0x587   :  { %v3885_v45 = vpack.c.bf16 %v3879_v1, %v3879_v1  ;;  %v3875_v41 = vsel %vm431_vm5, %v3869_v15, %v3871_v0  ;;  %v3873_v42 = vpop.permute.xlu0 %3872 }
 0x588   :  { %v3880_v32 = vmul.f32 %v8943_v34, %v3875_v41  ;;  %v3874_v31 = vsel %vm431_vm5, %v3871_v0, %v3873_v42  ;;  %v3877_v28 = vsel %vm431_vm5, %v3873_v42, %v3867_v37 }
 0x589   :  { %v3878_v14 = vmul.f32 %v8931_v27, %v3877_v28  ;;  %v3881_v57 = vmul.f32 %v8949_v43, %v3874_v31  ;;  %7250 = vmatmul.mubr.msk.bf16.vlgmr.msra.gmra.mrb[84].mxu0 %vm98_vm3, %v7248_v49  ;;  %7252 = vmatmul.mubr.msk.bf16.vlgmr.msra.gmra.mrb[84].mxu1 %vm98_vm3, %v7248_v49  ;;  %v3992_v27 = vpack.c.bf16 %v9050_v51, %v9050_v51  ;;  %v7258_v49 = vld [vmem:[%s10123_s8 + $0x10] sm:$0xf] }
 0x58a   :  { %v3886_v16 = vpack.c.bf16 %v3880_v32, %v3880_v32  ;;  %7254 = vmatprep.subr.msk.bf16.mxu0 %vm102_vm2, %v3885_v45  ;;  %v4097_v10 = vpop.permute.xlu1 %4096  ;;  %3935 = vmatprep.mubr.bf16.mxu0 %v10130_v2  ;;  %v3991_v43 = vpack.c.bf16 %v9048_v52, %v9048_v52  ;;  %v7253_v52 = vld [vmem:[%s10123_s8 + $0xc] sm:$0xf] }
 0x58b   :  { %v3884_v34 = vpack.c.bf16 %v3878_v14, %v3878_v14  ;;  %v3887_v3 = vpack.c.bf16 %v3881_v57, %v3881_v57  ;;  %v4099_v46 = vpop.permute.xlu0 %4098  ;;  %3976 = vmatprep.mubr.bf16.mxu1 %v10130_v2 }
 0x58c   :  { %v3898_v58 = vsel %vm102_vm2, %v3886_v16, 0  ;;  %v4106_v12 = vsel %vm667_vm6, %v4097_v10, %v4099_v46  ;;  %v3999_v15 = vsel %vm102_vm2, %v3991_v43, 0 }
 0x58d   :  { %7256 = vmatprep.subr.msk.bf16.mxu1 %vm102_vm2, %v3887_v3  ;;  %v3892_v8 = vsel %vm102_vm2, %v3884_v34, 0  ;;  %v4108_v61 = vmul.f32 %v8955_v60, %v4106_v12  ;;  %v4005_v60 = vsel %vm102_vm2, %v3993_v59, 0 }
 0x58e   :  { %v4101_v47 = vpop.permute.xlu1 %4100  ;;  %3904 = vmatpush1.bf16.msra.mxu0 %v3892_v8  ;;  %3945 = vmatpush1.bf16.msra.mxu1 %v3898_v58 }
 0x58f   :  { %v4105_v51 = vsel %vm667_vm6, %v4099_v46, %v4101_v47  ;;  %7261 = vmatprep.subr.msk.bf16.mxu1 %vm102_vm2, %v3994_v4  ;;  %v4103_v21 = vpop.permute.xlu0 %4102  ;;  %7259 = vmatprep.subr.msk.bf16.mxu0 %vm102_vm2, %v3992_v27  ;;  %v7263_v27 = vld [vmem:[%s10123_s8 + $0x14] sm:$0xf] }
 0x590   :  { %v4109_v9 = vmul.f32 %v8961_v39, %v4105_v51  ;;  %v4104_v26 = vsel %vm667_vm6, %v4101_v47, %v4103_v21  ;;  %v4107_v37 = vsel %vm667_vm6, %v4103_v21, %v4097_v10 }
 0x591   :  { %v4110_v63 = vmul.f32 %v8967_v25, %v4104_v26  ;;  %v4111_v19 = vmul.f32 %v8973_v40, %v4107_v37  ;;  %7255 = vmatmul.mubr.msk.bf16.vlgmr.msra.gmra.mrb[88].mxu0 %vm98_vm3, %v7253_v52  ;;  %7257 = vmatmul.mubr.msk.bf16.vlgmr.msra.gmra.mrb[88].mxu1 %vm98_vm3, %v7253_v52  ;;  %v4114_v25 = vpack.c.bf16 %v4108_v61, %v4108_v61 }
 0x592   :  { %v4115_v50 = vpack.c.bf16 %v4109_v9, %v4109_v9  ;;  %v4220_v39 = vpop.permute.xlu1 %4219  ;;  %4011 = vmatpush1.bf16.msra.mxu0 %v3999_v15  ;;  %4052 = vmatpush1.bf16.msra.mxu1 %v4005_v60 }
 0x593   :  { %v4117_v11 = vpack.c.bf16 %v4111_v19, %v4111_v19  ;;  %v4222_v1 = vpop.permute.xlu0 %4221  ;;  %4042 = vmatprep.mubr.bf16.mxu0 %v10130_v2  ;;  %4083 = vmatprep.mubr.bf16.mxu1 %v10130_v2  ;;  %v4116_v40 = vpack.c.bf16 %v4110_v63, %v4110_v63  ;;  %v4122_v28 = vsel %vm102_vm2, %v4114_v25, 0  ;;  %v7268_v19 = vld [vmem:[%s10123_s8 + $0x18] sm:$0xf] }
 0x594   :  { %7264 = vmatprep.subr.msk.bf16.mxu0 %vm102_vm2, %v4115_v50  ;;  %v4229_v56 = vsel %vm796_vm7, %v4220_v39, %v4222_v1 }
 0x595   :  { %7266 = vmatprep.subr.msk.bf16.mxu1 %vm102_vm2, %v4117_v11  ;;  %v4231_v14 = vmul.f32 %v8979_v5, %v4229_v56 }
 0x596   :  { %v4224_v0 = vpop.permute.xlu1 %4223 }
 0x597   :  { %v4228_v45 = vsel %vm796_vm7, %v4222_v1, %v4224_v0  ;;  %v4226_v41 = vpop.permute.xlu0 %4225  ;;  %v4237_v5 = vpack.c.bf16 %v4231_v14, %v4231_v14 }
 0x598   :  { %v4232_v42 = vmul.f32 %v8985_v48, %v4228_v45  ;;  %v4227_v32 = vsel %vm796_vm7, %v4224_v0, %v4226_v41  ;;  %v4230_v31 = vsel %vm796_vm7, %v4226_v41, %v4220_v39  ;;  %v4128_v48 = vsel %vm102_vm2, %v4116_v40, 0 }
 0x599   :  { %v4233_v57 = vmul.f32 %v8991_v23, %v4227_v32  ;;  %v4234_v16 = vmul.f32 %v8997_v13, %v4230_v31  ;;  %7260 = vmatmul.mubr.msk.bf16.vlgmr.msra.gmra.mrb[92].mxu0 %vm98_vm3, %v7258_v49  ;;  %7262 = vmatmul.mubr.msk.bf16.vlgmr.msra.gmra.mrb[92].mxu1 %vm98_vm3, %v7258_v49  ;;  %v4245_v21 = vsel %vm102_vm2, %v4237_v5, 0 }
 0x59a   :  { %v4238_v10 = vpack.c.bf16 %v4232_v42, %v4232_v42  ;;  %4134 = vmatpush1.bf16.msra.mxu0 %v4122_v28  ;;  %4175 = vmatpush1.bf16.msra.mxu1 %v4128_v48  ;;  %v4343_v34 = vpop.permute.xlu1 %4342  ;;  %v7278_v42 = vld [vmem:[%s10123_s8 + $0x20] sm:$0xf] }
 0x59b   :  { %v4240_v3 = vpack.c.bf16 %v4234_v16, %v4234_v16  ;;  %v4345_v46 = vpop.permute.xlu0 %4344  ;;  %4165 = vmatprep.mubr.bf16.mxu0 %v10130_v2  ;;  %4206 = vmatprep.mubr.bf16.mxu1 %v10130_v2  ;;  %v4239_v23 = vpack.c.bf16 %v4233_v57, %v4233_v57 }
 0x59c   :  { %7269 = vmatprep.subr.msk.bf16.mxu0 %vm102_vm2, %v4238_v10  ;;  %v4352_v13 = vsel %vm925_vm8, %v4343_v34, %v4345_v46 }
 0x59d   :  { %7271 = vmatprep.subr.msk.bf16.mxu1 %vm102_vm2, %v4240_v3  ;;  %v4354_v8 = vmul.f32 %v9003_v18, %v4352_v13  ;;  %v4251_v18 = vsel %vm102_vm2, %v4239_v23, 0 }
 0x59e   :  { %v4347_v58 = vpop.permute.xlu1 %4346 }
 0x59f   :  { %v4351_v43 = vsel %vm925_vm8, %v4345_v46, %v4347_v58  ;;  %v4349_v12 = vpop.permute.xlu0 %4348 }
 0x5a0   :  { %v4355_v4 = vmul.f32 %v9009_v30, %v4351_v43  ;;  %v4350_v59 = vsel %vm925_vm8, %v4347_v58, %v4349_v12  ;;  %v4353_v47 = vsel %vm925_vm8, %v4349_v12, %v4343_v34 }
 0x5a1   :  { %v4356_v52 = vmul.f32 %v9015_v35, %v4350_v59  ;;  %v4357_v51 = vmul.f32 %v9021_v55, %v4353_v47  ;;  %7265 = vmatmul.mubr.msk.bf16.vlgmr.msra.gmra.mrb[96].mxu0 %vm98_vm3, %v7263_v27  ;;  %7267 = vmatmul.mubr.msk.bf16.vlgmr.msra.gmra.mrb[96].mxu1 %vm98_vm3, %v7263_v27  ;;  %v4360_v35 = vpack.c.bf16 %v4354_v8, %v4354_v8 }
 0x5a2   :  { %v4361_v61 = vpack.c.bf16 %v4355_v4, %v4355_v4  ;;  %4257 = vmatpush1.bf16.msra.mxu0 %v4245_v21  ;;  %4298 = vmatpush1.bf16.msra.mxu1 %v4251_v18  ;;  %v4466_v30 = vpop.permute.xlu1 %4465 }
 0x5a3   :  { %v4363_v9 = vpack.c.bf16 %v4357_v51, %v4357_v51  ;;  %v4468_v26 = vpop.permute.xlu0 %4467  ;;  %4288 = vmatprep.mubr.bf16.mxu0 %v10130_v2  ;;  %4329 = vmatprep.mubr.bf16.mxu1 %v10130_v2  ;;  %v4362_v55 = vpack.c.bf16 %v4356_v52, %v4356_v52  ;;  %v4368_v1 = vsel %vm102_vm2, %v4360_v35, 0 }
 0x5a4   :  { %7274 = vmatprep.subr.msk.bf16.mxu0 %vm102_vm2, %v4361_v61  ;;  %v4475_v37 = vsel %vm1054_vm9, %v4466_v30, %v4468_v26 }
 0x5a5   :  { %7276 = vmatprep.subr.msk.bf16.mxu1 %vm102_vm2, %v4363_v9  ;;  %v4477_v25 = vmul.f32 %v9027_v20, %v4475_v37 }
 0x5a6   :  { %v4470_v63 = vpop.permute.xlu1 %4469 }
 0x5a7   :  { %v4474_v15 = vsel %vm1054_vm9, %v4468_v26, %v4470_v63  ;;  %v4472_v60 = vpop.permute.xlu0 %4471  ;;  %v4483_v20 = vpack.c.bf16 %v4477_v25, %v4477_v25 }
 0x5a8   :  { %v4478_v50 = vmul.f32 %v9033_v62, %v4474_v15  ;;  %v4473_v39 = vsel %vm1054_vm9, %v4470_v63, %v4472_v60  ;;  %v4476_v11 = vsel %vm1054_vm9, %v4472_v60, %v4466_v30  ;;  %v4374_v62 = vsel %vm102_vm2, %v4362_v55, 0 }
 0x5a9   :  { %v4479_v40 = vmul.f32 %v9039_v53, %v4473_v39  ;;  %v4480_v56 = vmul.f32 %v9045_v29, %v4476_v11  ;;  %7270 = vmatmul.mubr.msk.bf16.vlgmr.msra.gmra.mrb[100].mxu0 %vm98_vm3, %v7268_v19  ;;  %7272 = vmatmul.mubr.msk.bf16.vlgmr.msra.gmra.mrb[100].mxu1 %vm98_vm3, %v7268_v19  ;;  %v7273_v29 = vld [vmem:[%s10123_s8 + $0x1c] sm:$0xf]  ;;  %v4491_v45 = vsel %vm102_vm2, %v4483_v20, 0 }
 0x5aa   :  { %v4484_v0 = vpack.c.bf16 %v4478_v50, %v4478_v50  ;;  %4380 = vmatpush1.bf16.msra.mxu0 %v4368_v1  ;;  %4421 = vmatpush1.bf16.msra.mxu1 %v4374_v62 }
 0x5ab   :  { %v4486_v49 = vpack.c.bf16 %v4480_v56, %v4480_v56  ;;  %4411 = vmatprep.mubr.bf16.mxu0 %v10130_v2  ;;  %4452 = vmatprep.mubr.bf16.mxu1 %v10130_v2  ;;  %v4485_v53 = vpack.c.bf16 %v4479_v40, %v4479_v40 }
 0x5ac   :  { %7279 = vmatprep.subr.msk.bf16.mxu0 %vm102_vm2, %v4484_v0 }
 0x5ad   :  { %7281 = vmatprep.subr.msk.bf16.mxu1 %vm102_vm2, %v4486_v49  ;;  %v4497_v41 = vsel %vm102_vm2, %v4485_v53, 0 }
 0x5b1   :  { %7275 = vmatmul.mubr.msk.bf16.vlgmr.msra.gmra.mrb[104].mxu0 %vm98_vm3, %v7273_v29  ;;  %7277 = vmatmul.mubr.msk.bf16.vlgmr.msra.gmra.mrb[104].mxu1 %vm98_vm3, %v7273_v29 }
 0x5b2   :  { %4503 = vmatpush1.bf16.msra.mxu0 %v4491_v45  ;;  %4544 = vmatpush1.bf16.msra.mxu1 %v4497_v41 }
 0x5b3   :  { %4534 = vmatprep.mubr.bf16.mxu0 %v10130_v2  ;;  %4575 = vmatprep.mubr.bf16.mxu1 %v10130_v2 }
 0x5b9   :  { %7280 = vmatmul.mubr.msk.bf16.vlgmr.msra.gmra.mrb[108].mxu0 %vm98_vm3, %v7278_v42  ;;  %7282 = vmatmul.mubr.msk.bf16.vlgmr.msra.gmra.mrb[108].mxu1 %vm98_vm3, %v7278_v42 }
 0x5ba   :  { %4703 = vmatprep.mubr.bf16.mxu0 %v10130_v2  ;;  %4744 = vmatprep.mubr.bf16.mxu1 %v10130_v2 }
 0x64c   :  { %v3598_v32 = vpop.f32.mrb[76].mxu0  ;;  %v3639_v31 = vpop.f32.mrb[76].mxu1 }
 0x64d   :  { %v3600_v28 = vpop.f32.mrb[77].mxu0  ;;  %v3641_v14 = vpop.f32.mrb[77].mxu1 }
 0x64e   :  { %v3602_v57 = vpop.f32.mrb[78].mxu0  ;;  %v3643_v16 = vpop.f32.mrb[78].mxu1 }
 0x64f   :  { %v3603_v48 = vpop.f32.mrb[79].mxu0  ;;  %v3644_v10 = vpop.f32.mrb[79].mxu1 }
 0x654   :  { %v3695_v34 = vpop.f32.mrb[80].mxu0  ;;  %v3736_v3 = vpop.f32.mrb[80].mxu1 }
 0x655   :  { %v3696_v46 = vadd.f32 %v3695_v34, %v3598_v32  ;;  %v3737_v5 = vadd.f32 %v3736_v3, %v3639_v31  ;;  %v3697_v23 = vpop.f32.mrb[81].mxu0  ;;  %v3738_v13 = vpop.f32.mrb[81].mxu1 }
 0x656   :  { %v3698_v58 = vadd.f32 %v3697_v23, %v3600_v28  ;;  %v3739_v27 = vadd.f32 %v3738_v13, %v3641_v14  ;;  %v3699_v43 = vpop.f32.mrb[82].mxu0  ;;  %v3740_v12 = vpop.f32.mrb[82].mxu1 }
 0x657   :  { %v3700_v8 = vpop.f32.mrb[83].mxu0  ;;  %v3741_v4 = vpop.f32.mrb[83].mxu1 }
 0x65c   :  { %v3814_v59 = vpop.f32.mrb[84].mxu0  ;;  %v3855_v47 = vpop.f32.mrb[84].mxu1 }
 0x65d   :  { %v3862_v52 = vadd.f32 %v3814_v59, %v3696_v46  ;;  %v3864_v51 = vadd.f32 %v3855_v47, %v3737_v5  ;;  %v3816_v21 = vpop.f32.mrb[85].mxu0  ;;  %v3857_v18 = vpop.f32.mrb[85].mxu1 }
 0x65e   :  { %v3863_v61 = vadd.f32 %v3816_v21, %v3698_v58  ;;  %v3865_v30 = vadd.f32 %v3857_v18, %v3739_v27  ;;  %v3818_v9 = vpop.f32.mrb[86].mxu0  ;;  %v3859_v26 = vpop.f32.mrb[86].mxu1 }
 0x65f   :  { %v3819_v35 = vpop.f32.mrb[87].mxu0  ;;  %v3860_v55 = vpop.f32.mrb[87].mxu1 }
 0x664   :  { %v3937_v37 = vpop.f32.mrb[88].mxu0  ;;  %v3978_v63 = vpop.f32.mrb[88].mxu1 }
 0x665   :  { %v3985_v19 = vadd.f32 %v3937_v37, %v3862_v52  ;;  %v3987_v15 = vadd.f32 %v3978_v63, %v3864_v51  ;;  %v3939_v60 = vpop.f32.mrb[89].mxu0  ;;  %v3980_v50 = vpop.f32.mrb[89].mxu1 }
 0x666   :  { %v3986_v39 = vadd.f32 %v3939_v60, %v3863_v61  ;;  %v3988_v11 = vadd.f32 %v3980_v50, %v3865_v30  ;;  %v3941_v1 = vpop.f32.mrb[90].mxu0  ;;  %v3982_v25 = vpop.f32.mrb[90].mxu1 }
 0x667   :  { %v3942_v40 = vpop.f32.mrb[91].mxu0  ;;  %v3983_v56 = vpop.f32.mrb[91].mxu1 }
 0x66c   :  { %v4044_v62 = vpop.f32.mrb[92].mxu0  ;;  %v4085_v0 = vpop.f32.mrb[92].mxu1 }
 0x66d   :  { %v4092_v49 = vadd.f32 %v4044_v62, %v3985_v19  ;;  %v4094_v20 = vadd.f32 %v4085_v0, %v3987_v15  ;;  %v4046_v53 = vpop.f32.mrb[93].mxu0  ;;  %v4087_v29 = vpop.f32.mrb[93].mxu1 }
 0x66e   :  { %v4093_v45 = vadd.f32 %v4046_v53, %v3986_v39  ;;  %v4095_v41 = vadd.f32 %v4087_v29, %v3988_v11  ;;  %v4048_v42 = vpop.f32.mrb[94].mxu0  ;;  %v4089_v32 = vpop.f32.mrb[94].mxu1 }
 0x66f   :  { %v4049_v31 = vpop.f32.mrb[95].mxu0  ;;  %v4090_v28 = vpop.f32.mrb[95].mxu1 }
 0x670   :  { %v4592_v11 = vpop.permute.xlu1 %4591 }
 0x674   :  { %v4167_v14 = vpop.f32.mrb[96].mxu0  ;;  %v4208_v57 = vpop.f32.mrb[96].mxu1 }
 0x675   :  { %v4215_v16 = vadd.f32 %v4167_v14, %v4092_v49  ;;  %v4217_v48 = vadd.f32 %v4208_v57, %v4094_v20  ;;  %v4169_v10 = vpop.f32.mrb[97].mxu0  ;;  %v4210_v34 = vpop.f32.mrb[97].mxu1  ;;  %v7778_v14 = vld [vmem:[%s10114_s0] sm:$0xff] }
 0x676   :  { %v4216_v3 = vadd.f32 %v4169_v10, %v4093_v45  ;;  %v4218_v46 = vadd.f32 %v4210_v34, %v4095_v41  ;;  %v4171_v5 = vpop.f32.mrb[98].mxu0  ;;  %v4212_v23 = vpop.f32.mrb[98].mxu1 }
 0x677   :  { %v4172_v13 = vpop.f32.mrb[99].mxu0  ;;  %v4213_v58 = vpop.f32.mrb[99].mxu1  ;;  %v7780_v5 = vld [vmem:[%s10114_s0 + $0x10] sm:$0xff] }
 0x678   :  { %v7781_v13 = vld [vmem:[%s10114_s0 + $0x18] sm:$0xff] }
 0x67c   :  { %v4290_v27 = vpop.f32.mrb[100].mxu0  ;;  %v4331_v43 = vpop.f32.mrb[100].mxu1 }
 0x67d   :  { %v4338_v12 = vadd.f32 %v4290_v27, %v4215_v16  ;;  %v4340_v8 = vadd.f32 %v4331_v43, %v4217_v48  ;;  %v4292_v4 = vpop.f32.mrb[101].mxu0  ;;  %v4333_v59 = vpop.f32.mrb[101].mxu1  ;;  %v7779_v48 = vld [vmem:[%s10114_s0 + $0x8] sm:$0xff] }
 0x67e   :  { %v4339_v47 = vadd.f32 %v4292_v4, %v4216_v3  ;;  %v4341_v52 = vadd.f32 %v4333_v59, %v4218_v46  ;;  %v4294_v51 = vpop.f32.mrb[102].mxu0  ;;  %v4335_v21 = vpop.f32.mrb[102].mxu1  ;;  %v9430_v59 = vld [vmem:[%s10116_s1 + $0x28] sm:$0xff] }
 0x67f   :  { %v4295_v18 = vpop.f32.mrb[103].mxu0  ;;  %v4336_v61 = vpop.f32.mrb[103].mxu1 }
 0x680   :  { %v9439_v18 = vld [vmem:[%s10116_s1 + $0x30] sm:$0xff] }
 0x684   :  { %v4413_v30 = vpop.f32.mrb[104].mxu0  ;;  %v4454_v9 = vpop.f32.mrb[104].mxu1 }
 0x685   :  { %v4461_v26 = vadd.f32 %v4413_v30, %v4338_v12  ;;  %v4463_v35 = vadd.f32 %v4454_v9, %v4340_v8  ;;  %v4415_v55 = vpop.f32.mrb[105].mxu0  ;;  %v4456_v37 = vpop.f32.mrb[105].mxu1  ;;  %v5712_v8 = vld [vmem:[%s10115_s3] sm:$0xff]  ;;  %v9449_v9 = vld [vmem:[%s10116_s1 + $0x38] sm:$0xff] }
 0x686   :  { %v4462_v63 = vadd.f32 %v4415_v55, %v4339_v47  ;;  %v4464_v19 = vadd.f32 %v4456_v37, %v4341_v52  ;;  %v4417_v15 = vpop.f32.mrb[106].mxu0  ;;  %v4458_v60 = vpop.f32.mrb[106].mxu1  ;;  %v9444_v30 = vld [vmem:[%s10116_s1 + $0x20] sm:$0xff] }
 0x687   :  { %v4418_v50 = vpop.f32.mrb[107].mxu0  ;;  %v4459_v39 = vpop.f32.mrb[107].mxu1 }
 0x68c   :  { %v4536_v1 = vpop.f32.mrb[108].mxu0  ;;  %v4577_v25 = vpop.f32.mrb[108].mxu1 }
 0x68d   :  { %v4584_v40 = vadd.f32 %v4536_v1, %v4461_v26  ;;  %v4586_v56 = vadd.f32 %v4577_v25, %v4463_v35  ;;  %v4538_v62 = vpop.f32.mrb[109].mxu0  ;;  %v4579_v0 = vpop.f32.mrb[109].mxu1 }
 0x68e   :  { %v4585_v49 = vadd.f32 %v4538_v62, %v4462_v63  ;;  %v4587_v20 = vadd.f32 %v4579_v0, %v4464_v19  ;;  %v4540_v53 = vpop.f32.mrb[110].mxu0  ;;  %v4581_v29 = vpop.f32.mrb[110].mxu1 }
 0x68f   :  { %v4594_v45 = vadd.f32 %v4592_v11, %v4584_v40  ;;  %v4596_v41 = vadd.f32 %v4592_v11, %v4586_v56  ;;  %v4541_v42 = vpop.f32.mrb[111].mxu0  ;;  %v4582_v32 = vpop.f32.mrb[111].mxu1  ;;  %v9468_v56 = vld [vmem:[%s10116_s1 + $0x8] sm:$0xff] }
 0x690   :  { %v4595_v31 = vadd.f32 %v4592_v11, %v4585_v49  ;;  %v4597_v28 = vadd.f32 %v4592_v11, %v4587_v20 }
 0x691   :  { %4598 = vst [vmem:[%s10124_s10] sm:$0xff] %v4594_v45  ;;  %v9332_v57 = vsub.f32 %v7778_v14, %v4594_v45  ;;  %v6978_v16 = vmul.f32 %v4594_v45, %v4594_v45  ;;  %4600 = vst [vmem:[%s10124_s10 + $0x10] sm:$0xff] %v4596_v41  ;;  %v6980_v3 = vmul.f32 %v4596_v41, %v4596_v41  ;;  %v9482_v14 = vld [vmem:[%s10116_s1 + $0x10] sm:$0xff] }
 0x692   :  { %4599 = vst [vmem:[%s10124_s10 + $0x8] sm:$0xff] %v4595_v31  ;;  %v9343_v10 = vsub.f32 %v7779_v48, %v4595_v31  ;;  %v6979_v34 = vmul.f32 %v4595_v31, %v4595_v31  ;;  %4601 = vst [vmem:[%s10124_s10 + $0x18] sm:$0xff] %v4597_v28  ;;  %v9355_v23 = vsub.f32 %v7780_v5, %v4596_v41  ;;  %v9487_v48 = vld [vmem:[%s10116_s1] sm:$0xff] }
 0x693   :  { %4631 = vrot.lane.b32.xlu0 %v9332_v57, %s7783_s21  ;;  %v9360_v58 = vsub.f32 %v7781_v13, %v4597_v28  ;;  %v6981_v27 = vmul.f32 %v4597_v28, %v4597_v28 }
 0x694   :  { %4633 = vrot.lane.b32.xlu1 %v9343_v10, %s7783_s21  ;;  %v6982_v46 = vadd.f32 %v6979_v34, %v6978_v16  ;;  %10147 = vst [vmem:[#allocation9_spill] sm:$0xff] %v9355_v23  ;;  %v9492_v34 = vld [vmem:[%s10116_s1 + $0x18] sm:$0xff] }
 0x695   :  { %10148 = vst [vmem:[#allocation10_spill] sm:$0xff] %v9360_v58 }
 0x696   :  { %v6983_v43 = vadd.f32 %v6982_v46, %v6980_v3  ;;  %v7287_v3 = vld [vmem:[%s10117_s2 + $0x4] sm:$0xf] }
 0x697   :  { %4635 = vrot.lane.b32.xlu0 %v9355_v23, %s7783_s21 }
 0x698   :  { %4637 = vrot.lane.b32.xlu1 %v9360_v58, %s7783_s21  ;;  %v9366_v12 = vadd.f32 %v6983_v43, %v6981_v27 }
 0x69b   :  { %4606 = vrot.lane.b32.xlu0 %v9332_v57, %s7784_s26 }
 0x69c   :  { %4608 = vrot.lane.b32.xlu1 %v9343_v10, %s7784_s26 }
 0x69f   :  { %4610 = vrot.lane.b32.xlu0 %v9355_v23, %s7784_s26 }
 0x6a0   :  { %4612 = vrot.lane.b32.xlu1 %v9360_v58, %s7784_s26 }
 0x6a3   :  { %4850 = vrot.lane.b32.xlu0 %v9332_v57, %s7785_s27 }
 0x6a4   :  { %4852 = vrot.lane.b32.xlu1 %v9343_v10, %s7785_s27 }
 0x6a7   :  { %4854 = vrot.lane.b32.xlu0 %v9355_v23, %s7785_s27 }
 0x6a8   :  { %4856 = vrot.lane.b32.xlu1 %v9360_v58, %s7785_s27 }
 0x6ab   :  { %4976 = vrot.lane.b32.xlu0 %v9332_v57, %s7786_s28 }
 0x6ac   :  { %4978 = vrot.lane.b32.xlu1 %v9343_v10, %s7786_s28 }
 0x6af   :  { %4980 = vrot.lane.b32.xlu0 %v9355_v23, %s7786_s28 }
 0x6b0   :  { %4982 = vrot.lane.b32.xlu1 %v9360_v58, %s7786_s28 }
 0x6b3   :  { %5208 = vrot.lane.b32.xlu0 %v9332_v57, %s7787_s29 }
 0x6b4   :  { %5210 = vrot.lane.b32.xlu1 %v9343_v10, %s7787_s29 }
 0x6b7   :  { %5212 = vrot.lane.b32.xlu0 %v9355_v23, %s7787_s29 }
 0x6b8   :  { %5214 = vrot.lane.b32.xlu1 %v9360_v58, %s7787_s29 }
 0x6bb   :  { %5334 = vrot.lane.b32.xlu0 %v9332_v57, %s7788_s30 }
 0x6bc   :  { %5336 = vrot.lane.b32.xlu1 %v9343_v10, %s7788_s30 }
 0x6bf   :  { %5338 = vrot.lane.b32.xlu0 %v9355_v23, %s7788_s30 }
 0x6c0   :  { %5340 = vrot.lane.b32.xlu1 %v9360_v58, %s7788_s30 }
 0x6c3   :  { %5460 = vrot.lane.b32.xlu0 %v9332_v57, %s7789_s12 }
 0x6c4   :  { %5462 = vrot.lane.b32.xlu1 %v9343_v10, %s7789_s12 }
 0x6c7   :  { %5464 = vrot.lane.b32.xlu0 %v9355_v23, %s7789_s12 }
 0x6c8   :  { %5466 = vrot.lane.b32.xlu1 %v9360_v58, %s7789_s12 }
 0x6cb   :  { %5586 = vrot.lane.b32.xlu0 %v9332_v57, %s7790_s13 }
 0x6cc   :  { %5588 = vrot.lane.b32.xlu1 %v9343_v10, %s7790_s13 }
 0x6cf   :  { %5590 = vrot.lane.b32.xlu0 %v9355_v23, %s7790_s13 }
 0x6d0   :  { %5592 = vrot.lane.b32.xlu1 %v9360_v58, %s7790_s13 }
 0x6d3   :  { %5715 = vperm.xlu0 %7566, %v5712_v8  }
 0x705   :  { %v4632_v4 = vpop.permute.xlu0 %4631 }
 0x706   :  { %v4634_v47 = vpop.permute.xlu1 %4633 }
 0x707   :  { %v4641_v52 = vsel %vm78_vm0, %v4632_v4, %v4634_v47 }
 0x708   :  { %v4648_v51 = vmul.f32 %v9430_v59, %v4641_v52  ;;  %v7014_v21 = vsub.f32 %v9343_v10, %v4641_v52 }
 0x709   :  { %v4636_v61 = vpop.permute.xlu0 %4635 }
 0x70a   :  { %v4653_v26 = vpack.c.bf16 %v4648_v51, %v4648_v51  ;;  %v4640_v35 = vsel %vm78_vm0, %v4634_v47, %v4636_v61  ;;  %v4638_v55 = vpop.permute.xlu1 %4637  ;;  %v7018_v60 = vmul.f32 %v9430_v59, %v7014_v21 }
 0x70b   :  { %v4649_v37 = vmul.f32 %v9439_v18, %v4640_v35  ;;  %v7015_v63 = vsub.f32 %v9355_v23, %v4640_v35  ;;  %v4639_v19 = vsel %vm78_vm0, %v4636_v61, %v4638_v55  ;;  %v4642_v15 = vsel %vm78_vm0, %v4638_v55, %v4632_v4  ;;  %v9512_v55 = vld [vmem:[%s10116_s1 + $0x48] sm:$0xff] }
 0x70c   :  { %v4647_v50 = vmul.f32 %v9444_v30, %v4642_v15  ;;  %v4650_v39 = vmul.f32 %v9449_v9, %v4639_v19  ;;  %v7013_v11 = vsub.f32 %v9332_v57, %v4642_v15  ;;  %7288 = vmatprep.subr.msk.bf16.mxu0 %vm102_vm2, %v4653_v26  ;;  %v7016_v25 = vsub.f32 %v9360_v58, %v4639_v19 }
 0x70d   :  { %v4654_v1 = vpack.c.bf16 %v4649_v37, %v4649_v37  ;;  %v4607_v40 = vpop.permute.xlu0 %4606  ;;  %v7019_v62 = vmul.f32 %v9439_v18, %v7015_v63  ;;  %v7022_v42 = vmul.f32 %v7018_v60, %v7018_v60 }
 0x70e   :  { %v4652_v0 = vpack.c.bf16 %v4647_v50, %v4647_v50  ;;  %v4655_v49 = vpack.c.bf16 %v4650_v39, %v4650_v39  ;;  %v7017_v20 = vmul.f32 %v9444_v30, %v7013_v11  ;;  %v4609_v53 = vpop.permute.xlu1 %4608  ;;  %v7020_v29 = vmul.f32 %v9449_v9, %v7016_v25 }
 0x70f   :  { %v4616_v45 = vsel %vm52_vm1, %v4607_v40, %v4609_v53  ;;  %v4666_v41 = vsel %vm102_vm2, %v4654_v1, 0  ;;  %v7023_v46 = vmul.f32 %v7019_v62, %v7019_v62  ;;  %v9527_v1 = vld [vmem:[%s10116_s1 + $0x50] sm:$0xff]  ;;  %v9537_v62 = vld [vmem:[%s10116_s1 + $0x58] sm:$0xff] }
 0x710   :  { %v7021_v32 = vmul.f32 %v7017_v20, %v7017_v20  ;;  %v4623_v31 = vmul.f32 %v9468_v56, %v4616_v45  ;;  %7290 = vmatprep.subr.msk.bf16.mxu1 %vm102_vm2, %v4655_v49  ;;  %v4660_v28 = vsel %vm102_vm2, %v4652_v0, 0  ;;  %v7024_v8 = vmul.f32 %v7020_v29, %v7020_v29  ;;  %v4626_v0 = vld [vmem:[%s10117_s2] sm:$0xf] }
 0x711   :  { %4672 = vmatpush1.bf16.msra.mxu0 %v4660_v28  ;;  %4713 = vmatpush1.bf16.msra.mxu1 %v4666_v41  ;;  %v4611_v16 = vpop.permute.xlu0 %4610 }
 0x712   :  { %v7025_v5 = vadd.f32 %v7022_v42, %v7021_v32  ;;  %v4628_v13 = vpack.c.bf16 %v4623_v31, %v4623_v31  ;;  %v4615_v27 = vsel %vm52_vm1, %v4609_v53, %v4611_v16  ;;  %v4613_v43 = vpop.permute.xlu1 %4612 }
 0x713   :  { %v4624_v4 = vmul.f32 %v9482_v14, %v4615_v27  ;;  %v4614_v47 = vsel %vm52_vm1, %v4611_v16, %v4613_v43  ;;  %v4617_v52 = vsel %vm52_vm1, %v4613_v43, %v4607_v40  ;;  %v9532_v40 = vld [vmem:[%s10116_s1 + $0x40] sm:$0xff]  ;;  %v9557_v16 = vld [vmem:[%s10116_s1 + $0x68] sm:$0xff] }
 0x714   :  { %v4622_v51 = vmul.f32 %v9487_v48, %v4617_v52  ;;  %v4625_v21 = vmul.f32 %v9492_v34, %v4614_v47  ;;  %7289 = vmatmul.mubr.msk.bf16.vlgmr.msra.gmra.mrb[112].mxu0 %vm98_vm3, %v7287_v3  ;;  %7291 = vmatmul.mubr.msk.bf16.vlgmr.msra.gmra.mrb[112].mxu1 %vm98_vm3, %v7287_v3  ;;  %v7026_v61 = vadd.f32 %v7025_v5, %v7023_v46  ;;  %v9575_v52 = vld [vmem:[%s10116_s1 + $0x60] sm:$0xff] }
 0x715   :  { %v4629_v26 = vpack.c.bf16 %v4624_v4, %v4624_v4  ;;  %7292 = vmatprep.subr.msk.bf16.mxu0 %vm102_vm2, %v4628_v13  ;;  %v4851_v35 = vpop.permute.xlu0 %4850  ;;  %4800 = vmatprep.mubr.bf16.mxu0 %v10130_v2  ;;  %v9570_v4 = vld [vmem:[%s10116_s1 + $0x70] sm:$0xff] }
 0x716   :  { %v4627_v37 = vpack.c.bf16 %v4622_v51, %v4622_v51  ;;  %v4630_v63 = vpack.c.bf16 %v4625_v21, %v4625_v21  ;;  %v4853_v19 = vpop.permute.xlu1 %4852  ;;  %4841 = vmatprep.mubr.bf16.mxu1 %v10130_v2  ;;  %v9516_v15 = vadd.f32 %v7026_v61, %v7024_v8  ;;  %v9580_v51 = vld [vmem:[%s10116_s1 + $0x78] sm:$0xff]  ;;  %v7300_v21 = vld [vmem:[%s10117_s2 + $0x8] sm:$0xf] }
 0x717   :  { %v4860_v60 = vsel %vm302_vm4, %v4851_v35, %v4853_v19  ;;  %v4763_v50 = vsel %vm102_vm2, %v4629_v26, 0 }
 0x718   :  { %v4867_v39 = vmul.f32 %v9512_v55, %v4860_v60  ;;  %7294 = vmatprep.subr.msk.bf16.mxu1 %vm102_vm2, %v4630_v63  ;;  %v4757_v11 = vsel %vm102_vm2, %v4627_v37, 0 }
 0x719   :  { %4769 = vmatpush1.bf16.msra.mxu0 %v4757_v11  ;;  %4810 = vmatpush1.bf16.msra.mxu1 %v4763_v50  ;;  %v4855_v25 = vpop.permute.xlu0 %4854 }
 0x71a   :  { %v4872_v49 = vpack.c.bf16 %v4867_v39, %v4867_v39  ;;  %v4859_v20 = vsel %vm302_vm4, %v4853_v19, %v4855_v25  ;;  %v4857_v53 = vpop.permute.xlu1 %4856 }
 0x71b   :  { %v4868_v29 = vmul.f32 %v9527_v1, %v4859_v20  ;;  %v4858_v45 = vsel %vm302_vm4, %v4855_v25, %v4857_v53  ;;  %v4861_v41 = vsel %vm302_vm4, %v4857_v53, %v4851_v35  ;;  %v5105_v53 = vpack.c.bf16 %v9355_v23, %v9355_v23 }
 0x71c   :  { %v4866_v42 = vmul.f32 %v9532_v40, %v4861_v41  ;;  %v4869_v32 = vmul.f32 %v9537_v62, %v4858_v45  ;;  %7293 = vmatmul.mubr.msk.bf16.vlgmr.msra.gmra.mrb[116].mxu0 %vm98_vm3, %v4626_v0  ;;  %7295 = vmatmul.mubr.msk.bf16.vlgmr.msra.gmra.mrb[116].mxu1 %vm98_vm3, %v4626_v0  ;;  %v9607_v45 = vld [vmem:[%s10116_s1 + $0xa0] sm:$0xff] }
 0x71d   :  { %v4873_v31 = vpack.c.bf16 %v4868_v29, %v4868_v29  ;;  %7301 = vmatprep.subr.msk.bf16.mxu0 %vm102_vm2, %v4872_v49  ;;  %v4977_v28 = vpop.permute.xlu0 %4976  ;;  %4922 = vmatprep.mubr.bf16.mxu0 %v10130_v2  ;;  %v5103_v29 = vpack.c.bf16 %v9332_v57, %v9332_v57 }
 0x71e   :  { %v4871_v3 = vpack.c.bf16 %v4866_v42, %v4866_v42  ;;  %v4874_v46 = vpack.c.bf16 %v4869_v32, %v4869_v32  ;;  %v4979_v5 = vpop.permute.xlu1 %4978  ;;  %4963 = vmatprep.mubr.bf16.mxu1 %v10130_v2  ;;  %v9616_v32 = vld [vmem:[%s10116_s1 + $0xa8] sm:$0xff] }
 0x71f   :  { %v4986_v13 = vsel %vm431_vm5, %v4977_v28, %v4979_v5  ;;  %v4885_v27 = vsel %vm102_vm2, %v4873_v31, 0  ;;  %v5104_v31 = vpack.c.bf16 %v9343_v10, %v9343_v10 }
 0x720   :  { %v4993_v43 = vmul.f32 %v9557_v16, %v4986_v13  ;;  %7303 = vmatprep.subr.msk.bf16.mxu1 %vm102_vm2, %v4874_v46  ;;  %v4879_v8 = vsel %vm102_vm2, %v4871_v3, 0  ;;  %v9625_v46 = vld [vmem:[%s10116_s1 + $0xb0] sm:$0xff]  ;;  %v7309_v13 = vld [vmem:[%s10117_s2 + $0xc] sm:$0xf] }
 0x721   :  { %4891 = vmatpush1.bf16.msra.mxu0 %v4879_v8  ;;  %4932 = vmatpush1.bf16.msra.mxu1 %v4885_v27  ;;  %v4981_v47 = vpop.permute.xlu0 %4980 }
 0x722   :  { %v4998_v61 = vpack.c.bf16 %v4993_v43, %v4993_v43  ;;  %v4985_v26 = vsel %vm431_vm5, %v4979_v5, %v4981_v47  ;;  %v4983_v35 = vpop.permute.xlu1 %4982  ;;  %v9630_v5 = vld [vmem:[%s10116_s1 + $0xb8] sm:$0xff] }
 0x723   :  { %v4994_v37 = vmul.f32 %v9570_v4, %v4985_v26  ;;  %v4984_v63 = vsel %vm431_vm5, %v4981_v47, %v4983_v35  ;;  %v4987_v19 = vsel %vm431_vm5, %v4983_v35, %v4977_v28  ;;  %v5106_v28 = vpack.c.bf16 %v9360_v58, %v9360_v58 }
 0x724   :  { %v4992_v60 = vmul.f32 %v9575_v52, %v4987_v19  ;;  %v4995_v50 = vmul.f32 %v9580_v51, %v4984_v63  ;;  %7302 = vmatmul.mubr.msk.bf16.vlgmr.msra.gmra.mrb[120].mxu0 %vm98_vm3, %v7300_v21  ;;  %7304 = vmatmul.mubr.msk.bf16.vlgmr.msra.gmra.mrb[120].mxu1 %vm98_vm3, %v7300_v21  ;;  %v5111_v63 = vsel %vm102_vm2, %v5103_v29, 0  ;;  %v9670_v29 = vld [vmem:[%s10116_s1 + $0xd0] sm:$0xff] }
 0x725   :  { %v4999_v39 = vpack.c.bf16 %v4994_v37, %v4994_v37  ;;  %7310 = vmatprep.subr.msk.bf16.mxu0 %vm102_vm2, %v4998_v61  ;;  %v5209_v11 = vpop.permute.xlu0 %5208  ;;  %5048 = vmatprep.mubr.bf16.mxu0 %v10130_v2  ;;  %v5117_v37 = vsel %vm102_vm2, %v5105_v53, 0 }
 0x726   :  { %v4997_v25 = vpack.c.bf16 %v4992_v60, %v4992_v60  ;;  %v5000_v0 = vpack.c.bf16 %v4995_v50, %v4995_v50  ;;  %v5211_v49 = vpop.permute.xlu1 %5210  ;;  %5089 = vmatprep.mubr.bf16.mxu1 %v10130_v2 }
 0x727   :  { %v5011_v20 = vsel %vm102_vm2, %v4999_v39, 0  ;;  %v5218_v41 = vsel %vm667_vm6, %v5209_v11, %v5211_v49 }
 0x728   :  { %7312 = vmatprep.subr.msk.bf16.mxu1 %vm102_vm2, %v5000_v0  ;;  %v5005_v42 = vsel %vm102_vm2, %v4997_v25, 0  ;;  %v5224_v8 = vmul.f32 %v9607_v45, %v5218_v41  ;;  %v9657_v0 = vld [vmem:[%s10116_s1 + $0xc0] sm:$0xff]  ;;  %v9675_v41 = vld [vmem:[%s10116_s1 + $0xd8] sm:$0xff] }
 0x729   :  { %5017 = vmatpush1.bf16.msra.mxu0 %v5005_v42  ;;  %5058 = vmatpush1.bf16.msra.mxu1 %v5011_v20  ;;  %v5213_v3 = vpop.permute.xlu0 %5212  ;;  %v7314_v42 = vld [vmem:[%s10117_s2 + $0x10] sm:$0xf] }
 0x72a   :  { %v5217_v27 = vsel %vm667_vm6, %v5211_v49, %v5213_v3  ;;  %v5215_v43 = vpop.permute.xlu1 %5214  ;;  %7315 = vmatprep.subr.msk.bf16.mxu0 %vm102_vm2, %v5104_v31  ;;  %7317 = vmatprep.subr.msk.bf16.mxu1 %vm102_vm2, %v5106_v28  ;;  %v9663_v49 = vld [vmem:[%s10116_s1 + $0xc8] sm:$0xff] }
 0x72b   :  { %v5225_v47 = vmul.f32 %v9616_v32, %v5217_v27  ;;  %v5216_v21 = vsel %vm667_vm6, %v5213_v3, %v5215_v43  ;;  %v5219_v61 = vsel %vm667_vm6, %v5215_v43, %v5209_v11  ;;  %v5229_v11 = vpack.c.bf16 %v5224_v8, %v5224_v8 }
 0x72c   :  { %v5226_v26 = vmul.f32 %v9625_v46, %v5216_v21  ;;  %v5227_v35 = vmul.f32 %v9630_v5, %v5219_v61  ;;  %7311 = vmatmul.mubr.msk.bf16.vlgmr.msra.gmra.mrb[124].mxu0 %vm98_vm3, %v7309_v13  ;;  %7313 = vmatmul.mubr.msk.bf16.vlgmr.msra.gmra.mrb[124].mxu1 %vm98_vm3, %v7309_v13 }
 0x72d   :  { %v5230_v19 = vpack.c.bf16 %v5225_v47, %v5225_v47  ;;  %5164 = vmatpush1.bf16.msra.mxu1 %v5117_v37  ;;  %v5335_v60 = vpop.permute.xlu0 %5334  ;;  %5123 = vmatpush1.bf16.msra.mxu0 %v5111_v63  ;;  %v5237_v43 = vsel %vm102_vm2, %v5229_v11, 0  ;;  %v9708_v11 = vld [vmem:[%s10116_s1 + $0xe8] sm:$0xff] }
 0x72e   :  { %v5232_v50 = vpack.c.bf16 %v5227_v35, %v5227_v35  ;;  %v5337_v39 = vpop.permute.xlu1 %5336  ;;  %5154 = vmatprep.mubr.bf16.mxu0 %v10130_v2  ;;  %5195 = vmatprep.mubr.bf16.mxu1 %v10130_v2  ;;  %v5231_v25 = vpack.c.bf16 %v5226_v26, %v5226_v26 }
 0x72f   :  { %7324 = vmatprep.subr.msk.bf16.mxu0 %vm102_vm2, %v5230_v19  ;;  %v5344_v20 = vsel %vm796_vm7, %v5335_v60, %v5337_v39 }
 0x730   :  { %7326 = vmatprep.subr.msk.bf16.mxu1 %vm102_vm2, %v5232_v50  ;;  %v5350_v8 = vmul.f32 %v9657_v0, %v5344_v20  ;;  %v5243_v61 = vsel %vm102_vm2, %v5231_v25, 0  ;;  %v9700_v50 = vld [vmem:[%s10116_s1 + $0xe0] sm:$0xff]  ;;  %v9713_v20 = vld [vmem:[%s10116_s1 + $0xf0] sm:$0xff] }
 0x731   :  { %v5339_v53 = vpop.permute.xlu0 %5338 }
 0x732   :  { %v5343_v31 = vsel %vm796_vm7, %v5337_v39, %v5339_v53  ;;  %v5341_v28 = vpop.permute.xlu1 %5340  ;;  %v5355_v19 = vpack.c.bf16 %v5350_v8, %v5350_v8 }
 0x733   :  { %v5351_v3 = vmul.f32 %v9663_v49, %v5343_v31  ;;  %v5342_v13 = vsel %vm796_vm7, %v5339_v53, %v5341_v28  ;;  %v5345_v27 = vsel %vm796_vm7, %v5341_v28, %v5335_v60  ;;  %v9718_v53 = vld [vmem:[%s10116_s1 + $0xf8] sm:$0xff] }
 0x734   :  { %v5352_v47 = vmul.f32 %v9670_v29, %v5342_v13  ;;  %v5353_v21 = vmul.f32 %v9675_v41, %v5345_v27  ;;  %7316 = vmatmul.mubr.msk.bf16.vlgmr.msra.gmra.mrb[128].mxu0 %vm98_vm3, %v7314_v42  ;;  %7318 = vmatmul.mubr.msk.bf16.vlgmr.msra.gmra.mrb[128].mxu1 %vm98_vm3, %v7314_v42  ;;  %v7323_v42 = vld [vmem:[%s10117_s2 + $0x14] sm:$0xf] }
 0x735   :  { %v5356_v26 = vpack.c.bf16 %v5351_v3, %v5351_v3  ;;  %5249 = vmatpush1.bf16.msra.mxu0 %v5237_v43  ;;  %5290 = vmatpush1.bf16.msra.mxu1 %v5243_v61  ;;  %v5461_v35 = vpop.permute.xlu0 %5460 }
 0x736   :  { %v5358_v37 = vpack.c.bf16 %v5353_v21, %v5353_v21  ;;  %v5463_v63 = vpop.permute.xlu1 %5462  ;;  %5280 = vmatprep.mubr.bf16.mxu0 %v10130_v2  ;;  %5321 = vmatprep.mubr.bf16.mxu1 %v10130_v2  ;;  %v5357_v60 = vpack.c.bf16 %v5352_v47, %v5352_v47  ;;  %v5363_v21 = vsel %vm102_vm2, %v5355_v19, 0  ;;  %v9743_v19 = vld [vmem:[%s10116_s1 + $0x100] sm:$0xff] }
 0x737   :  { %7333 = vmatprep.subr.msk.bf16.mxu0 %vm102_vm2, %v5356_v26  ;;  %v5470_v39 = vsel %vm925_vm8, %v5461_v35, %v5463_v63 }
 0x738   :  { %7335 = vmatprep.subr.msk.bf16.mxu1 %vm102_vm2, %v5358_v37  ;;  %v5476_v3 = vmul.f32 %v9700_v50, %v5470_v39  ;;  %v5369_v61 = vsel %vm102_vm2, %v5357_v60, 0  ;;  %v9749_v60 = vld [vmem:[%s10116_s1 + $0x108] sm:$0xff] }
 0x739   :  { %v5465_v25 = vpop.permute.xlu0 %5464 }
 0x73a   :  { %v5469_v31 = vsel %vm925_vm8, %v5463_v63, %v5465_v25  ;;  %v5467_v28 = vpop.permute.xlu1 %5466 }
 0x73b   :  { %v5477_v13 = vmul.f32 %v9708_v11, %v5469_v31  ;;  %v5468_v27 = vsel %vm925_vm8, %v5465_v25, %v5467_v28  ;;  %v5471_v43 = vsel %vm925_vm8, %v5467_v28, %v5461_v35  ;;  %v5481_v35 = vpack.c.bf16 %v5476_v3, %v5476_v3  ;;  %v9756_v28 = vld [vmem:[%s10116_s1 + $0x110] sm:$0xff]  ;;  %v9761_v3 = vld [vmem:[%s10116_s1 + $0x118] sm:$0xff] }
 0x73c   :  { %v5478_v8 = vmul.f32 %v9713_v20, %v5468_v27  ;;  %v5479_v47 = vmul.f32 %v9718_v53, %v5471_v43  ;;  %7325 = vmatmul.mubr.msk.bf16.vlgmr.msra.gmra.mrb[132].mxu0 %vm98_vm3, %v7323_v42  ;;  %7327 = vmatmul.mubr.msk.bf16.vlgmr.msra.gmra.mrb[132].mxu1 %vm98_vm3, %v7323_v42 }
 0x73d   :  { %v5482_v26 = vpack.c.bf16 %v5477_v13, %v5477_v13  ;;  %5375 = vmatpush1.bf16.msra.mxu0 %v5363_v21  ;;  %5416 = vmatpush1.bf16.msra.mxu1 %v5369_v61  ;;  %v5587_v37 = vpop.permute.xlu0 %5586  ;;  %v7332_v13 = vld [vmem:[%s10117_s2 + $0x18] sm:$0xf]  ;;  %v5489_v61 = vsel %vm102_vm2, %v5481_v35, 0 }
 0x73e   :  { %v5484_v63 = vpack.c.bf16 %v5479_v47, %v5479_v47  ;;  %v5589_v39 = vpop.permute.xlu1 %5588  ;;  %5406 = vmatprep.mubr.bf16.mxu0 %v10130_v2  ;;  %5447 = vmatprep.mubr.bf16.mxu1 %v10130_v2  ;;  %v5483_v25 = vpack.c.bf16 %v5478_v8, %v5478_v8 }
 0x73f   :  { %7342 = vmatprep.subr.msk.bf16.mxu0 %vm102_vm2, %v5482_v26  ;;  %v5596_v42 = vsel %vm1054_vm9, %v5587_v37, %v5589_v39 }
 0x740   :  { %7344 = vmatprep.subr.msk.bf16.mxu1 %vm102_vm2, %v5484_v63  ;;  %v5602_v26 = vmul.f32 %v9743_v19, %v5596_v42  ;;  %v7341_v42 = vld [vmem:[%s10117_s2 + $0x1c] sm:$0xf] }
 0x741   :  { %v5591_v31 = vpop.permute.xlu0 %5590 }
 0x742   :  { %v5595_v27 = vsel %vm1054_vm9, %v5589_v39, %v5591_v31  ;;  %v5593_v43 = vpop.permute.xlu1 %5592  ;;  %v5495_v39 = vsel %vm102_vm2, %v5483_v25, 0 }
 0x743   :  { %v5603_v8 = vmul.f32 %v9749_v60, %v5595_v27  ;;  %v5594_v47 = vsel %vm1054_vm9, %v5591_v31, %v5593_v43  ;;  %v5597_v21 = vsel %vm1054_vm9, %v5593_v43, %v5587_v37  ;;  %v5607_v37 = vpack.c.bf16 %v5602_v26, %v5602_v26 }
 0x744   :  { %v5604_v63 = vmul.f32 %v9756_v28, %v5594_v47  ;;  %v5605_v6 = vmul.f32 %v9761_v3, %v5597_v21  ;;  %7334 = vmatmul.mubr.msk.bf16.vlgmr.msra.gmra.mrb[136].mxu0 %vm98_vm3, %v7332_v13  ;;  %7336 = vmatmul.mubr.msk.bf16.vlgmr.msra.gmra.mrb[136].mxu1 %vm98_vm3, %v7332_v13  ;;  %v7350_v13 = vld [vmem:[%s10117_s2 + $0x20] sm:$0xf] }
 0x745   :  { %v5608_v27 = vpack.c.bf16 %v5603_v8, %v5603_v8  ;;  %5501 = vmatpush1.bf16.msra.mxu0 %v5489_v61  ;;  %5542 = vmatpush1.bf16.msra.mxu1 %v5495_v39 }
 0x746   :  { %v5610_v31 = vpack.c.bf16 %v5605_v6, %v5605_v6  ;;  %5532 = vmatprep.mubr.bf16.mxu0 %v10130_v2  ;;  %5573 = vmatprep.mubr.bf16.mxu1 %v10130_v2  ;;  %v5609_v35 = vpack.c.bf16 %v5604_v63, %v5604_v63  ;;  %v5615_v6 = vsel %vm102_vm2, %v5607_v37, 0 }
 0x747   :  { %7351 = vmatprep.subr.msk.bf16.mxu0 %vm102_vm2, %v5608_v27 }
 0x748   :  { %7353 = vmatprep.subr.msk.bf16.mxu1 %vm102_vm2, %v5610_v31  ;;  %v5621_v25 = vsel %vm102_vm2, %v5609_v35, 0 }
 0x74c   :  { %7343 = vmatmul.mubr.msk.bf16.vlgmr.msra.gmra.mrb[140].mxu0 %vm98_vm3, %v7341_v42  ;;  %7345 = vmatmul.mubr.msk.bf16.vlgmr.msra.gmra.mrb[140].mxu1 %vm98_vm3, %v7341_v42 }
 0x74d   :  { %5627 = vmatpush1.bf16.msra.mxu0 %v5615_v6  ;;  %5668 = vmatpush1.bf16.msra.mxu1 %v5621_v25 }
 0x74e   :  { %5658 = vmatprep.mubr.bf16.mxu0 %v10130_v2  ;;  %5699 = vmatprep.mubr.bf16.mxu1 %v10130_v2 }
 0x754   :  { %7352 = vmatmul.mubr.msk.bf16.vlgmr.msra.gmra.mrb[144].mxu0 %vm98_vm3, %v7350_v13  ;;  %7354 = vmatmul.mubr.msk.bf16.vlgmr.msra.gmra.mrb[144].mxu1 %vm98_vm3, %v7350_v13 }
 0x755   :  { %5822 = vmatprep.mubr.bf16.mxu0 %v10130_v2  ;;  %5865 = vmatprep.mubr.bf16.mxu1 %v10130_v2 }
 0x7e7   :  { %v4705_v43 = vpop.f32.mrb[112].mxu0  ;;  %v4746_v8 = vpop.f32.mrb[112].mxu1 }
 0x7e8   :  { %v4707_v47 = vpop.f32.mrb[113].mxu0  ;;  %v4748_v21 = vpop.f32.mrb[113].mxu1 }
 0x7e9   :  { %v4709_v61 = vpop.f32.mrb[114].mxu0  ;;  %v4750_v26 = vpop.f32.mrb[114].mxu1 }
 0x7ea   :  { %v4710_v63 = vpop.f32.mrb[115].mxu0  ;;  %v4751_v39 = vpop.f32.mrb[115].mxu1 }
 0x7ef   :  { %v4802_v27 = vpop.f32.mrb[116].mxu0  ;;  %v4843_v31 = vpop.f32.mrb[116].mxu1 }
 0x7f0   :  { %v4803_v37 = vadd.f32 %v4802_v27, %v4705_v43  ;;  %v4844_v35 = vadd.f32 %v4843_v31, %v4746_v8  ;;  %v4804_v42 = vpop.f32.mrb[117].mxu0  ;;  %v4845_v6 = vpop.f32.mrb[117].mxu1 }
 0x7f1   :  { %v4805_v25 = vadd.f32 %v4804_v42, %v4707_v47  ;;  %v4846_v13 = vadd.f32 %v4845_v6, %v4748_v21  ;;  %v4806_v44 = vpop.f32.mrb[118].mxu0  ;;  %v4847_v36 = vpop.f32.mrb[118].mxu1 }
 0x7f2   :  { %v4807_v24 = vpop.f32.mrb[119].mxu0  ;;  %v4848_v2 = vpop.f32.mrb[119].mxu1 }
 0x7f7   :  { %v4924_v58 = vpop.f32.mrb[120].mxu0  ;;  %v4965_v17 = vpop.f32.mrb[120].mxu1 }
 0x7f8   :  { %v4972_v54 = vadd.f32 %v4924_v58, %v4803_v37  ;;  %v4974_v23 = vadd.f32 %v4965_v17, %v4844_v35  ;;  %v4926_v61 = vpop.f32.mrb[121].mxu0  ;;  %v4967_v26 = vpop.f32.mrb[121].mxu1 }
 0x7f9   :  { %v4973_v63 = vadd.f32 %v4926_v61, %v4805_v25  ;;  %v4975_v39 = vadd.f32 %v4967_v26, %v4846_v13  ;;  %v4928_v22 = vpop.f32.mrb[122].mxu0  ;;  %v4969_v33 = vpop.f32.mrb[122].mxu1 }
 0x7fa   :  { %v4929_v43 = vpop.f32.mrb[123].mxu0  ;;  %v4970_v8 = vpop.f32.mrb[123].mxu1 }
 0x7ff   :  { %v5050_v27 = vpop.f32.mrb[124].mxu0  ;;  %v5091_v31 = vpop.f32.mrb[124].mxu1 }
 0x800   :  { %v5098_v47 = vadd.f32 %v5050_v27, %v4972_v54  ;;  %v5100_v21 = vadd.f32 %v5091_v31, %v4974_v23  ;;  %v5052_v44 = vpop.f32.mrb[125].mxu0  ;;  %v5093_v36 = vpop.f32.mrb[125].mxu1 }
 0x801   :  { %v5099_v24 = vadd.f32 %v5052_v44, %v4973_v63  ;;  %v5101_v2 = vadd.f32 %v5093_v36, %v4975_v39  ;;  %v5054_v42 = vpop.f32.mrb[126].mxu0  ;;  %v5095_v6 = vpop.f32.mrb[126].mxu1 }
 0x802   :  { %v5055_v58 = vpop.f32.mrb[127].mxu0  ;;  %v5096_v17 = vpop.f32.mrb[127].mxu1 }
 0x807   :  { %v5156_v37 = vpop.f32.mrb[128].mxu0  ;;  %v5197_v35 = vpop.f32.mrb[128].mxu1 }
 0x808   :  { %v5204_v25 = vadd.f32 %v5156_v37, %v5098_v47  ;;  %v5206_v13 = vadd.f32 %v5197_v35, %v5100_v21  ;;  %v5158_v22 = vpop.f32.mrb[129].mxu0  ;;  %v5199_v33 = vpop.f32.mrb[129].mxu1 }
 0x809   :  { %v5205_v61 = vadd.f32 %v5158_v22, %v5099_v24  ;;  %v5207_v26 = vadd.f32 %v5199_v33, %v5101_v2  ;;  %v5160_v43 = vpop.f32.mrb[130].mxu0  ;;  %v5201_v8 = vpop.f32.mrb[130].mxu1 }
 0x80a   :  { %v5161_v54 = vpop.f32.mrb[131].mxu0  ;;  %v5202_v23 = vpop.f32.mrb[131].mxu1 }
 0x80f   :  { %v5282_v27 = vpop.f32.mrb[132].mxu0  ;;  %v5323_v31 = vpop.f32.mrb[132].mxu1 }
 0x810   :  { %v5330_v63 = vadd.f32 %v5282_v27, %v5204_v25  ;;  %v5332_v39 = vadd.f32 %v5323_v31, %v5206_v13  ;;  %v5284_v44 = vpop.f32.mrb[133].mxu0  ;;  %v5325_v36 = vpop.f32.mrb[133].mxu1 }
 0x811   :  { %v5331_v42 = vadd.f32 %v5284_v44, %v5205_v61  ;;  %v5333_v6 = vadd.f32 %v5325_v36, %v5207_v26  ;;  %v5286_v58 = vpop.f32.mrb[134].mxu0  ;;  %v5327_v17 = vpop.f32.mrb[134].mxu1 }
 0x812   :  { %v5287_v47 = vpop.f32.mrb[135].mxu0  ;;  %v5328_v21 = vpop.f32.mrb[135].mxu1 }
 0x817   :  { %v5408_v37 = vpop.f32.mrb[136].mxu0  ;;  %v5449_v35 = vpop.f32.mrb[136].mxu1 }
 0x818   :  { %v5456_v24 = vadd.f32 %v5408_v37, %v5330_v63  ;;  %v5458_v2 = vadd.f32 %v5449_v35, %v5332_v39  ;;  %v5410_v22 = vpop.f32.mrb[137].mxu0  ;;  %v5451_v33 = vpop.f32.mrb[137].mxu1 }
 0x819   :  { %v5457_v43 = vadd.f32 %v5410_v22, %v5331_v42  ;;  %v5459_v8 = vadd.f32 %v5451_v33, %v5333_v6  ;;  %v5412_v54 = vpop.f32.mrb[138].mxu0  ;;  %v5453_v23 = vpop.f32.mrb[138].mxu1 }
 0x81a   :  { %v5413_v25 = vpop.f32.mrb[139].mxu0  ;;  %v5454_v13 = vpop.f32.mrb[139].mxu1 }
 0x81b   :  { %v5716_v37 = vpop.permute.xlu0 %5715 }
 0x81f   :  { %v5534_v27 = vpop.f32.mrb[140].mxu0  ;;  %v5575_v31 = vpop.f32.mrb[140].mxu1 }
 0x820   :  { %v5582_v61 = vadd.f32 %v5534_v27, %v5456_v24  ;;  %v5584_v26 = vadd.f32 %v5575_v31, %v5458_v2  ;;  %v5536_v44 = vpop.f32.mrb[141].mxu0  ;;  %v5577_v36 = vpop.f32.mrb[141].mxu1 }
 0x821   :  { %v5583_v58 = vadd.f32 %v5536_v44, %v5457_v43  ;;  %v5585_v17 = vadd.f32 %v5577_v36, %v5459_v8  ;;  %v5538_v47 = vpop.f32.mrb[142].mxu0  ;;  %v5579_v21 = vpop.f32.mrb[142].mxu1 }
 0x822   :  { %v5539_v63 = vpop.f32.mrb[143].mxu0  ;;  %v5580_v39 = vpop.f32.mrb[143].mxu1 }
 0x827   :  { %v5660_v35 = vpop.f32.mrb[144].mxu0  ;;  %v5701_v42 = vpop.f32.mrb[144].mxu1 }
 0x828   :  { %v5708_v6 = vadd.f32 %v5660_v35, %v5582_v61  ;;  %v5710_v22 = vadd.f32 %v5701_v42, %v5584_v26  ;;  %v5662_v33 = vpop.f32.mrb[145].mxu0  ;;  %v5703_v54 = vpop.f32.mrb[145].mxu1 }
 0x829   :  { %v5709_v23 = vadd.f32 %v5662_v33, %v5583_v58  ;;  %v5711_v25 = vadd.f32 %v5703_v54, %v5585_v17  ;;  %v5664_v13 = vpop.f32.mrb[146].mxu0  ;;  %v5705_v24 = vpop.f32.mrb[146].mxu1  ;;  %v6918_v58 = vld [vmem:[%s10119_s5] sm:$0xff]  ;;  %v6919_v17 = vld [vmem:[%s10119_s5 + $0x8] sm:$0xff] }
 0x82a   :  { %v5718_v2 = vadd.f32 %v5716_v37, %v5708_v6  ;;  %v5665_v27 = vpop.f32.mrb[147].mxu0  ;;  %v5706_v31 = vpop.f32.mrb[147].mxu1  ;;  %v5720_v36 = vadd.f32 %v5716_v37, %v5710_v22 }
 0x82b   :  { %v5719_v43 = vadd.f32 %v5716_v37, %v5709_v23  ;;  %v5721_v44 = vadd.f32 %v5716_v37, %v5711_v25  ;;  %v7737_v31 = vld [vmem:[%s10118_s4 + $0x8] sm:$0xff]  }
 0x82c   :  { %v9800_v8 = vmax.f32 %v5718_v2, 0.0  ;;  %v9810_v26 = vmax.f32 %v5720_v36, 0.0 }
 0x82d   :  { %v9802_v47 = vmax.f32 %v5719_v43, 0.0  ;;  %v9808_v61 = vmax.f32 %v5721_v44, 0.0 }
 0x82e   :  { %5748 = vrot.lane.b32.xlu1 %v9800_v8, %s7783_s21 }
 0x82f   :  { %5750 = vrot.lane.b32.xlu0 %v9802_v47, %s7783_s21 }
 0x832   :  { %5754 = vrot.lane.b32.xlu1 %v9808_v61, %s7783_s21 }
 0x833   :  { %5752 = vrot.lane.b32.xlu0 %v9810_v26, %s7783_s21 }
 0x836   :  { %5726 = vrot.lane.b32.xlu1 %v9800_v8, %s7784_s26 }
 0x837   :  { %5728 = vrot.lane.b32.xlu0 %v9802_v47, %s7784_s26 }
 0x83a   :  { %5732 = vrot.lane.b32.xlu1 %v9808_v61, %s7784_s26 }
 0x83b   :  { %5730 = vrot.lane.b32.xlu0 %v9810_v26, %s7784_s26 }
 0x83e   :  { %5982 = vrot.lane.b32.xlu1 %v9800_v8, %s7785_s27 }
 0x83f   :  { %5984 = vrot.lane.b32.xlu0 %v9802_v47, %s7785_s27 }
 0x842   :  { %5988 = vrot.lane.b32.xlu1 %v9808_v61, %s7785_s27 }
 0x843   :  { %5986 = vrot.lane.b32.xlu0 %v9810_v26, %s7785_s27 }
 0x846   :  { %6118 = vrot.lane.b32.xlu1 %v9800_v8, %s7786_s28 }
 0x847   :  { %6120 = vrot.lane.b32.xlu0 %v9802_v47, %s7786_s28 }
 0x84a   :  { %6124 = vrot.lane.b32.xlu1 %v9808_v61, %s7786_s28 }
 0x84b   :  { %6122 = vrot.lane.b32.xlu0 %v9810_v26, %s7786_s28 }
 0x84e   :  { %6374 = vrot.lane.b32.xlu1 %v9800_v8, %s7787_s29 }
 0x84f   :  { %6376 = vrot.lane.b32.xlu0 %v9802_v47, %s7787_s29 }
 0x852   :  { %6378 = vrot.lane.b32.xlu1 %v9810_v26, %s7787_s29 }
 0x853   :  { %6380 = vrot.lane.b32.xlu0 %v9808_v61, %s7787_s29 }
 0x856   :  { %6510 = vrot.lane.b32.xlu1 %v9800_v8, %s7788_s30 }
 0x857   :  { %6512 = vrot.lane.b32.xlu0 %v9802_v47, %s7788_s30 }
 0x85a   :  { %6514 = vrot.lane.b32.xlu1 %v9810_v26, %s7788_s30 }
 0x85b   :  { %6516 = vrot.lane.b32.xlu0 %v9808_v61, %s7788_s30 }
 0x85e   :  { %6646 = vrot.lane.b32.xlu1 %v9800_v8, %s7789_s12 }
 0x85f   :  { %6648 = vrot.lane.b32.xlu0 %v9802_v47, %s7789_s12 }
 0x862   :  { %6650 = vrot.lane.b32.xlu1 %v9810_v26, %s7789_s12 }
 0x863   :  { %6652 = vrot.lane.b32.xlu0 %v9808_v61, %s7789_s12 }
 0x866   :  { %6782 = vrot.lane.b32.xlu1 %v9800_v8, %s7790_s13 }
 0x867   :  { %6784 = vrot.lane.b32.xlu0 %v9802_v47, %s7790_s13 }
 0x86a   :  { %6786 = vrot.lane.b32.xlu1 %v9810_v26, %s7790_s13 }
 0x86b   :  { %6788 = vrot.lane.b32.xlu0 %v9808_v61, %s7790_s13 }
 0x86e   :  { %6922 = vperm.xlu1 %7567, %v6918_v58  }
 0x86f   :  { %6927 = vperm.xlu0 %7566, %v6919_v17  }
 0x88e   :  { %6985 = vadd.xlane.f32.xlu0 %v9366_v12 }
 0x892   :  { %7028 = vadd.xlane.f32.xlu0 %v9516_v15 }
 0x8a0   :  { %v5749_v21 = vpop.permute.xlu1 %5748 }
 0x8a1   :  { %v5751_v63 = vpop.permute.xlu0 %5750 }
 0x8a2   :  { %v5758_v39 = vsel %vm78_vm0, %v5749_v21, %v5751_v63 }
 0x8a3   :  { %v5761_v37 = vmul.f32 %v9430_v59, %v5758_v39 }
 0x8a4   :  { %v5755_v35 = vpop.permute.xlu1 %5754 }
 0x8a5   :  { %v5767_v42 = vpack.c.bf16 %v5761_v37, %v5761_v37  ;;  %v5759_v6 = vsel %vm78_vm0, %v5755_v35, %v5749_v21  ;;  %v5753_v22 = vpop.permute.xlu0 %5752 }
 0x8a6   :  { %v5760_v33 = vmul.f32 %v9444_v30, %v5759_v6  ;;  %v5756_v12 = vsel %vm78_vm0, %v5753_v22, %v5755_v35  ;;  %v5757_v15 = vsel %vm78_vm0, %v5751_v63, %v5753_v22  ;;  %vm7065_vm0 = vcmp.eq.s32.totalorder %v7944_v7, 2 }
 0x8a7   :  { %v5762_v54 = vmul.f32 %v9439_v18, %v5757_v15  ;;  %v5763_v23 = vmul.f32 %v9449_v9, %v5756_v12  ;;  %7358 = vmatprep.subr.msk.bf16.mxu0 %vm102_vm2, %v5767_v42  ;;  %v10149_v42 = vmov 0  }
 0x8a8   :  { %v5766_v59 = vpack.c.bf16 %v5760_v33, %v5760_v33  ;;  %v5727_v25 = vpop.permute.xlu1 %5726 }
 0x8a9   :  { %v5768_v13 = vpack.c.bf16 %v5762_v54, %v5762_v54  ;;  %v5769_v24 = vpack.c.bf16 %v5763_v23, %v5763_v23  ;;  %v5729_v2 = vpop.permute.xlu0 %5728 }
 0x8aa   :  { %v5736_v30 = vsel %vm52_vm1, %v5727_v25, %v5729_v2  ;;  %v5779_v27 = vsel %vm102_vm2, %v5766_v59, 0 }
 0x8ab   :  { %v5739_v18 = vmul.f32 %v5736_v30, %v9468_v56  ;;  %5791 = vmatpush1.bf16.msra.mxu0 %v5779_v27  ;;  %7360 = vmatprep.subr.msk.bf16.mxu1 %vm102_vm2, %v5769_v24  ;;  %v5785_v9 = vsel %vm102_vm2, %v5768_v13, 0  ;;  %v7738_v24 = vld [vmem:[%s10118_s4] sm:$0xff]  }
 0x8ac   :  { %v5733_v43 = vpop.permute.xlu1 %5732  ;;  %5834 = vmatpush1.bf16.msra.mxu1 %v5785_v9 }
 0x8ad   :  { %v5745_v44 = vpack.c.bf16 %v5739_v18, %v5739_v18  ;;  %v5737_v36 = vsel %vm52_vm1, %v5733_v43, %v5727_v25  ;;  %v5731_v58 = vpop.permute.xlu0 %5730 }
 0x8ae   :  { %v5738_v17 = vmul.f32 %v5737_v36, %v9487_v48  ;;  %v5734_v21 = vsel %vm52_vm1, %v5731_v58, %v5733_v43  ;;  %v5735_v56 = vsel %vm52_vm1, %v5729_v2, %v5731_v58  ;;  %7359 = vmatmul.mubr.msk.bf16.vlgmr.msra.gmra.mrb[148].mxu0 %vm98_vm3, %v7737_v31 }
 0x8af   :  { %v5740_v63 = vmul.f32 %v5735_v56, %v9482_v14  ;;  %v5741_v39 = vmul.f32 %v5734_v21, %v9492_v34  ;;  %7361 = vmatmul.mubr.msk.bf16.vlgmr.msra.gmra.mrb[148].mxu1 %vm98_vm3, %v7737_v31  ;;  %7363 = vmatprep.subr.msk.bf16.mxu0 %vm102_vm2, %v5745_v44 }
 0x8b0   :  { %v5744_v37 = vpack.c.bf16 %v5738_v17, %v5738_v17  ;;  %v5983_v35 = vpop.permute.xlu1 %5982  ;;  %5928 = vmatprep.mubr.bf16.mxu0 %v10149_v42  ;;  %5971 = vmatprep.mubr.bf16.mxu1 %v10149_v42 }
 0x8b1   :  { %v5746_v48 = vpack.c.bf16 %v5740_v63, %v5740_v63  ;;  %v5747_v6 = vpack.c.bf16 %v5741_v39, %v5741_v39  ;;  %v5985_v22 = vpop.permute.xlu0 %5984 }
 0x8b2   :  { %v5992_v33 = vsel %vm302_vm4, %v5983_v35, %v5985_v22  ;;  %v5885_v14 = vsel %vm102_vm2, %v5744_v37, 0 }
 0x8b3   :  { %v5995_v34 = vmul.f32 %v9512_v55, %v5992_v33  ;;  %5897 = vmatpush1.bf16.msra.mxu0 %v5885_v14  ;;  %7365 = vmatprep.subr.msk.bf16.mxu1 %vm102_vm2, %v5747_v6  ;;  %v5891_v12 = vsel %vm102_vm2, %v5746_v48, 0 }
 0x8b4   :  { %v5989_v15 = vpop.permute.xlu1 %5988  ;;  %5940 = vmatpush1.bf16.msra.mxu1 %v5891_v12 }
 0x8b5   :  { %v6001_v54 = vpack.c.bf16 %v5995_v34, %v5995_v34  ;;  %v5993_v23 = vsel %vm302_vm4, %v5989_v15, %v5983_v35  ;;  %v5987_v59 = vpop.permute.xlu0 %5986  ;;  %v6259_v34 = vpack.c.bf16 %v9808_v61, %v9808_v61 }
 0x8b6   :  { %v5994_v25 = vmul.f32 %v9532_v40, %v5993_v23  ;;  %v5990_v13 = vsel %vm302_vm4, %v5987_v59, %v5989_v15  ;;  %v5991_v55 = vsel %vm302_vm4, %v5985_v22, %v5987_v59  ;;  %v7739_v22 = vld [vmem:[%s10118_s4 + $0x10] sm:$0xff]   ;;  %v7740_v59 = vld [vmem:[%s10118_s4 + $0x18] sm:$0xff]  }
 0x8b7   :  { %v5996_v2 = vmul.f32 %v9527_v1, %v5991_v55  ;;  %v5997_v30 = vmul.f32 %v9537_v62, %v5990_v13  ;;  %7370 = vmatprep.subr.msk.bf16.mxu0 %vm102_vm2, %v6001_v54 }
 0x8b8   :  { %v6000_v27 = vpack.c.bf16 %v5994_v25, %v5994_v25  ;;  %v6119_v31 = vpop.permute.xlu1 %6118  ;;  %v6256_v25 = vpack.c.bf16 %v9800_v8, %v9800_v8 }
 0x8b9   :  { %v6002_v18 = vpack.c.bf16 %v5996_v2, %v5996_v2  ;;  %v6003_v40 = vpack.c.bf16 %v5997_v30, %v5997_v30  ;;  %v6121_v9 = vpop.permute.xlu0 %6120 }
 0x8ba   :  { %v6128_v43 = vsel %vm431_vm5, %v6119_v31, %v6121_v9  ;;  %7364 = vmatmul.mubr.msk.bf16.vlgmr.msra.gmra.mrb[148].mxu0 %vm98_vm3, %v7738_v24  ;;  %v6013_v44 = vsel %vm102_vm2, %v6000_v27, 0  ;;  %v6269_v30 = vsel %vm102_vm2, %v6256_v25, 0 }
 0x8bb   :  { %v6131_v36 = vmul.f32 %v9557_v16, %v6128_v43  ;;  %7366 = vmatmul.mubr.msk.bf16.vlgmr.msra.gmra.mrb[148].mxu1 %vm98_vm3, %v7738_v24  ;;  %6025 = vmatpush1.bf16.msra.mxu0 %v6013_v44  ;;  %v6019_v1 = vsel %vm102_vm2, %v6002_v18, 0  ;;  %v6258_v24 = vpack.c.bf16 %v9810_v26, %v9810_v26 }
 0x8bc   :  { %7372 = vmatprep.subr.msk.bf16.mxu1 %vm102_vm2, %v6003_v40  ;;  %v6125_v62 = vpop.permute.xlu1 %6124  ;;  %6056 = vmatprep.mubr.bf16.mxu0 %v10149_v42 }
 0x8bd   :  { %v6137_v58 = vpack.c.bf16 %v6131_v36, %v6131_v36  ;;  %v6129_v17 = vsel %vm431_vm5, %v6125_v62, %v6119_v31  ;;  %6068 = vmatpush1.bf16.msra.mxu1 %v6019_v1  ;;  %v6123_v21 = vpop.permute.xlu0 %6122  ;;  %6099 = vmatprep.mubr.bf16.mxu1 %v10149_v42  ;;  %v6275_v8 = vsel %vm102_vm2, %v6258_v24, 0  ;;  %v7743_v24 = vld [vmem:[%s10118_s4 + $0x30] sm:$0xff]  }
 0x8be   :  { %v6130_v16 = vmul.f32 %v9575_v52, %v6129_v17  ;;  %v6126_v56 = vsel %vm431_vm5, %v6123_v21, %v6125_v62  ;;  %v6127_v63 = vsel %vm431_vm5, %v6121_v9, %v6123_v21  ;;  %v7741_v62 = vld [vmem:[%s10118_s4 + $0x20] sm:$0xff]  }
 0x8bf   :  { %v6132_v39 = vmul.f32 %v9570_v4, %v6127_v63  ;;  %v6133_v37 = vmul.f32 %v9580_v51, %v6126_v56  ;;  %7377 = vmatprep.subr.msk.bf16.mxu0 %vm102_vm2, %v6137_v58  ;;  %v6257_v4 = vpack.c.bf16 %v9802_v47, %v9802_v47 }
 0x8c0   :  { %v6136_v48 = vpack.c.bf16 %v6130_v16, %v6130_v16  ;;  %v6375_v6 = vpop.permute.xlu1 %6374 }
 0x8c1   :  { %v6139_v35 = vpack.c.bf16 %v6133_v37, %v6133_v37  ;;  %v6138_v52 = vpack.c.bf16 %v6132_v39, %v6132_v39  ;;  %v6377_v33 = vpop.permute.xlu0 %6376 }
 0x8c2   :  { %v6149_v14 = vsel %vm102_vm2, %v6136_v48, 0 }
 0x8c3   :  { %7379 = vmatprep.subr.msk.bf16.mxu1 %vm102_vm2, %v6139_v35  ;;  %v6155_v51 = vsel %vm102_vm2, %v6138_v52, 0 }
 0x8c4   :  { %v6379_v12 = vpop.permute.xlu1 %6378 }
 0x8c5   :  { %v6381_v15 = vpop.permute.xlu0 %6380  ;;  %v6383_v47 = vsel %vm667_vm6, %v6377_v33, %v6379_v12 }
 0x8c6   :  { %7371 = vmatmul.mubr.msk.bf16.vlgmr.msra.gmra.mrb[148].mxu0 %vm98_vm3, %v7739_v22  ;;  %v6385_v54 = vsel %vm667_vm6, %v6381_v15, %v6375_v6  ;;  %v6387_v23 = vmul.f32 %v9616_v32, %v6383_v47  ;;  %v6384_v32 = vsel %vm667_vm6, %v6375_v6, %v6377_v33 }
 0x8c7   :  { %6161 = vmatpush1.bf16.msra.mxu0 %v6149_v14  ;;  %7373 = vmatmul.mubr.msk.bf16.vlgmr.msra.gmra.mrb[148].mxu1 %vm98_vm3, %v7739_v22  ;;  %v6389_v13 = vmul.f32 %v9630_v5, %v6385_v54  ;;  %v6382_v5 = vsel %vm667_vm6, %v6379_v12, %v6381_v15  ;;  %v6386_v18 = vmul.f32 %v9607_v45, %v6384_v32  ;;  %v7742_v14 = vld [vmem:[%s10118_s4 + $0x28] sm:$0xff]  }
 0x8c8   :  { %6204 = vmatpush1.bf16.msra.mxu1 %v6155_v51  ;;  %7384 = vmatprep.subr.msk.bf16.mxu0 %vm102_vm2, %v6257_v4  ;;  %v6511_v61 = vpop.permute.xlu1 %6510  ;;  %v6393_v2 = vpack.c.bf16 %v6387_v23, %v6387_v23  ;;  %v6388_v40 = vmul.f32 %v9625_v46, %v6382_v5 }
 0x8c9   :  { %7386 = vmatprep.subr.msk.bf16.mxu1 %vm102_vm2, %v6259_v34  ;;  %6192 = vmatprep.mubr.bf16.mxu0 %v10149_v42  ;;  %v6513_v55 = vpop.permute.xlu0 %6512  ;;  %v6395_v27 = vpack.c.bf16 %v6389_v13, %v6389_v13  ;;  %v6392_v44 = vpack.c.bf16 %v6386_v18, %v6386_v18 }
 0x8ca   :  { %6235 = vmatprep.mubr.bf16.mxu1 %v10149_v42  ;;  %v6394_v58 = vpack.c.bf16 %v6388_v40, %v6388_v40  ;;  %v6520_v16 = vsel %vm796_vm7, %v6511_v61, %v6513_v55 }
 0x8cb   :  { %v6405_v46 = vsel %vm102_vm2, %v6392_v44, 0  ;;  %v6522_v37 = vmul.f32 %v9657_v0, %v6520_v16 }
 0x8cc   :  { %v6515_v31 = vpop.permute.xlu1 %6514 }
 0x8cd   :  { %v6517_v26 = vpop.permute.xlu0 %6516  ;;  %v6519_v9 = vsel %vm796_vm7, %v6513_v55, %v6515_v31  ;;  %v6528_v22 = vpack.c.bf16 %v6522_v37, %v6522_v37 }
 0x8ce   :  { %v6521_v43 = vsel %vm796_vm7, %v6517_v26, %v6511_v61  ;;  %v6523_v36 = vmul.f32 %v9663_v49, %v6519_v9  ;;  %v6411_v49 = vsel %vm102_vm2, %v6394_v58, 0  ;;  %v6518_v63 = vsel %vm796_vm7, %v6515_v31, %v6517_v26  ;;  %v7744_v26 = vld [vmem:[%s10118_s4 + $0x38] sm:$0xff]  }
 0x8cf   :  { %v6525_v45 = vmul.f32 %v9675_v41, %v6521_v43  ;;  %v6524_v35 = vmul.f32 %v9670_v29, %v6518_v63  ;;  %v6541_v29 = vsel %vm102_vm2, %v6528_v22, 0 }
 0x8d0   :  { %v6647_v1 = vpop.permute.xlu1 %6646  ;;  %v6529_v21 = vpack.c.bf16 %v6523_v36, %v6523_v36 }
 0x8d1   :  { %v6649_v17 = vpop.permute.xlu0 %6648  ;;  %v6531_v56 = vpack.c.bf16 %v6525_v45, %v6525_v45  ;;  %v6530_v4 = vpack.c.bf16 %v6524_v35, %v6524_v35 }
 0x8d2   :  { %7378 = vmatmul.mubr.msk.bf16.vlgmr.msra.gmra.mrb[148].mxu0 %vm98_vm3, %v7740_v59  ;;  %v6656_v12 = vsel %vm925_vm8, %v6647_v1, %v6649_v17 }
 0x8d3   :  { %6281 = vmatpush1.bf16.msra.mxu0 %v6269_v30  ;;  %7380 = vmatmul.mubr.msk.bf16.vlgmr.msra.gmra.mrb[148].mxu1 %vm98_vm3, %v7740_v59  ;;  %v6658_v23 = vmul.f32 %v9700_v50, %v6656_v12 }
 0x8d4   :  { %6324 = vmatpush1.bf16.msra.mxu1 %v6275_v8  ;;  %7391 = vmatprep.subr.msk.bf16.mxu0 %vm102_vm2, %v6393_v2  ;;  %v6651_v39 = vpop.permute.xlu1 %6650 }
 0x8d5   :  { %7393 = vmatprep.subr.msk.bf16.mxu1 %vm102_vm2, %v6395_v27  ;;  %6312 = vmatprep.mubr.bf16.mxu0 %v10149_v42  ;;  %v6653_v41 = vpop.permute.xlu0 %6652  ;;  %v6655_v48 = vsel %vm925_vm8, %v6649_v17, %v6651_v39  ;;  %v6664_v13 = vpack.c.bf16 %v6658_v23, %v6658_v23  ;;  %v7001_v17 = vrot.slane %v9332_v57, 7  ;;  %v10155_v23 = vld [vmem:[#allocation9_spill] sm:$0xff] }
 0x8d6   :  { %6355 = vmatprep.mubr.bf16.mxu1 %v10149_v42  ;;  %v6657_v6 = vsel %vm925_vm8, %v6653_v41, %v6647_v1  ;;  %v6659_v52 = vmul.f32 %v9708_v11, %v6655_v48  ;;  %v6547_v11 = vsel %vm102_vm2, %v6530_v4, 0  ;;  %v6654_v47 = vsel %vm925_vm8, %v6651_v39, %v6653_v41 }
 0x8d7   :  { %v6661_v0 = vmul.f32 %v9718_v53, %v6657_v6  ;;  %v6660_v61 = vmul.f32 %v9713_v20, %v6654_v47  ;;  %v6677_v20 = vsel %vm102_vm2, %v6664_v13, 0 }
 0x8d8   :  { %v6783_v33 = vpop.permute.xlu1 %6782  ;;  %v6665_v34 = vpack.c.bf16 %v6659_v52, %v6659_v52 }
 0x8d9   :  { %v6785_v51 = vpop.permute.xlu0 %6784  ;;  %v6667_v15 = vpack.c.bf16 %v6661_v0, %v6661_v0  ;;  %v6666_v2 = vpack.c.bf16 %v6660_v61, %v6660_v61  ;;  %v7003_v61 = vrot.slane %v10155_v23, 7 }
 0x8da   :  { %v6792_v32 = vsel %vm1054_vm9, %v6783_v33, %v6785_v51 }
 0x8dc   :  { %v6787_v54 = vpop.permute.xlu1 %6786 }
 0x8dd   :  { %v6789_v53 = vpop.permute.xlu0 %6788  ;;  %v6791_v59 = vsel %vm1054_vm9, %v6785_v51, %v6787_v54  ;;  %v7005_v51 = vsub.f32 %v9332_v57, %v7001_v17 }
 0x8de   :  { %7385 = vmatmul.mubr.msk.bf16.vlgmr.msra.gmra.mrb[148].mxu0 %vm98_vm3, %v7741_v62  ;;  %v6793_v25 = vsel %vm1054_vm9, %v6789_v53, %v6783_v33  ;;  %v6795_v55 = vmul.f32 %v9749_v60, %v6791_v59  ;;  %v6683_v60 = vsel %vm102_vm2, %v6666_v2, 0  ;;  %v6790_v8 = vsel %vm1054_vm9, %v6787_v54, %v6789_v53 }
 0x8df   :  { %6417 = vmatpush1.bf16.msra.mxu0 %v6405_v46  ;;  %7387 = vmatmul.mubr.msk.bf16.vlgmr.msra.gmra.mrb[148].mxu1 %vm98_vm3, %v7741_v62  ;;  %v6797_v50 = vmul.f32 %v9761_v3, %v6793_v25  ;;  %v6794_v3 = vmul.f32 %v9743_v19, %v6792_v32  ;;  %v6796_v5 = vmul.f32 %v9756_v28, %v6790_v8  ;;  %v7745_v19 = vld [vmem:[%s10118_s4 + $0x40] sm:$0xff]   ;;  %v10150_v28 = vlaneseq  ;;  %v10156_v25 = vld [vmem:[#allocation8_spill] sm:$0xff] }
 0x8e0   :  { %6460 = vmatpush1.bf16.msra.mxu1 %v6411_v49  ;;  %7398 = vmatprep.subr.msk.bf16.mxu0 %vm102_vm2, %v6529_v21  ;;  %v6801_v30 = vpack.c.bf16 %v6795_v55, %v6795_v55  ;;  %v7002_v21 = vrot.slane %v9343_v10, 7  ;;  %v7791_v33 = vmov 0.0   ;;  %v10158_v32 = vld [vmem:[#allocation10_spill] sm:$0xff] }
 0x8e1   :  { %7400 = vmatprep.subr.msk.bf16.mxu1 %vm102_vm2, %v6531_v56  ;;  %6448 = vmatprep.mubr.bf16.mxu0 %v10149_v42  ;;  %v6803_v27 = vpack.c.bf16 %v6797_v50, %v6797_v50  ;;  %v6800_v31 = vpack.c.bf16 %v6794_v3, %v6794_v3  ;;  %v6802_v18 = vpack.c.bf16 %v6796_v5, %v6796_v5  ;;  %v6995_v43 = vshrl.u32 %v10150_v28, 7  ;;  %v10159_v5 = vld [vmem:[#allocation4_spill] sm:$0xff] }
 0x8e2   :  { %6491 = vmatprep.mubr.bf16.mxu1 %v10149_v42 }
 0x8e3   :  { %v6813_v40 = vsel %vm102_vm2, %v6800_v31, 0  ;;  %v6819_v9 = vsel %vm102_vm2, %v6802_v18, 0  ;;  %vm6996_vm11 = vcmp.ge.s32.totalorder %v6995_v43, 1  ;;  %vm6997_vm12 = vcmp.lt.s32.totalorder %v6995_v43, 4 }
 0x8e4   :  { %vm10082_vm13 = vmand %vm6996_vm11, %vm6997_vm12 }
 0x8ea   :  { %7392 = vmatmul.mubr.msk.bf16.vlgmr.msra.gmra.mrb[148].mxu0 %vm98_vm3, %v7742_v14 }
 0x8eb   :  { %6553 = vmatpush1.bf16.msra.mxu0 %v6541_v29  ;;  %7394 = vmatmul.mubr.msk.bf16.vlgmr.msra.gmra.mrb[148].mxu1 %vm98_vm3, %v7742_v14  ;;  %v7416_v14 = vsel %vm10082_vm13, 1.0, %v7791_v33  ;;  %v10153_v29 = vld [vmem:[#allocation3_spill] sm:$0xff] }
 0x8ec   :  { %6596 = vmatpush1.bf16.msra.mxu1 %v6547_v11  ;;  %7405 = vmatprep.subr.msk.bf16.mxu0 %vm102_vm2, %v6665_v34  ;;  %v7006_v34 = vsub.f32 %v9343_v10, %v7002_v21 }
 0x8ed   :  { %7407 = vmatprep.subr.msk.bf16.mxu1 %vm102_vm2, %v6667_v15  ;;  %6584 = vmatprep.mubr.bf16.mxu0 %v10149_v42  ;;  %v6923_v44 = vpop.permute.xlu1 %6922  ;;  %v10154_v15 = vld [vmem:[#allocation7_spill] sm:$0xff] }
 0x8ee   :  { %6627 = vmatprep.mubr.bf16.mxu1 %v10149_v42  ;;  %v6928_v36 = vpop.permute.xlu0 %6927  ;;  %v7010_v2 = vmul.f32 %v7416_v14, %v7006_v34 }
 0x8f0   :  { %v7038_v43 = vmul.f32 %v7010_v2, %v7010_v2 }
 0x8f6   :  { %7399 = vmatmul.mubr.msk.bf16.vlgmr.msra.gmra.mrb[148].mxu0 %vm98_vm3, %v7743_v24 }
 0x8f7   :  { %6689 = vmatpush1.bf16.msra.mxu0 %v6677_v20  ;;  %7401 = vmatmul.mubr.msk.bf16.vlgmr.msra.gmra.mrb[148].mxu1 %vm98_vm3, %v7743_v24 }
 0x8f8   :  { %6732 = vmatpush1.bf16.msra.mxu1 %v6683_v60  ;;  %7412 = vmatprep.subr.msk.bf16.mxu0 %vm102_vm2, %v6801_v30  ;;  %v10157_v30 = vld [vmem:[#allocation2_spill] sm:$0xff]  ;;  %v7007_v60 = vsub.f32 %v10155_v23, %v7003_v61 }
 0x8f9   :  { %7414 = vmatprep.subr.msk.bf16.mxu1 %vm102_vm2, %v6803_v27  ;;  %6720 = vmatprep.mubr.bf16.mxu0 %v10149_v42  ;;  %v7004_v27 = vrot.slane %v10158_v32, 7 }
 0x8fa   :  { %6763 = vmatprep.mubr.bf16.mxu1 %v10149_v42 }
 0x902   :  { %7406 = vmatmul.mubr.msk.bf16.vlgmr.msra.gmra.mrb[148].mxu0 %vm98_vm3, %v7744_v26 }
 0x903   :  { %6825 = vmatpush1.bf16.msra.mxu0 %v6813_v40  ;;  %7408 = vmatmul.mubr.msk.bf16.vlgmr.msra.gmra.mrb[148].mxu1 %vm98_vm3, %v7744_v26 }
 0x904   :  { %6868 = vmatpush1.bf16.msra.mxu1 %v6819_v9  ;;  %6856 = vmatprep.mubr.bf16.mxu0 %v10149_v42 }
 0x905   :  { %6899 = vmatprep.mubr.bf16.mxu1 %v10149_v42 }
 0x90e   :  { %7413 = vmatmul.mubr.msk.bf16.vlgmr.msra.gmra.mrb[148].mxu0 %vm98_vm3, %v7745_v19 }
 0x90f   :  { %7415 = vmatmul.mubr.msk.bf16.vlgmr.msra.gmra.mrb[148].mxu1 %vm98_vm3, %v7745_v19  ;;  %v10160_v19 = vld [vmem:[#allocation5_spill] sm:$0xff] }
 0x9e1   :  { %v6858_v1 = vpop.f32.mrb[148].mxu0 }
 0x9e2   :  { %v6930_v62 = vadd.f32 %v6923_v44, %v6858_v1  ;;  %v6860_v58 = vpop.f32.mrb[149].mxu0  ;;  %v6901_v45 = vpop.f32.mrb[148].mxu1 }
 0x9e3   :  { %v6931_v46 = vadd.f32 %v6923_v44, %v6860_v58  ;;  %v6932_v16 = vadd.f32 %v6923_v44, %v6901_v45  ;;  %v6862_v56 = vpop.f32.mrb[150].mxu0  ;;  %v6903_v49 = vpop.f32.mrb[149].mxu1  ;;  %v7011_v45 = vmul.f32 %v7416_v14, %v7007_v60 }
 0x9e4   :  { %v6938_v63 = vmax.f32 %v6930_v62, 0.0  ;;  %v6934_v39 = vadd.f32 %v6928_v36, %v6862_v56  ;;  %v6933_v41 = vadd.f32 %v6923_v44, %v6903_v49  ;;  %v6864_v37 = vpop.f32.mrb[151].mxu0  ;;  %v6905_v35 = vpop.f32.mrb[150].mxu1  ;;  %v7008_v44 = vsub.f32 %v10158_v32, %v7004_v27  ;;  %v10161_v62 = vld [vmem:[#allocation6_spill] sm:$0xff] }
 0x9e5   :  { %v6939_v48 = vmax.f32 %v6931_v46, 0.0  ;;  %v6940_v6 = vmax.f32 %v6932_v16, 0.0  ;;  %v6935_v22 = vadd.f32 %v6928_v36, %v6864_v37  ;;  %v6907_v52 = vpop.f32.mrb[151].mxu1  ;;  %v6936_v54 = vadd.f32 %v6928_v36, %v6905_v35  ;;  %v6986_v35 = vpop.xlane.xlu0 %6985 }
 0x9e6   :  { %v6946_v4 = vsub.f32 %v6938_v63, %v8598_v38  ;;  %v6941_v0 = vmax.f32 %v6933_v41, 0.0  ;;  %v6942_v47 = vmax.f32 %v6934_v39, 0.0  ;;  %v6937_v24 = vadd.f32 %v6928_v36, %v6907_v52 }
 0x9e7   :  { %v6947_v12 = vsub.f32 %v6939_v48, %v10153_v29  ;;  %v6948_v11 = vsub.f32 %v6940_v6, %v10154_v15  ;;  %v6943_v55 = vmax.f32 %v6935_v22, 0.0  ;;  %v7009_v38 = vmul.f32 %v7416_v14, %v7005_v51 }
 0x9e8   :  { %v6954_v53 = vmul.f32 %v6946_v4, %v6946_v4  ;;  %v6949_v13 = vsub.f32 %v6941_v0, %v10156_v25  ;;  %v6950_v10 = vsub.f32 %v6942_v47, %v10157_v30  ;;  %v6944_v20 = vmax.f32 %v6936_v54, 0.0 }
 0x9e9   :  { %v6955_v59 = vmul.f32 %v6947_v12, %v6947_v12  ;;  %v6956_v57 = vmul.f32 %v6948_v11, %v6948_v11  ;;  %v6951_v31 = vsub.f32 %v6943_v55, %v10159_v5  ;;  %v6945_v26 = vmax.f32 %v6937_v24, 0.0  ;;  %v7029_v48 = vpop.xlane.xlu0 %7028 }
 0x9ea   :  { %v6957_v3 = vmul.f32 %v6949_v13, %v6949_v13  ;;  %v7037_v18 = vmul.f32 %v7009_v38, %v7009_v38  ;;  %v6958_v40 = vmul.f32 %v6950_v10, %v6950_v10  ;;  %v6952_v28 = vsub.f32 %v6944_v20, %v10160_v19 }
 0x9eb   :  { %v6962_v50 = vadd.f32 %v6955_v59, %v6954_v53  ;;  %v6959_v36 = vmul.f32 %v6951_v31, %v6951_v31  ;;  %v6953_v58 = vsub.f32 %v6945_v26, %v10161_v62  ;;  %v7012_v56 = vmul.f32 %v7416_v14, %v7008_v44 }
 0x9ec   :  { %v6960_v17 = vmul.f32 %v6952_v28, %v6952_v28  ;;  %v7041_v21 = vadd.f32 %v7038_v43, %v7037_v18  ;;  %v7039_v49 = vmul.f32 %v7011_v45, %v7011_v45  ;;  %v6987_v6 = vrot.slane %v6986_v35, 4 }
 0x9ed   :  { %v6963_v8 = vadd.f32 %v6962_v50, %v6956_v57  ;;  %v6961_v16 = vmul.f32 %v6953_v58, %v6953_v58  ;;  %v7040_v41 = vmul.f32 %v7012_v56, %v7012_v56  ;;  %v7030_v22 = vrot.slane %v7029_v48, 4 }
 0x9ee   :  { %v7042_v39 = vadd.f32 %v7041_v21, %v7039_v49  ;;  %v6988_v52 = vadd.f32 %v6987_v6, %v6986_v35  ;;  %v7417_v30 = vsel %vm7054_vm14, 1.0, %v7791_v33  ;;  %v7418_v20 = vsel %vm7059_vm15, 1.0, %v7791_v33 }
 0x9ef   :  { %v6964_v9 = vadd.f32 %v6963_v8, %v6957_v3  ;;  %v7031_v4 = vadd.f32 %v7030_v22, %v7029_v48  ;;  %v7419_v8 = vsel %vm7065_vm0, 1.0, %v7791_v33 }
 0x9f0   :  { %v7043_v37 = vadd.f32 %v7042_v39, %v7040_v41  ;;  %v6989_v0 = vrot.slane %v6988_v52, 2 }
 0x9f1   :  { %v6965_v1 = vadd.f32 %v6964_v9, %v6958_v40  ;;  %v7032_v34 = vrot.slane %v7031_v4, 2 }
 0x9f2   :  { %v6990_v14 = vadd.f32 %v6989_v0, %v6988_v52 }
 0x9f3   :  { %v6966_v42 = vadd.f32 %v6965_v1, %v6959_v36  ;;  %v7033_v11 = vadd.f32 %v7032_v34, %v7031_v4 }
 0x9f4   :  { %v6991_v61 = vrot.slane %v6990_v14, 1 }
 0x9f5   :  { %v6967_v46 = vadd.f32 %v6966_v42, %v6960_v17  ;;  %v7034_v13 = vrot.slane %v7033_v11, 1 }
 0x9f6   :  { %v6992_v38 = vadd.f32 %v6991_v61, %v6990_v14 }
 0x9f7   :  { %v6968_v63 = vadd.f32 %v6967_v46, %v6961_v16  ;;  %v7035_v2 = vadd.f32 %v7034_v13, %v7033_v11 }
 0x9f9   :  { %6969 = vadd.xlane.f32.xlu1 %v6968_v63 }
 0x9fd   :  { %7044 = vadd.xlane.f32.xlu1 %v7043_v37 }
 0xa86   :  { %v6970_v51 = vpop.xlane.xlu1 %6969 }
 0xa87   :  { %v6971_v29 = vrot.slane %v6970_v51, 4 }
 0xa89   :  { %v6972_v12 = vadd.f32 %v6971_v29, %v6970_v51 }
 0xa8a   :  { %v7045_v15 = vpop.xlane.xlu1 %7044 }
 0xa8b   :  { %v6973_v47 = vrot.slane %v6972_v12, 2  ;;  %v7046_v54 = vrot.slane %v7045_v15, 4 }
 0xa8d   :  { %v7047_v53 = vadd.f32 %v7046_v54, %v7045_v15  ;;  %v6974_v23 = vadd.f32 %v6973_v47, %v6972_v12 }
 0xa8f   :  { %v7048_v59 = vrot.slane %v7047_v53, 2  ;;  %v6975_v25 = vrot.slane %v6974_v23, 1 }
 0xa91   :  { %v7049_v55 = vadd.f32 %v7048_v59, %v7047_v53  ;;  %v6976_v24 = vadd.f32 %v6975_v25, %v6974_v23 }
 0xa93   :  { %7548 = vpush %v6976_v24  ;;  %v7050_v50 = vrot.slane %v7049_v55, 1 }
 0xa94   :  { %7550 = vpush %v6992_v38 }
 0xa95   :  { %7552 = vpush %v7035_v2  ;;  %v7051_v57 = vadd.f32 %v7050_v50, %v7049_v55 }
 0xa97   :  { %7554 = vpush %v7051_v57 }
 0xac4   :  { %s7549_s4 = spop %7548 }
 0xac5   :  { %v7057_v10 = vstv %s7549_s4  ;;  %s7551_s7 = spop %7550 }
 0xac6   :  { %v7062_v32 = vstv %s7551_s7  ;;  %s7553_s3 = spop %7552  ;;  %v7058_v27 = vmul.f32 %v7417_v30, %v7057_v10 }
 0xac7   :  { %v7063_v60 = vmul.f32 %v7418_v20, %v7062_v32 }
 0xac8   :  { %s7555_s24 = spop %7554 }
 0xac9   :  { %s7053_s1 = sadd.f32 %s7555_s24, %s7553_s3  ;;  %v7064_v5 = vadd.f32 %v7063_v60, %v7058_v27 }
 0xacb   :  { %v7068_v3 = vstv %s7053_s1 }
 0xacc   :  { %v7069_v31 = vmul.f32 %v7419_v8, %v7068_v3 }
 0xace   :  { %v7070_v26 = vadd.f32 %v7069_v31, %v7064_v5 }
 0xad0   :  { %7071 = vst [vmem:[%s10125_s11] sm:$0xff] %v7070_v26 }

</bundles_post_ra>
